<compile_context>
chip_gen: v7x
topology: tpu7x:2x2x1
jax: 0.10.0
libtpu: 0.0.40
codegen_flags: <defaults>
</compile_context>

<pallas_src>
import functools

import jax
import jax.numpy as jnp
from jax import lax
from jax.experimental import pallas as pl
from jax.experimental.pallas import tpu as pltpu

# ----------------------------- small synthetic config -----------------------------
B = 2            # batch
T_MEL = 32       # mel frames
N_MELS = 16      # mel feature dim (F)
D_MODEL = 32     # transformer hidden
N_HEADS = 4
HEAD_DIM = D_MODEL // N_HEADS
D_FF = 64
N_LAYERS = 2
KERNEL = 3       # conv subsampler kernel
STRIDE = 2       # conv subsampler stride
PAD = 1          # conv subsampler padding
CAUSAL = True    # config.causal
NEG_INF = -1e9
LN_EPS = 1e-5

T_SUB = T_MEL // (STRIDE * STRIDE)   # time length after the two stride-2 convs


# ----------------------------- in-kernel math helpers -----------------------------
def _gelu(x):
    # tanh-approx GELU (EUP-friendly).  nn.GELU default is exact erf -> small numeric drift.
    c = 0.7978845608028654  # sqrt(2/pi)
    return 0.5 * x * (1.0 + jnp.tanh(c * (x + 0.044715 * x * x * x)))


def _layernorm(x, g, b):
    mean = jnp.mean(x, axis=-1, keepdims=True)
    var = jnp.mean((x - mean) ** 2, axis=-1, keepdims=True)
    return (x - mean) * lax.rsqrt(var + LN_EPS) * g + b


def conv_out_len(lengths):
    return (lengths + 2 * PAD - KERNEL) // STRIDE + 1


# ----------------------------- batch-grouping policy -----------------------------
def _num_tensorcores():
    # Best-effort TensorCores-per-chip detection: v7x / v4 / v5p expose 2, v5e / v6e expose 1.
    try:
        kind = jax.devices()[0].device_kind.lower()
    except Exception:
        return 1
    return 2 if any(tag in kind for tag in ("v7", "v4", "v5p")) else 1


def _batch_grouping(bsz):
    # One batch-group per TensorCore: on 2-TC chips keep 2 "parallel" grid steps busy; on 1-TC
    # chips fold the whole batch into a single fat step (amortizes ~0.35us/step overhead and
    # doubles the M dim of every matmul and of the output store).
    steps = max(1, min(bsz, _num_tensorcores()))
    while bsz % steps:
        steps -= 1
    return bsz // steps


# ----------------------------- fused encoder kernel -----------------------------
def _speech_encoder_kernel(
        len_ref,                           # SMEM [B] int32 (scalar-prefetched subsampled lengths)
        x_ref,                             # [BB*T_SUB, 4*N_MELS] f32 (4 mel frames lane-packed/row)
        c1w_ref, c1b_ref,                  # [3F, D] bf16 (taps row-stacked), [1, D] f32
        c2w_ref, c2b_ref,                  # [3D, D] bf16 (taps row-stacked), [1, D] f32
        ln1g_ref, ln1b_ref,                # [L, 1, D] f32
        wqkv_ref, bqkv_ref,                # [L, D, 3D] bf16 (fused QKV), [L, 1, 3D] f32
        wo_ref, bo_ref,                    # [L, D, D] bf16, [L, 1, D] f32
        ln2g_ref, ln2b_ref,                # [L, 1, D] f32
        w1_ref, b1_ref, w2_ref, b2_ref,    # [L, D, FF] bf16, [L,1,FF] f32, [L, FF, D] bf16, [L,1,D]
        lnfg_ref, lnfb_ref,                # [1, D] f32
        out_ref,                           # [BB*T_SUB, D] f32 block of [B*T_SUB, D]
        *, bb, t_sub):
    step = pl.program_id(0)
    f32, bf16 = jnp.float32, jnp.bfloat16
    f, d = N_MELS, D_MODEL

    def shift_down(v):
        # row m <- v[m-1]; the first row of every batch inside this step becomes the conv's left
        # zero padding.  pltpu.roll keeps the shift in the XLU slot; the mask is one VPU select.
        rolled = pltpu.roll(v, shift=1, axis=0)
        row = lax.broadcasted_iota(jnp.int32, v.shape, 0)
        is_first = row == 0
        for bi in range(1, bb):
            is_first = jnp.logical_or(is_first, row == bi * t_sub)
        return jnp.where(is_first, 0.0, rolled)

    def mxu(a, w, bias):
        return jnp.dot(a.astype(bf16), w, preferred_element_type=f32) + bias

    # ---------------- conv subsampler: 2x (Conv1d k=3 s=2 p=1 + GELU), 3 wide matmuls ----------------
    # x_flat row (b, j) holds frames [x[4j] | x[4j+1] | x[4j+2] | x[4j+3]] of batch b.
    # conv1 even rows : h1[2j]   = x[4j-1]w0 + x[4j]w1   + x[4j+1]w2
    # conv1 odd rows  : h1[2j+1] = x[4j+1]w0 + x[4j+2]w1 + x[4j+3]w2
    # conv2 rows      : h[j]     = h1[2j-1]v0 + h1[2j]v1 + h1[2j+1]v2
    x = x_ref[...]                                                            # [M, 4F]
    xp3 = x[:, 3 * f:4 * f]
    even_in = jnp.concatenate([shift_down(xp3), x[:, 0:2 * f]], axis=-1)      # [M, 3F]
    odd_in = x[:, f:4 * f]                                                    # [M, 3F] (pure slice)
    h1_even = _gelu(mxu(even_in, c1w_ref[...], c1b_ref[...]))                 # conv1 rows 2j
    h1_odd = _gelu(mxu(odd_in, c1w_ref[...], c1b_ref[...]))                   # conv1 rows 2j+1
    h2_in = jnp.concatenate([shift_down(h1_odd), h1_even, h1_odd], axis=-1)   # [M, 3D]
    h = _gelu(mxu(h2_in, c2w_ref[...], c2b_ref[...]))                         # [M, D]

    # ---------------- attention bias (key padding + optional causal), per batch in step ----------------
    col = lax.broadcasted_iota(jnp.int32, (t_sub, t_sub), 1)
    row = lax.broadcasted_iota(jnp.int32, (t_sub, t_sub), 0)
    biases = []
    for bi in range(bb):
        valid = col < len_ref[step * bb + bi]
        if CAUSAL:
            valid = jnp.logical_and(valid, col <= row)
        biases.append(jnp.where(valid, 0.0, NEG_INF).astype(f32))
    scale = 1.0 / float(HEAD_DIM) ** 0.5

    # ---------------- N_LAYERS pre-LN encoder layers ----------------
    # Static unroll is fine at L=2; switch to lax.fori_loop with dynamic ref[l] indexing if L grows.
    for l in range(N_LAYERS):
        # fused QKV projection: one [M, D] x [D, 3D] matmul
        hn = _layernorm(h, ln1g_ref[l], ln1b_ref[l])
        qkv = mxu(hn, wqkv_ref[l], bqkv_ref[l])                               # [M, 3D]

        ctx_rows = []
        for bi in range(bb):                                                  # per-batch attention
            qkv_b = qkv[bi * t_sub:(bi + 1) * t_sub, :]                       # [T, 3D] static slice

            def split_heads(off):
                return jnp.stack(
                    [qkv_b[:, off + hh * HEAD_DIM: off + (hh + 1) * HEAD_DIM]
                     for hh in range(N_HEADS)], axis=0).astype(bf16)          # [H, T, Dh]

            q, k, v = split_heads(0), split_heads(d), split_heads(2 * d)
            s = jnp.einsum("hqd,hkd->hqk", q, k,
                           preferred_element_type=f32) * scale + biases[bi]   # [H, T, T]
            s = s - jnp.max(s, axis=-1, keepdims=True)
            p = jnp.exp(s)
            p = p * pl.reciprocal(jnp.sum(p, axis=-1, keepdims=True), approx=True)
            ctx = jnp.einsum("hqk,hkd->hqd", p.astype(bf16), v,
                             preferred_element_type=f32)                      # [H, T, Dh]
            # merge heads back to [T, H*Dh] (lane concat) for the single output projection
            ctx_rows.append(jnp.concatenate([ctx[hh] for hh in range(N_HEADS)], axis=-1))

        ctx_all = ctx_rows[0] if bb == 1 else jnp.concatenate(ctx_rows, axis=0)   # [M, D]
        h = h + mxu(ctx_all, wo_ref[l], bo_ref[l])                            # one [M,D]x[D,D]

        # pre-LN feed-forward
        hn2 = _layernorm(h, ln2g_ref[l], ln2b_ref[l])
        ff = _gelu(mxu(hn2, w1_ref[l], b1_ref[l]))
        h = h + mxu(ff, w2_ref[l], b2_ref[l])

    # ---------------- final LayerNorm + store (one lane-contiguous slab per step) ----------------
    out_ref[...] = _layernorm(h, lnfg_ref[...], lnfb_ref[...])


def _encoder_pallas_call(x_flat, lengths, kp, bsz, t_sub, batch_per_step=None):
    d = D_MODEL
    bb = batch_per_step if batch_per_step is not None else _batch_grouping(bsz)
    n_steps = bsz // bb
    m = bb * t_sub

    weights = [kp["c1w"], kp["c1b"], kp["c2w"], kp["c2b"],
               kp["ln1_g"], kp["ln1_b"], kp["wqkv"], kp["bqkv"],
               kp["wo"], kp["bo"], kp["ln2_g"], kp["ln2_b"],
               kp["w1"], kp["b1"], kp["w2"], kp["b2"],
               kp["lnf_g"], kp["lnf_b"]]

    # Weights: whole-array resident in VMEM (loaded once, not per-step double-buffered).
    # TODO(synk): at production dims (D>=512, FF>=2048, L>=12) stream per-layer weights with an
    #             "arbitrary" layer grid axis (or manual double-buffered make_async_copy) so only
    #             ~2 layers are VMEM-resident (v7x has 64 MiB VMEM), and raise
    #             CompilerParams(vmem_limit_bytes=...) above the 16/32 MiB scoped defaults on v5e/v6e.
    vmem = pltpu.MemorySpace.VMEM
    grid_spec = pltpu.PrefetchScalarGridSpec(
        num_scalar_prefetch=1,                                   # lengths -> SMEM
        grid=(n_steps,),
        in_specs=([pl.BlockSpec((m, 4 * N_MELS), lambda i, lens: (i, 0))]      # lane-dense input
                  + [pl.BlockSpec(memory_space=vmem) for _ in weights]),
        out_specs=pl.BlockSpec((m, d), lambda i, lens: (i, 0)),               # contiguous row slab
    )
    kernel = functools.partial(_speech_encoder_kernel, bb=bb, t_sub=t_sub)
    out = pl.pallas_call(
        kernel,
        out_shape=jax.ShapeDtypeStruct((bsz * t_sub, d), jnp.float32),
        grid_spec=grid_spec,
        compiler_params=pltpu.CompilerParams(dimension_semantics=("parallel",)),
    )(lengths, x_flat, *weights)
    return out


# ----------------------------- parameters (deterministic init) -----------------------------
def init_params(key):
    keys = iter(jax.random.split(key, 128))

    def dense(shape, scale=0.02):
        return (scale * jax.random.normal(next(keys), shape)).astype(jnp.float32)

    params = {
        "conv1_w": dense((KERNEL, N_MELS, D_MODEL)),
        "conv1_b": jnp.zeros((1, D_MODEL), jnp.float32),
        "conv2_w": dense((KERNEL, D_MODEL, D_MODEL)),
        "conv2_b": jnp.zeros((1, D_MODEL), jnp.float32),
        "lnf_g": jnp.ones((1, D_MODEL), jnp.float32),
        "lnf_b": jnp.zeros((1, D_MODEL), jnp.float32),
        "layers": [],
    }
    for _ in range(N_LAYERS):
        params["layers"].append(dict(
            ln1_g=jnp.ones((1, D_MODEL), jnp.float32),
            ln1_b=jnp.zeros((1, D_MODEL), jnp.float32),
            wq=dense((D_MODEL, D_MODEL)), bq=jnp.zeros((1, D_MODEL), jnp.float32),
            wk=dense((D_MODEL, D_MODEL)), bk=jnp.zeros((1, D_MODEL), jnp.float32),
            wv=dense((D_MODEL, D_MODEL)), bv=jnp.zeros((1, D_MODEL), jnp.float32),
            wo=dense((D_MODEL, D_MODEL)), bo=jnp.zeros((1, D_MODEL), jnp.float32),
            ln2_g=jnp.ones((1, D_MODEL), jnp.float32),
            ln2_b=jnp.zeros((1, D_MODEL), jnp.float32),
            w1=dense((D_MODEL, D_FF)), b1=jnp.zeros((1, D_FF), jnp.float32),
            w2=dense((D_FF, D_MODEL)), b2=jnp.zeros((1, D_MODEL), jnp.float32),
        ))
    return params


def pack_params(params):
    """Kernel weight layout:
       - conv taps row-stacked: c1w [3F, D], c2w [3D, D]  -> one matmul per conv stage,
       - per-layer tensors stacked along a leading [L] axis (indexed with ref[l] in-kernel),
       - wq|wk|wv concatenated column-wise into wqkv [L, D, 3D] (fused QKV matmul),
       - wo kept un-split [L, D, D] (single output projection over merged heads),
       - MXU matmul weights cast to bf16 (f32 accumulation in-kernel)."""
    bf16 = jnp.bfloat16
    layers = params["layers"]

    def stack(name, cast=None):
        w = jnp.stack([lp[name] for lp in layers], axis=0)
        return w.astype(cast) if cast is not None else w

    wqkv = jnp.stack([jnp.concatenate([lp["wq"], lp["wk"], lp["wv"]], axis=1) for lp in layers], 0)
    bqkv = jnp.stack([jnp.concatenate([lp["bq"], lp["bk"], lp["bv"]], axis=1) for lp in layers], 0)

    return dict(
        c1w=params["conv1_w"].reshape(KERNEL * N_MELS, D_MODEL).astype(bf16),
        c1b=params["conv1_b"],
        c2w=params["conv2_w"].reshape(KERNEL * D_MODEL, D_MODEL).astype(bf16),
        c2b=params["conv2_b"],
        ln1_g=stack("ln1_g"), ln1_b=stack("ln1_b"),
        wqkv=wqkv.astype(bf16), bqkv=bqkv,
        wo=stack("wo", bf16), bo=stack("bo"),
        ln2_g=stack("ln2_g"), ln2_b=stack("ln2_b"),
        w1=stack("w1", bf16), b1=stack("b1"),
        w2=stack("w2", bf16), b2=stack("b2"),
        lnf_g=params["lnf_g"], lnf_b=params["lnf_b"],
    )


# ----------------------------- full forward -----------------------------
def speech_encoder_forward(x, lengths, kparams, batch_per_step=None):
    """x: [B, T, n_mels] mel features (ndim==3 -> mel_transform branch skipped, as in PyTorch).
       Returns (embs [B, T//4, D_MODEL], subsampled lengths [B])."""
    bsz, t_mel, n_mels = x.shape
    # TODO(synk): general T (not a multiple of 4) needs right-edge handling in the phase packing.
    assert t_mel % (STRIDE * STRIDE) == 0, "wrapper assumes T divisible by 4"
    t_sub = t_mel // (STRIDE * STRIDE)

    # Lane-dense input layout: 4 consecutive mel frames packed along the feature axis
    # (pure row-major reshape, no transpose) -> 64-wide input DMA / loads instead of 16.
    x_flat = x.reshape(bsz * t_sub, (STRIDE * STRIDE) * n_mels)

    if lengths is not None:
        new_lengths = conv_out_len(conv_out_len(lengths)).astype(jnp.int32)
    else:
        new_lengths = jnp.full((bsz,), t_sub, dtype=jnp.int32)

    embs = _encoder_pallas_call(x_flat, new_lengths, kparams, bsz, t_sub, batch_per_step)
    return embs.reshape(bsz, t_sub, D_MODEL), new_lengths


if __name__ == "__main__":
    key = jax.random.PRNGKey(0)
    pkey, xkey = jax.random.split(key)
    params = init_params(pkey)
    kparams = pack_params(params)

    x = jax.random.normal(xkey, (B, T_MEL, N_MELS), dtype=jnp.float32)
    lengths = jnp.array([T_MEL, 20], dtype=jnp.int32)

    embs, out_lengths = speech_encoder_forward(x, lengths, kparams)
    jax.block_until_ready(embs)
    jax.block_until_ready(out_lengths)

    assert embs.shape == (B, T_MEL // 4, D_MODEL), embs.shape
    assert out_lengths.shape == (B,), out_lengths.shape
    assert bool(jnp.all(jnp.isfinite(embs))), "non-finite kernel output"
    print("KERNEL_OK")
</pallas_src>

<mosaic_0001>
module attributes {stable_mosaic.version = 11 : i64} {
  func.func @_speech_encoder_kernel(%arg0: i32, %arg1: memref<2xi32, #tpu.memory_space<smem>>, %arg2: memref<16x64xf32, #tpu.memory_space<vmem>>, %arg3: memref<48x32xbf16, #tpu.memory_space<vmem>>, %arg4: memref<1x32xf32, #tpu.memory_space<vmem>>, %arg5: memref<96x32xbf16, #tpu.memory_space<vmem>>, %arg6: memref<1x32xf32, #tpu.memory_space<vmem>>, %arg7: memref<2x1x32xf32, #tpu.memory_space<vmem>>, %arg8: memref<2x1x32xf32, #tpu.memory_space<vmem>>, %arg9: memref<2x32x96xbf16, #tpu.memory_space<vmem>>, %arg10: memref<2x1x96xf32, #tpu.memory_space<vmem>>, %arg11: memref<2x32x32xbf16, #tpu.memory_space<vmem>>, %arg12: memref<2x1x32xf32, #tpu.memory_space<vmem>>, %arg13: memref<2x1x32xf32, #tpu.memory_space<vmem>>, %arg14: memref<2x1x32xf32, #tpu.memory_space<vmem>>, %arg15: memref<2x32x64xbf16, #tpu.memory_space<vmem>>, %arg16: memref<2x1x64xf32, #tpu.memory_space<vmem>>, %arg17: memref<2x64x32xbf16, #tpu.memory_space<vmem>>, %arg18: memref<2x1x32xf32, #tpu.memory_space<vmem>>, %arg19: memref<1x32xf32, #tpu.memory_space<vmem>>, %arg20: memref<1x32xf32, #tpu.memory_space<vmem>>, %arg21: memref<16x32xf32, #tpu.memory_space<vmem>>) attributes {dimension_semantics = [#tpu.dimension_semantics<parallel>], iteration_bounds = array<i64: 1>, scalar_prefetch = 1 : i64, scratch_operands = 0 : i64, tpu.core_type = #tpu.core_type<tc>, window_params = [{transform_indices = @transform_0, window_bounds = array<i64: 16, 64>}, {pipeline_mode = #tpu.pipeline_mode<synchronous>, transform_indices = @transform_1, window_bounds = array<i64: 48, 32>}, {pipeline_mode = #tpu.pipeline_mode<synchronous>, transform_indices = @transform_2, window_bounds = array<i64: 1, 32>}, {pipeline_mode = #tpu.pipeline_mode<synchronous>, transform_indices = @transform_3, window_bounds = array<i64: 96, 32>}, {pipeline_mode = #tpu.pipeline_mode<synchronous>, transform_indices = @transform_4, window_bounds = array<i64: 1, 32>}, {pipeline_mode = #tpu.pipeline_mode<synchronous>, transform_indices = @transform_5, window_bounds = array<i64: 2, 1, 32>}, {pipeline_mode = #tpu.pipeline_mode<synchronous>, transform_indices = @transform_6, window_bounds = array<i64: 2, 1, 32>}, {pipeline_mode = #tpu.pipeline_mode<synchronous>, transform_indices = @transform_7, window_bounds = array<i64: 2, 32, 96>}, {pipeline_mode = #tpu.pipeline_mode<synchronous>, transform_indices = @transform_8, window_bounds = array<i64: 2, 1, 96>}, {pipeline_mode = #tpu.pipeline_mode<synchronous>, transform_indices = @transform_9, window_bounds = array<i64: 2, 32, 32>}, {pipeline_mode = #tpu.pipeline_mode<synchronous>, transform_indices = @transform_10, window_bounds = array<i64: 2, 1, 32>}, {pipeline_mode = #tpu.pipeline_mode<synchronous>, transform_indices = @transform_11, window_bounds = array<i64: 2, 1, 32>}, {pipeline_mode = #tpu.pipeline_mode<synchronous>, transform_indices = @transform_12, window_bounds = array<i64: 2, 1, 32>}, {pipeline_mode = #tpu.pipeline_mode<synchronous>, transform_indices = @transform_13, window_bounds = array<i64: 2, 32, 64>}, {pipeline_mode = #tpu.pipeline_mode<synchronous>, transform_indices = @transform_14, window_bounds = array<i64: 2, 1, 64>}, {pipeline_mode = #tpu.pipeline_mode<synchronous>, transform_indices = @transform_15, window_bounds = array<i64: 2, 64, 32>}, {pipeline_mode = #tpu.pipeline_mode<synchronous>, transform_indices = @transform_16, window_bounds = array<i64: 2, 1, 32>}, {pipeline_mode = #tpu.pipeline_mode<synchronous>, transform_indices = @transform_17, window_bounds = array<i64: 1, 32>}, {pipeline_mode = #tpu.pipeline_mode<synchronous>, transform_indices = @transform_18, window_bounds = array<i64: 1, 32>}, {transform_indices = @transform_19, window_bounds = array<i64: 16, 32>}]} {
    %c0 = arith.constant 0 : index
    %c0_0 = arith.constant 0 : index
    %0 = vector.load %arg2[%c0, %c0_0] : memref<16x64xf32, #tpu.memory_space<vmem>>, vector<16x64xf32>
    %1 = vector.extract_strided_slice %0 {offsets = [0, 48], sizes = [16, 16], strides = [1, 1]} : vector<16x64xf32> to vector<16x16xf32>
    %c1_i32 = arith.constant 1 : i32
    %2 = tpu.dynamic_rotate %1 by %c1_i32 dim 0 : vector<16x16xf32>, i32 -> vector<16x16xf32>
    %3 = tpu.iota {dimensions = array<i32: 0>} : vector<16x16xi32>
    %c0_i32 = arith.constant 0 : i32
    %4 = vector.broadcast %c0_i32 : i32 to vector<16x16xi32>
    %5 = arith.cmpi eq, %3, %4 : vector<16x16xi32>
    %c8_i32 = arith.constant 8 : i32
    %6 = vector.broadcast %c8_i32 : i32 to vector<16x16xi32>
    %7 = arith.cmpi eq, %3, %6 : vector<16x16xi32>
    %8 = arith.ori %5, %7 : vector<16x16xi1>
    %cst = arith.constant 0.000000e+00 : f32
    %9 = vector.broadcast %cst : f32 to vector<16x16xf32>
    %10 = arith.select %8, %9, %2 : vector<16x16xi1>, vector<16x16xf32>
    %11 = vector.extract_strided_slice %0 {offsets = [0, 0], sizes = [16, 32], strides = [1, 1]} : vector<16x64xf32> to vector<16x32xf32>
    %12 = tpu.concatenate %10, %11 in 1 : vector<16x16xf32>, vector<16x32xf32> -> vector<16x48xf32>
    %13 = vector.extract_strided_slice %0 {offsets = [0, 16], sizes = [16, 48], strides = [1, 1]} : vector<16x64xf32> to vector<16x48xf32>
    %c0_1 = arith.constant 0 : index
    %c0_2 = arith.constant 0 : index
    %14 = vector.load %arg3[%c0_1, %c0_2] : memref<48x32xbf16, #tpu.memory_space<vmem>>, vector<48x32xbf16>
    %c0_3 = arith.constant 0 : index
    %c0_4 = arith.constant 0 : index
    %15 = vector.load %arg4[%c0_3, %c0_4] : memref<1x32xf32, #tpu.memory_space<vmem>>, vector<1x32xf32>
    %16 = arith.truncf %12 : vector<16x48xf32> to vector<16x48xbf16>
    %cst_5 = arith.constant dense<0.000000e+00> : vector<16x32xf32>
    %17 = tpu.matmul %16, %14, %cst_5 {dimension_numbers = #tpu.dot_dimension_numbers<[1], [0], [0], [1], [0, 0, 1, 1], [], []>} : vector<16x48xbf16>, vector<48x32xbf16>, vector<16x32xf32> -> vector<16x32xf32>
    %18 = vector.broadcast %15 : vector<1x32xf32> to vector<16x32xf32>
    %19 = arith.addf %17, %18 : vector<16x32xf32>
    %cst_6 = arith.constant 5.000000e-01 : f32
    %20 = vector.broadcast %cst_6 : f32 to vector<16x32xf32>
    %21 = arith.mulf %20, %19 : vector<16x32xf32>
    %cst_7 = arith.constant 4.471500e-02 : f32
    %22 = vector.broadcast %cst_7 : f32 to vector<16x32xf32>
    %23 = arith.mulf %22, %19 : vector<16x32xf32>
    %24 = arith.mulf %23, %19 : vector<16x32xf32>
    %25 = arith.mulf %24, %19 : vector<16x32xf32>
    %26 = arith.addf %19, %25 : vector<16x32xf32>
    %cst_8 = arith.constant 0.797884583 : f32
    %27 = vector.broadcast %cst_8 : f32 to vector<16x32xf32>
    %28 = arith.mulf %27, %26 : vector<16x32xf32>
    %29 = math.tanh %28 : vector<16x32xf32>
    %cst_9 = arith.constant 1.000000e+00 : f32
    %30 = vector.broadcast %cst_9 : f32 to vector<16x32xf32>
    %31 = arith.addf %30, %29 : vector<16x32xf32>
    %32 = arith.mulf %21, %31 : vector<16x32xf32>
    %c0_10 = arith.constant 0 : index
    %c0_11 = arith.constant 0 : index
    %33 = vector.load %arg3[%c0_10, %c0_11] : memref<48x32xbf16, #tpu.memory_space<vmem>>, vector<48x32xbf16>
    %c0_12 = arith.constant 0 : index
    %c0_13 = arith.constant 0 : index
    %34 = vector.load %arg4[%c0_12, %c0_13] : memref<1x32xf32, #tpu.memory_space<vmem>>, vector<1x32xf32>
    %35 = arith.truncf %13 : vector<16x48xf32> to vector<16x48xbf16>
    %cst_14 = arith.constant dense<0.000000e+00> : vector<16x32xf32>
    %36 = tpu.matmul %35, %33, %cst_14 {dimension_numbers = #tpu.dot_dimension_numbers<[1], [0], [0], [1], [0, 0, 1, 1], [], []>} : vector<16x48xbf16>, vector<48x32xbf16>, vector<16x32xf32> -> vector<16x32xf32>
    %37 = vector.broadcast %34 : vector<1x32xf32> to vector<16x32xf32>
    %38 = arith.addf %36, %37 : vector<16x32xf32>
    %cst_15 = arith.constant 5.000000e-01 : f32
    %39 = vector.broadcast %cst_15 : f32 to vector<16x32xf32>
    %40 = arith.mulf %39, %38 : vector<16x32xf32>
    %cst_16 = arith.constant 4.471500e-02 : f32
    %41 = vector.broadcast %cst_16 : f32 to vector<16x32xf32>
    %42 = arith.mulf %41, %38 : vector<16x32xf32>
    %43 = arith.mulf %42, %38 : vector<16x32xf32>
    %44 = arith.mulf %43, %38 : vector<16x32xf32>
    %45 = arith.addf %38, %44 : vector<16x32xf32>
    %cst_17 = arith.constant 0.797884583 : f32
    %46 = vector.broadcast %cst_17 : f32 to vector<16x32xf32>
    %47 = arith.mulf %46, %45 : vector<16x32xf32>
    %48 = math.tanh %47 : vector<16x32xf32>
    %cst_18 = arith.constant 1.000000e+00 : f32
    %49 = vector.broadcast %cst_18 : f32 to vector<16x32xf32>
    %50 = arith.addf %49, %48 : vector<16x32xf32>
    %51 = arith.mulf %40, %50 : vector<16x32xf32>
    %c1_i32_19 = arith.constant 1 : i32
    %52 = tpu.dynamic_rotate %51 by %c1_i32_19 dim 0 : vector<16x32xf32>, i32 -> vector<16x32xf32>
    %53 = tpu.iota {dimensions = array<i32: 0>} : vector<16x32xi32>
    %c0_i32_20 = arith.constant 0 : i32
    %54 = vector.broadcast %c0_i32_20 : i32 to vector<16x32xi32>
    %55 = arith.cmpi eq, %53, %54 : vector<16x32xi32>
    %c8_i32_21 = arith.constant 8 : i32
    %56 = vector.broadcast %c8_i32_21 : i32 to vector<16x32xi32>
    %57 = arith.cmpi eq, %53, %56 : vector<16x32xi32>
    %58 = arith.ori %55, %57 : vector<16x32xi1>
    %cst_22 = arith.constant 0.000000e+00 : f32
    %59 = vector.broadcast %cst_22 : f32 to vector<16x32xf32>
    %60 = arith.select %58, %59, %52 : vector<16x32xi1>, vector<16x32xf32>
    %61 = tpu.concatenate %60, %32, %51 in 1 : vector<16x32xf32>, vector<16x32xf32>, vector<16x32xf32> -> vector<16x96xf32>
    %c0_23 = arith.constant 0 : index
    %c0_24 = arith.constant 0 : index
    %62 = vector.load %arg5[%c0_23, %c0_24] : memref<96x32xbf16, #tpu.memory_space<vmem>>, vector<96x32xbf16>
    %c0_25 = arith.constant 0 : index
    %c0_26 = arith.constant 0 : index
    %63 = vector.load %arg6[%c0_25, %c0_26] : memref<1x32xf32, #tpu.memory_space<vmem>>, vector<1x32xf32>
    %64 = arith.truncf %61 : vector<16x96xf32> to vector<16x96xbf16>
    %cst_27 = arith.constant dense<0.000000e+00> : vector<16x32xf32>
    %65 = tpu.matmul %64, %62, %cst_27 {dimension_numbers = #tpu.dot_dimension_numbers<[1], [0], [0], [1], [0, 0, 1, 1], [], []>} : vector<16x96xbf16>, vector<96x32xbf16>, vector<16x32xf32> -> vector<16x32xf32>
    %66 = vector.broadcast %63 : vector<1x32xf32> to vector<16x32xf32>
    %67 = arith.addf %65, %66 : vector<16x32xf32>
    %cst_28 = arith.constant 5.000000e-01 : f32
    %68 = vector.broadcast %cst_28 : f32 to vector<16x32xf32>
    %69 = arith.mulf %68, %67 : vector<16x32xf32>
    %cst_29 = arith.constant 4.471500e-02 : f32
    %70 = vector.broadcast %cst_29 : f32 to vector<16x32xf32>
    %71 = arith.mulf %70, %67 : vector<16x32xf32>
    %72 = arith.mulf %71, %67 : vector<16x32xf32>
    %73 = arith.mulf %72, %67 : vector<16x32xf32>
    %74 = arith.addf %67, %73 : vector<16x32xf32>
    %cst_30 = arith.constant 0.797884583 : f32
    %75 = vector.broadcast %cst_30 : f32 to vector<16x32xf32>
    %76 = arith.mulf %75, %74 : vector<16x32xf32>
    %77 = math.tanh %76 : vector<16x32xf32>
    %cst_31 = arith.constant 1.000000e+00 : f32
    %78 = vector.broadcast %cst_31 : f32 to vector<16x32xf32>
    %79 = arith.addf %78, %77 : vector<16x32xf32>
    %80 = arith.mulf %69, %79 : vector<16x32xf32>
    %81 = tpu.iota {dimensions = array<i32: 1>} : vector<8x8xi32>
    %82 = tpu.iota {dimensions = array<i32: 0>} : vector<8x8xi32>
    %c2_i32 = arith.constant 2 : i32
    %83 = arith.muli %arg0, %c2_i32 : i32
    %c0_i32_32 = arith.constant 0 : i32
    %84 = arith.addi %83, %c0_i32_32 : i32
    %85 = arith.index_cast %84 : i32 to index
    %86 = memref.load %arg1[%85] : memref<2xi32, #tpu.memory_space<smem>>
    %87 = vector.broadcast %86 : i32 to vector<8x8xi32>
    %88 = arith.cmpi slt, %81, %87 : vector<8x8xi32>
    %89 = arith.cmpi sle, %81, %82 : vector<8x8xi32>
    %90 = arith.andi %88, %89 : vector<8x8xi1>
    %cst_33 = arith.constant 0.000000e+00 : f32
    %cst_34 = arith.constant -1.000000e+09 : f32
    %91 = vector.broadcast %cst_33 : f32 to vector<8x8xf32>
    %92 = vector.broadcast %cst_34 : f32 to vector<8x8xf32>
    %93 = arith.select %90, %91, %92 : vector<8x8xi1>, vector<8x8xf32>
    %c2_i32_35 = arith.constant 2 : i32
    %94 = arith.muli %arg0, %c2_i32_35 : i32
    %c1_i32_36 = arith.constant 1 : i32
    %95 = arith.addi %94, %c1_i32_36 : i32
    %96 = arith.index_cast %95 : i32 to index
    %97 = memref.load %arg1[%96] : memref<2xi32, #tpu.memory_space<smem>>
    %98 = vector.broadcast %97 : i32 to vector<8x8xi32>
    %99 = arith.cmpi slt, %81, %98 : vector<8x8xi32>
    %100 = arith.cmpi sle, %81, %82 : vector<8x8xi32>
    %101 = arith.andi %99, %100 : vector<8x8xi1>
    %cst_37 = arith.constant 0.000000e+00 : f32
    %cst_38 = arith.constant -1.000000e+09 : f32
    %102 = vector.broadcast %cst_37 : f32 to vector<8x8xf32>
    %103 = vector.broadcast %cst_38 : f32 to vector<8x8xf32>
    %104 = arith.select %101, %102, %103 : vector<8x8xi1>, vector<8x8xf32>
    %c0_39 = arith.constant 0 : index
    %c0_40 = arith.constant 0 : index
    %c0_41 = arith.constant 0 : index
    %105 = vector.load %arg7[%c0_39, %c0_40, %c0_41] : memref<2x1x32xf32, #tpu.memory_space<vmem>>, vector<1x1x32xf32>
    %106 = vector.shape_cast %105 : vector<1x1x32xf32> to vector<1x32xf32>
    %c0_42 = arith.constant 0 : index
    %c0_43 = arith.constant 0 : index
    %c0_44 = arith.constant 0 : index
    %107 = vector.load %arg8[%c0_42, %c0_43, %c0_44] : memref<2x1x32xf32, #tpu.memory_space<vmem>>, vector<1x1x32xf32>
    %108 = vector.shape_cast %107 : vector<1x1x32xf32> to vector<1x32xf32>
    %cst_45 = arith.constant dense<0.000000e+00> : vector<16xf32>
    %109 = vector.multi_reduction <add>, %80, %cst_45 [1] : vector<16x32xf32> to vector<16xf32>
    %110 = vector.shape_cast %109 : vector<16xf32> to vector<16x1xf32>
    %cst_46 = arith.constant 3.200000e+01 : f32
    %111 = vector.broadcast %cst_46 : f32 to vector<16x1xf32>
    %112 = arith.divf %110, %111 : vector<16x1xf32>
    %113 = vector.broadcast %112 : vector<16x1xf32> to vector<16x32xf32>
    %114 = arith.subf %80, %113 : vector<16x32xf32>
    %115 = arith.mulf %114, %114 : vector<16x32xf32>
    %cst_47 = arith.constant dense<0.000000e+00> : vector<16xf32>
    %116 = vector.multi_reduction <add>, %115, %cst_47 [1] : vector<16x32xf32> to vector<16xf32>
    %117 = vector.shape_cast %116 : vector<16xf32> to vector<16x1xf32>
    %cst_48 = arith.constant 3.200000e+01 : f32
    %118 = vector.broadcast %cst_48 : f32 to vector<16x1xf32>
    %119 = arith.divf %117, %118 : vector<16x1xf32>
    %120 = vector.broadcast %112 : vector<16x1xf32> to vector<16x32xf32>
    %121 = arith.subf %80, %120 : vector<16x32xf32>
    %cst_49 = arith.constant 9.99999974E-6 : f32
    %122 = vector.broadcast %cst_49 : f32 to vector<16x1xf32>
    %123 = arith.addf %119, %122 : vector<16x1xf32>
    %124 = math.rsqrt %123 : vector<16x1xf32>
    %125 = vector.broadcast %124 : vector<16x1xf32> to vector<16x32xf32>
    %126 = arith.mulf %121, %125 : vector<16x32xf32>
    %127 = vector.broadcast %106 : vector<1x32xf32> to vector<16x32xf32>
    %128 = arith.mulf %126, %127 : vector<16x32xf32>
    %129 = vector.broadcast %108 : vector<1x32xf32> to vector<16x32xf32>
    %130 = arith.addf %128, %129 : vector<16x32xf32>
    %c0_50 = arith.constant 0 : index
    %c0_51 = arith.constant 0 : index
    %c0_52 = arith.constant 0 : index
    %131 = vector.load %arg9[%c0_50, %c0_51, %c0_52] : memref<2x32x96xbf16, #tpu.memory_space<vmem>>, vector<1x32x96xbf16>
    %132 = vector.shape_cast %131 : vector<1x32x96xbf16> to vector<32x96xbf16>
    %c0_53 = arith.constant 0 : index
    %c0_54 = arith.constant 0 : index
    %c0_55 = arith.constant 0 : index
    %133 = vector.load %arg10[%c0_53, %c0_54, %c0_55] : memref<2x1x96xf32, #tpu.memory_space<vmem>>, vector<1x1x96xf32>
    %134 = vector.shape_cast %133 : vector<1x1x96xf32> to vector<1x96xf32>
    %135 = arith.truncf %130 : vector<16x32xf32> to vector<16x32xbf16>
    %cst_56 = arith.constant dense<0.000000e+00> : vector<16x96xf32>
    %136 = tpu.matmul %135, %132, %cst_56 {dimension_numbers = #tpu.dot_dimension_numbers<[1], [0], [0], [1], [0, 0, 1, 1], [], []>} : vector<16x32xbf16>, vector<32x96xbf16>, vector<16x96xf32> -> vector<16x96xf32>
    %137 = vector.broadcast %134 : vector<1x96xf32> to vector<16x96xf32>
    %138 = arith.addf %136, %137 : vector<16x96xf32>
    %139 = vector.extract_strided_slice %138 {offsets = [0, 0], sizes = [8, 96], strides = [1, 1]} : vector<16x96xf32> to vector<8x96xf32>
    %140 = vector.extract_strided_slice %139 {offsets = [0, 0], sizes = [8, 8], strides = [1, 1]} : vector<8x96xf32> to vector<8x8xf32>
    %141 = vector.extract_strided_slice %139 {offsets = [0, 8], sizes = [8, 8], strides = [1, 1]} : vector<8x96xf32> to vector<8x8xf32>
    %142 = vector.extract_strided_slice %139 {offsets = [0, 16], sizes = [8, 8], strides = [1, 1]} : vector<8x96xf32> to vector<8x8xf32>
    %143 = vector.extract_strided_slice %139 {offsets = [0, 24], sizes = [8, 8], strides = [1, 1]} : vector<8x96xf32> to vector<8x8xf32>
    %144 = vector.shape_cast %140 : vector<8x8xf32> to vector<1x8x8xf32>
    %145 = vector.shape_cast %141 : vector<8x8xf32> to vector<1x8x8xf32>
    %146 = vector.shape_cast %142 : vector<8x8xf32> to vector<1x8x8xf32>
    %147 = vector.shape_cast %143 : vector<8x8xf32> to vector<1x8x8xf32>
    %148 = tpu.concatenate %144, %145, %146, %147 in 0 : vector<1x8x8xf32>, vector<1x8x8xf32>, vector<1x8x8xf32>, vector<1x8x8xf32> -> vector<4x8x8xf32>
    %149 = arith.truncf %148 : vector<4x8x8xf32> to vector<4x8x8xbf16>
    %150 = vector.extract_strided_slice %139 {offsets = [0, 32], sizes = [8, 8], strides = [1, 1]} : vector<8x96xf32> to vector<8x8xf32>
    %151 = vector.extract_strided_slice %139 {offsets = [0, 40], sizes = [8, 8], strides = [1, 1]} : vector<8x96xf32> to vector<8x8xf32>
    %152 = vector.extract_strided_slice %139 {offsets = [0, 48], sizes = [8, 8], strides = [1, 1]} : vector<8x96xf32> to vector<8x8xf32>
    %153 = vector.extract_strided_slice %139 {offsets = [0, 56], sizes = [8, 8], strides = [1, 1]} : vector<8x96xf32> to vector<8x8xf32>
    %154 = vector.shape_cast %150 : vector<8x8xf32> to vector<1x8x8xf32>
    %155 = vector.shape_cast %151 : vector<8x8xf32> to vector<1x8x8xf32>
    %156 = vector.shape_cast %152 : vector<8x8xf32> to vector<1x8x8xf32>
    %157 = vector.shape_cast %153 : vector<8x8xf32> to vector<1x8x8xf32>
    %158 = tpu.concatenate %154, %155, %156, %157 in 0 : vector<1x8x8xf32>, vector<1x8x8xf32>, vector<1x8x8xf32>, vector<1x8x8xf32> -> vector<4x8x8xf32>
    %159 = arith.truncf %158 : vector<4x8x8xf32> to vector<4x8x8xbf16>
    %160 = vector.extract_strided_slice %139 {offsets = [0, 64], sizes = [8, 8], strides = [1, 1]} : vector<8x96xf32> to vector<8x8xf32>
    %161 = vector.extract_strided_slice %139 {offsets = [0, 72], sizes = [8, 8], strides = [1, 1]} : vector<8x96xf32> to vector<8x8xf32>
    %162 = vector.extract_strided_slice %139 {offsets = [0, 80], sizes = [8, 8], strides = [1, 1]} : vector<8x96xf32> to vector<8x8xf32>
    %163 = vector.extract_strided_slice %139 {offsets = [0, 88], sizes = [8, 8], strides = [1, 1]} : vector<8x96xf32> to vector<8x8xf32>
    %164 = vector.shape_cast %160 : vector<8x8xf32> to vector<1x8x8xf32>
    %165 = vector.shape_cast %161 : vector<8x8xf32> to vector<1x8x8xf32>
    %166 = vector.shape_cast %162 : vector<8x8xf32> to vector<1x8x8xf32>
    %167 = vector.shape_cast %163 : vector<8x8xf32> to vector<1x8x8xf32>
    %168 = tpu.concatenate %164, %165, %166, %167 in 0 : vector<1x8x8xf32>, vector<1x8x8xf32>, vector<1x8x8xf32>, vector<1x8x8xf32> -> vector<4x8x8xf32>
    %169 = arith.truncf %168 : vector<4x8x8xf32> to vector<4x8x8xbf16>
    "tpu.trace_start"() <{level = 10 : i32, message = "hqd,hkd->hqk"}> : () -> ()
    %cst_57 = arith.constant dense<0.000000e+00> : vector<4x8x8xf32>
    %170 = tpu.matmul %149, %159, %cst_57 {dimension_numbers = #tpu.dot_dimension_numbers<[2], [2], [1], [1], [0, 0, 0, 1, 1, 1], [0], [0]>} : vector<4x8x8xbf16>, vector<4x8x8xbf16>, vector<4x8x8xf32> -> vector<4x8x8xf32>
    "tpu.trace_stop"() : () -> ()
    %cst_58 = arith.constant 0.353553385 : f32
    %171 = vector.broadcast %cst_58 : f32 to vector<4x8x8xf32>
    %172 = arith.mulf %170, %171 : vector<4x8x8xf32>
    %173 = vector.shape_cast %93 : vector<8x8xf32> to vector<1x8x8xf32>
    %174 = vector.broadcast %173 : vector<1x8x8xf32> to vector<4x8x8xf32>
    %175 = arith.addf %172, %174 : vector<4x8x8xf32>
    %cst_59 = arith.constant dense<0xFF800000> : vector<4x8xf32>
    %176 = vector.multi_reduction <maximumf>, %175, %cst_59 [2] : vector<4x8x8xf32> to vector<4x8xf32>
    %177 = vector.shape_cast %176 : vector<4x8xf32> to vector<4x8x1xf32>
    %178 = vector.broadcast %177 : vector<4x8x1xf32> to vector<4x8x8xf32>
    %179 = arith.subf %175, %178 : vector<4x8x8xf32>
    %180 = math.exp %179 : vector<4x8x8xf32>
    %cst_60 = arith.constant dense<0.000000e+00> : vector<4x8xf32>
    %181 = vector.multi_reduction <add>, %180, %cst_60 [2] : vector<4x8x8xf32> to vector<4x8xf32>
    %182 = vector.shape_cast %181 : vector<4x8xf32> to vector<4x8x1xf32>
    %183 = tpu.reciprocal %182 {approx = true} : vector<4x8x1xf32> -> vector<4x8x1xf32>
    %184 = vector.broadcast %183 : vector<4x8x1xf32> to vector<4x8x8xf32>
    %185 = arith.mulf %180, %184 : vector<4x8x8xf32>
    %186 = arith.truncf %185 : vector<4x8x8xf32> to vector<4x8x8xbf16>
    "tpu.trace_start"() <{level = 10 : i32, message = "hqk,hkd->hqd"}> : () -> ()
    %cst_61 = arith.constant dense<0.000000e+00> : vector<4x8x8xf32>
    %187 = tpu.matmul %186, %169, %cst_61 {dimension_numbers = #tpu.dot_dimension_numbers<[2], [1], [1], [2], [0, 0, 0, 1, 1, 2], [0], [0]>} : vector<4x8x8xbf16>, vector<4x8x8xbf16>, vector<4x8x8xf32> -> vector<4x8x8xf32>
    "tpu.trace_stop"() : () -> ()
    %188 = vector.extract_strided_slice %187 {offsets = [0, 0, 0], sizes = [1, 8, 8], strides = [1, 1, 1]} : vector<4x8x8xf32> to vector<1x8x8xf32>
    %189 = vector.shape_cast %188 : vector<1x8x8xf32> to vector<8x8xf32>
    %190 = vector.extract_strided_slice %187 {offsets = [1, 0, 0], sizes = [1, 8, 8], strides = [1, 1, 1]} : vector<4x8x8xf32> to vector<1x8x8xf32>
    %191 = vector.shape_cast %190 : vector<1x8x8xf32> to vector<8x8xf32>
    %192 = vector.extract_strided_slice %187 {offsets = [2, 0, 0], sizes = [1, 8, 8], strides = [1, 1, 1]} : vector<4x8x8xf32> to vector<1x8x8xf32>
    %193 = vector.shape_cast %192 : vector<1x8x8xf32> to vector<8x8xf32>
    %194 = vector.extract_strided_slice %187 {offsets = [3, 0, 0], sizes = [1, 8, 8], strides = [1, 1, 1]} : vector<4x8x8xf32> to vector<1x8x8xf32>
    %195 = vector.shape_cast %194 : vector<1x8x8xf32> to vector<8x8xf32>
    %196 = tpu.concatenate %189, %191, %193, %195 in 1 : vector<8x8xf32>, vector<8x8xf32>, vector<8x8xf32>, vector<8x8xf32> -> vector<8x32xf32>
    %197 = vector.extract_strided_slice %138 {offsets = [8, 0], sizes = [8, 96], strides = [1, 1]} : vector<16x96xf32> to vector<8x96xf32>
    %198 = vector.extract_strided_slice %197 {offsets = [0, 0], sizes = [8, 8], strides = [1, 1]} : vector<8x96xf32> to vector<8x8xf32>
    %199 = vector.extract_strided_slice %197 {offsets = [0, 8], sizes = [8, 8], strides = [1, 1]} : vector<8x96xf32> to vector<8x8xf32>
    %200 = vector.extract_strided_slice %197 {offsets = [0, 16], sizes = [8, 8], strides = [1, 1]} : vector<8x96xf32> to vector<8x8xf32>
    %201 = vector.extract_strided_slice %197 {offsets = [0, 24], sizes = [8, 8], strides = [1, 1]} : vector<8x96xf32> to vector<8x8xf32>
    %202 = vector.shape_cast %198 : vector<8x8xf32> to vector<1x8x8xf32>
    %203 = vector.shape_cast %199 : vector<8x8xf32> to vector<1x8x8xf32>
    %204 = vector.shape_cast %200 : vector<8x8xf32> to vector<1x8x8xf32>
    %205 = vector.shape_cast %201 : vector<8x8xf32> to vector<1x8x8xf32>
    %206 = tpu.concatenate %202, %203, %204, %205 in 0 : vector<1x8x8xf32>, vector<1x8x8xf32>, vector<1x8x8xf32>, vector<1x8x8xf32> -> vector<4x8x8xf32>
    %207 = arith.truncf %206 : vector<4x8x8xf32> to vector<4x8x8xbf16>
    %208 = vector.extract_strided_slice %197 {offsets = [0, 32], sizes = [8, 8], strides = [1, 1]} : vector<8x96xf32> to vector<8x8xf32>
    %209 = vector.extract_strided_slice %197 {offsets = [0, 40], sizes = [8, 8], strides = [1, 1]} : vector<8x96xf32> to vector<8x8xf32>
    %210 = vector.extract_strided_slice %197 {offsets = [0, 48], sizes = [8, 8], strides = [1, 1]} : vector<8x96xf32> to vector<8x8xf32>
    %211 = vector.extract_strided_slice %197 {offsets = [0, 56], sizes = [8, 8], strides = [1, 1]} : vector<8x96xf32> to vector<8x8xf32>
    %212 = vector.shape_cast %208 : vector<8x8xf32> to vector<1x8x8xf32>
    %213 = vector.shape_cast %209 : vector<8x8xf32> to vector<1x8x8xf32>
    %214 = vector.shape_cast %210 : vector<8x8xf32> to vector<1x8x8xf32>
    %215 = vector.shape_cast %211 : vector<8x8xf32> to vector<1x8x8xf32>
    %216 = tpu.concatenate %212, %213, %214, %215 in 0 : vector<1x8x8xf32>, vector<1x8x8xf32>, vector<1x8x8xf32>, vector<1x8x8xf32> -> vector<4x8x8xf32>
    %217 = arith.truncf %216 : vector<4x8x8xf32> to vector<4x8x8xbf16>
    %218 = vector.extract_strided_slice %197 {offsets = [0, 64], sizes = [8, 8], strides = [1, 1]} : vector<8x96xf32> to vector<8x8xf32>
    %219 = vector.extract_strided_slice %197 {offsets = [0, 72], sizes = [8, 8], strides = [1, 1]} : vector<8x96xf32> to vector<8x8xf32>
    %220 = vector.extract_strided_slice %197 {offsets = [0, 80], sizes = [8, 8], strides = [1, 1]} : vector<8x96xf32> to vector<8x8xf32>
    %221 = vector.extract_strided_slice %197 {offsets = [0, 88], sizes = [8, 8], strides = [1, 1]} : vector<8x96xf32> to vector<8x8xf32>
    %222 = vector.shape_cast %218 : vector<8x8xf32> to vector<1x8x8xf32>
    %223 = vector.shape_cast %219 : vector<8x8xf32> to vector<1x8x8xf32>
    %224 = vector.shape_cast %220 : vector<8x8xf32> to vector<1x8x8xf32>
    %225 = vector.shape_cast %221 : vector<8x8xf32> to vector<1x8x8xf32>
    %226 = tpu.concatenate %222, %223, %224, %225 in 0 : vector<1x8x8xf32>, vector<1x8x8xf32>, vector<1x8x8xf32>, vector<1x8x8xf32> -> vector<4x8x8xf32>
    %227 = arith.truncf %226 : vector<4x8x8xf32> to vector<4x8x8xbf16>
    "tpu.trace_start"() <{level = 10 : i32, message = "hqd,hkd->hqk"}> : () -> ()
    %cst_62 = arith.constant dense<0.000000e+00> : vector<4x8x8xf32>
    %228 = tpu.matmul %207, %217, %cst_62 {dimension_numbers = #tpu.dot_dimension_numbers<[2], [2], [1], [1], [0, 0, 0, 1, 1, 1], [0], [0]>} : vector<4x8x8xbf16>, vector<4x8x8xbf16>, vector<4x8x8xf32> -> vector<4x8x8xf32>
    "tpu.trace_stop"() : () -> ()
    %cst_63 = arith.constant 0.353553385 : f32
    %229 = vector.broadcast %cst_63 : f32 to vector<4x8x8xf32>
    %230 = arith.mulf %228, %229 : vector<4x8x8xf32>
    %231 = vector.shape_cast %104 : vector<8x8xf32> to vector<1x8x8xf32>
    %232 = vector.broadcast %231 : vector<1x8x8xf32> to vector<4x8x8xf32>
    %233 = arith.addf %230, %232 : vector<4x8x8xf32>
    %cst_64 = arith.constant dense<0xFF800000> : vector<4x8xf32>
    %234 = vector.multi_reduction <maximumf>, %233, %cst_64 [2] : vector<4x8x8xf32> to vector<4x8xf32>
    %235 = vector.shape_cast %234 : vector<4x8xf32> to vector<4x8x1xf32>
    %236 = vector.broadcast %235 : vector<4x8x1xf32> to vector<4x8x8xf32>
    %237 = arith.subf %233, %236 : vector<4x8x8xf32>
    %238 = math.exp %237 : vector<4x8x8xf32>
    %cst_65 = arith.constant dense<0.000000e+00> : vector<4x8xf32>
    %239 = vector.multi_reduction <add>, %238, %cst_65 [2] : vector<4x8x8xf32> to vector<4x8xf32>
    %240 = vector.shape_cast %239 : vector<4x8xf32> to vector<4x8x1xf32>
    %241 = tpu.reciprocal %240 {approx = true} : vector<4x8x1xf32> -> vector<4x8x1xf32>
    %242 = vector.broadcast %241 : vector<4x8x1xf32> to vector<4x8x8xf32>
    %243 = arith.mulf %238, %242 : vector<4x8x8xf32>
    %244 = arith.truncf %243 : vector<4x8x8xf32> to vector<4x8x8xbf16>
    "tpu.trace_start"() <{level = 10 : i32, message = "hqk,hkd->hqd"}> : () -> ()
    %cst_66 = arith.constant dense<0.000000e+00> : vector<4x8x8xf32>
    %245 = tpu.matmul %244, %227, %cst_66 {dimension_numbers = #tpu.dot_dimension_numbers<[2], [1], [1], [2], [0, 0, 0, 1, 1, 2], [0], [0]>} : vector<4x8x8xbf16>, vector<4x8x8xbf16>, vector<4x8x8xf32> -> vector<4x8x8xf32>
    "tpu.trace_stop"() : () -> ()
    %246 = vector.extract_strided_slice %245 {offsets = [0, 0, 0], sizes = [1, 8, 8], strides = [1, 1, 1]} : vector<4x8x8xf32> to vector<1x8x8xf32>
    %247 = vector.shape_cast %246 : vector<1x8x8xf32> to vector<8x8xf32>
    %248 = vector.extract_strided_slice %245 {offsets = [1, 0, 0], sizes = [1, 8, 8], strides = [1, 1, 1]} : vector<4x8x8xf32> to vector<1x8x8xf32>
    %249 = vector.shape_cast %248 : vector<1x8x8xf32> to vector<8x8xf32>
    %250 = vector.extract_strided_slice %245 {offsets = [2, 0, 0], sizes = [1, 8, 8], strides = [1, 1, 1]} : vector<4x8x8xf32> to vector<1x8x8xf32>
    %251 = vector.shape_cast %250 : vector<1x8x8xf32> to vector<8x8xf32>
    %252 = vector.extract_strided_slice %245 {offsets = [3, 0, 0], sizes = [1, 8, 8], strides = [1, 1, 1]} : vector<4x8x8xf32> to vector<1x8x8xf32>
    %253 = vector.shape_cast %252 : vector<1x8x8xf32> to vector<8x8xf32>
    %254 = tpu.concatenate %247, %249, %251, %253 in 1 : vector<8x8xf32>, vector<8x8xf32>, vector<8x8xf32>, vector<8x8xf32> -> vector<8x32xf32>
    %255 = tpu.concatenate %196, %254 in 0 : vector<8x32xf32>, vector<8x32xf32> -> vector<16x32xf32>
    %c0_67 = arith.constant 0 : index
    %c0_68 = arith.constant 0 : index
    %c0_69 = arith.constant 0 : index
    %256 = vector.load %arg11[%c0_67, %c0_68, %c0_69] : memref<2x32x32xbf16, #tpu.memory_space<vmem>>, vector<1x32x32xbf16>
    %257 = vector.shape_cast %256 : vector<1x32x32xbf16> to vector<32x32xbf16>
    %c0_70 = arith.constant 0 : index
    %c0_71 = arith.constant 0 : index
    %c0_72 = arith.constant 0 : index
    %258 = vector.load %arg12[%c0_70, %c0_71, %c0_72] : memref<2x1x32xf32, #tpu.memory_space<vmem>>, vector<1x1x32xf32>
    %259 = vector.shape_cast %258 : vector<1x1x32xf32> to vector<1x32xf32>
    %260 = arith.truncf %255 : vector<16x32xf32> to vector<16x32xbf16>
    %cst_73 = arith.constant dense<0.000000e+00> : vector<16x32xf32>
    %261 = tpu.matmul %260, %257, %cst_73 {dimension_numbers = #tpu.dot_dimension_numbers<[1], [0], [0], [1], [0, 0, 1, 1], [], []>} : vector<16x32xbf16>, vector<32x32xbf16>, vector<16x32xf32> -> vector<16x32xf32>
    %262 = vector.broadcast %259 : vector<1x32xf32> to vector<16x32xf32>
    %263 = arith.addf %261, %262 : vector<16x32xf32>
    %264 = arith.addf %80, %263 : vector<16x32xf32>
    %c0_74 = arith.constant 0 : index
    %c0_75 = arith.constant 0 : index
    %c0_76 = arith.constant 0 : index
    %265 = vector.load %arg13[%c0_74, %c0_75, %c0_76] : memref<2x1x32xf32, #tpu.memory_space<vmem>>, vector<1x1x32xf32>
    %266 = vector.shape_cast %265 : vector<1x1x32xf32> to vector<1x32xf32>
    %c0_77 = arith.constant 0 : index
    %c0_78 = arith.constant 0 : index
    %c0_79 = arith.constant 0 : index
    %267 = vector.load %arg14[%c0_77, %c0_78, %c0_79] : memref<2x1x32xf32, #tpu.memory_space<vmem>>, vector<1x1x32xf32>
    %268 = vector.shape_cast %267 : vector<1x1x32xf32> to vector<1x32xf32>
    %cst_80 = arith.constant dense<0.000000e+00> : vector<16xf32>
    %269 = vector.multi_reduction <add>, %264, %cst_80 [1] : vector<16x32xf32> to vector<16xf32>
    %270 = vector.shape_cast %269 : vector<16xf32> to vector<16x1xf32>
    %cst_81 = arith.constant 3.200000e+01 : f32
    %271 = vector.broadcast %cst_81 : f32 to vector<16x1xf32>
    %272 = arith.divf %270, %271 : vector<16x1xf32>
    %273 = vector.broadcast %272 : vector<16x1xf32> to vector<16x32xf32>
    %274 = arith.subf %264, %273 : vector<16x32xf32>
    %275 = arith.mulf %274, %274 : vector<16x32xf32>
    %cst_82 = arith.constant dense<0.000000e+00> : vector<16xf32>
    %276 = vector.multi_reduction <add>, %275, %cst_82 [1] : vector<16x32xf32> to vector<16xf32>
    %277 = vector.shape_cast %276 : vector<16xf32> to vector<16x1xf32>
    %cst_83 = arith.constant 3.200000e+01 : f32
    %278 = vector.broadcast %cst_83 : f32 to vector<16x1xf32>
    %279 = arith.divf %277, %278 : vector<16x1xf32>
    %280 = vector.broadcast %272 : vector<16x1xf32> to vector<16x32xf32>
    %281 = arith.subf %264, %280 : vector<16x32xf32>
    %cst_84 = arith.constant 9.99999974E-6 : f32
    %282 = vector.broadcast %cst_84 : f32 to vector<16x1xf32>
    %283 = arith.addf %279, %282 : vector<16x1xf32>
    %284 = math.rsqrt %283 : vector<16x1xf32>
    %285 = vector.broadcast %284 : vector<16x1xf32> to vector<16x32xf32>
    %286 = arith.mulf %281, %285 : vector<16x32xf32>
    %287 = vector.broadcast %266 : vector<1x32xf32> to vector<16x32xf32>
    %288 = arith.mulf %286, %287 : vector<16x32xf32>
    %289 = vector.broadcast %268 : vector<1x32xf32> to vector<16x32xf32>
    %290 = arith.addf %288, %289 : vector<16x32xf32>
    %c0_85 = arith.constant 0 : index
    %c0_86 = arith.constant 0 : index
    %c0_87 = arith.constant 0 : index
    %291 = vector.load %arg15[%c0_85, %c0_86, %c0_87] : memref<2x32x64xbf16, #tpu.memory_space<vmem>>, vector<1x32x64xbf16>
    %292 = vector.shape_cast %291 : vector<1x32x64xbf16> to vector<32x64xbf16>
    %c0_88 = arith.constant 0 : index
    %c0_89 = arith.constant 0 : index
    %c0_90 = arith.constant 0 : index
    %293 = vector.load %arg16[%c0_88, %c0_89, %c0_90] : memref<2x1x64xf32, #tpu.memory_space<vmem>>, vector<1x1x64xf32>
    %294 = vector.shape_cast %293 : vector<1x1x64xf32> to vector<1x64xf32>
    %295 = arith.truncf %290 : vector<16x32xf32> to vector<16x32xbf16>
    %cst_91 = arith.constant dense<0.000000e+00> : vector<16x64xf32>
    %296 = tpu.matmul %295, %292, %cst_91 {dimension_numbers = #tpu.dot_dimension_numbers<[1], [0], [0], [1], [0, 0, 1, 1], [], []>} : vector<16x32xbf16>, vector<32x64xbf16>, vector<16x64xf32> -> vector<16x64xf32>
    %297 = vector.broadcast %294 : vector<1x64xf32> to vector<16x64xf32>
    %298 = arith.addf %296, %297 : vector<16x64xf32>
    %cst_92 = arith.constant 5.000000e-01 : f32
    %299 = vector.broadcast %cst_92 : f32 to vector<16x64xf32>
    %300 = arith.mulf %299, %298 : vector<16x64xf32>
    %cst_93 = arith.constant 4.471500e-02 : f32
    %301 = vector.broadcast %cst_93 : f32 to vector<16x64xf32>
    %302 = arith.mulf %301, %298 : vector<16x64xf32>
    %303 = arith.mulf %302, %298 : vector<16x64xf32>
    %304 = arith.mulf %303, %298 : vector<16x64xf32>
    %305 = arith.addf %298, %304 : vector<16x64xf32>
    %cst_94 = arith.constant 0.797884583 : f32
    %306 = vector.broadcast %cst_94 : f32 to vector<16x64xf32>
    %307 = arith.mulf %306, %305 : vector<16x64xf32>
    %308 = math.tanh %307 : vector<16x64xf32>
    %cst_95 = arith.constant 1.000000e+00 : f32
    %309 = vector.broadcast %cst_95 : f32 to vector<16x64xf32>
    %310 = arith.addf %309, %308 : vector<16x64xf32>
    %311 = arith.mulf %300, %310 : vector<16x64xf32>
    %c0_96 = arith.constant 0 : index
    %c0_97 = arith.constant 0 : index
    %c0_98 = arith.constant 0 : index
    %312 = vector.load %arg17[%c0_96, %c0_97, %c0_98] : memref<2x64x32xbf16, #tpu.memory_space<vmem>>, vector<1x64x32xbf16>
    %313 = vector.shape_cast %312 : vector<1x64x32xbf16> to vector<64x32xbf16>
    %c0_99 = arith.constant 0 : index
    %c0_100 = arith.constant 0 : index
    %c0_101 = arith.constant 0 : index
    %314 = vector.load %arg18[%c0_99, %c0_100, %c0_101] : memref<2x1x32xf32, #tpu.memory_space<vmem>>, vector<1x1x32xf32>
    %315 = vector.shape_cast %314 : vector<1x1x32xf32> to vector<1x32xf32>
    %316 = arith.truncf %311 : vector<16x64xf32> to vector<16x64xbf16>
    %cst_102 = arith.constant dense<0.000000e+00> : vector<16x32xf32>
    %317 = tpu.matmul %316, %313, %cst_102 {dimension_numbers = #tpu.dot_dimension_numbers<[1], [0], [0], [1], [0, 0, 1, 1], [], []>} : vector<16x64xbf16>, vector<64x32xbf16>, vector<16x32xf32> -> vector<16x32xf32>
    %318 = vector.broadcast %315 : vector<1x32xf32> to vector<16x32xf32>
    %319 = arith.addf %317, %318 : vector<16x32xf32>
    %320 = arith.addf %264, %319 : vector<16x32xf32>
    %c1 = arith.constant 1 : index
    %c0_103 = arith.constant 0 : index
    %c0_104 = arith.constant 0 : index
    %321 = vector.load %arg7[%c1, %c0_103, %c0_104] : memref<2x1x32xf32, #tpu.memory_space<vmem>>, vector<1x1x32xf32>
    %322 = vector.shape_cast %321 : vector<1x1x32xf32> to vector<1x32xf32>
    %c1_105 = arith.constant 1 : index
    %c0_106 = arith.constant 0 : index
    %c0_107 = arith.constant 0 : index
    %323 = vector.load %arg8[%c1_105, %c0_106, %c0_107] : memref<2x1x32xf32, #tpu.memory_space<vmem>>, vector<1x1x32xf32>
    %324 = vector.shape_cast %323 : vector<1x1x32xf32> to vector<1x32xf32>
    %cst_108 = arith.constant dense<0.000000e+00> : vector<16xf32>
    %325 = vector.multi_reduction <add>, %320, %cst_108 [1] : vector<16x32xf32> to vector<16xf32>
    %326 = vector.shape_cast %325 : vector<16xf32> to vector<16x1xf32>
    %cst_109 = arith.constant 3.200000e+01 : f32
    %327 = vector.broadcast %cst_109 : f32 to vector<16x1xf32>
    %328 = arith.divf %326, %327 : vector<16x1xf32>
    %329 = vector.broadcast %328 : vector<16x1xf32> to vector<16x32xf32>
    %330 = arith.subf %320, %329 : vector<16x32xf32>
    %331 = arith.mulf %330, %330 : vector<16x32xf32>
    %cst_110 = arith.constant dense<0.000000e+00> : vector<16xf32>
    %332 = vector.multi_reduction <add>, %331, %cst_110 [1] : vector<16x32xf32> to vector<16xf32>
    %333 = vector.shape_cast %332 : vector<16xf32> to vector<16x1xf32>
    %cst_111 = arith.constant 3.200000e+01 : f32
    %334 = vector.broadcast %cst_111 : f32 to vector<16x1xf32>
    %335 = arith.divf %333, %334 : vector<16x1xf32>
    %336 = vector.broadcast %328 : vector<16x1xf32> to vector<16x32xf32>
    %337 = arith.subf %320, %336 : vector<16x32xf32>
    %cst_112 = arith.constant 9.99999974E-6 : f32
    %338 = vector.broadcast %cst_112 : f32 to vector<16x1xf32>
    %339 = arith.addf %335, %338 : vector<16x1xf32>
    %340 = math.rsqrt %339 : vector<16x1xf32>
    %341 = vector.broadcast %340 : vector<16x1xf32> to vector<16x32xf32>
    %342 = arith.mulf %337, %341 : vector<16x32xf32>
    %343 = vector.broadcast %322 : vector<1x32xf32> to vector<16x32xf32>
    %344 = arith.mulf %342, %343 : vector<16x32xf32>
    %345 = vector.broadcast %324 : vector<1x32xf32> to vector<16x32xf32>
    %346 = arith.addf %344, %345 : vector<16x32xf32>
    %c1_113 = arith.constant 1 : index
    %c0_114 = arith.constant 0 : index
    %c0_115 = arith.constant 0 : index
    %347 = vector.load %arg9[%c1_113, %c0_114, %c0_115] : memref<2x32x96xbf16, #tpu.memory_space<vmem>>, vector<1x32x96xbf16>
    %348 = vector.shape_cast %347 : vector<1x32x96xbf16> to vector<32x96xbf16>
    %c1_116 = arith.constant 1 : index
    %c0_117 = arith.constant 0 : index
    %c0_118 = arith.constant 0 : index
    %349 = vector.load %arg10[%c1_116, %c0_117, %c0_118] : memref<2x1x96xf32, #tpu.memory_space<vmem>>, vector<1x1x96xf32>
    %350 = vector.shape_cast %349 : vector<1x1x96xf32> to vector<1x96xf32>
    %351 = arith.truncf %346 : vector<16x32xf32> to vector<16x32xbf16>
    %cst_119 = arith.constant dense<0.000000e+00> : vector<16x96xf32>
    %352 = tpu.matmul %351, %348, %cst_119 {dimension_numbers = #tpu.dot_dimension_numbers<[1], [0], [0], [1], [0, 0, 1, 1], [], []>} : vector<16x32xbf16>, vector<32x96xbf16>, vector<16x96xf32> -> vector<16x96xf32>
    %353 = vector.broadcast %350 : vector<1x96xf32> to vector<16x96xf32>
    %354 = arith.addf %352, %353 : vector<16x96xf32>
    %355 = vector.extract_strided_slice %354 {offsets = [0, 0], sizes = [8, 96], strides = [1, 1]} : vector<16x96xf32> to vector<8x96xf32>
    %356 = vector.extract_strided_slice %355 {offsets = [0, 0], sizes = [8, 8], strides = [1, 1]} : vector<8x96xf32> to vector<8x8xf32>
    %357 = vector.extract_strided_slice %355 {offsets = [0, 8], sizes = [8, 8], strides = [1, 1]} : vector<8x96xf32> to vector<8x8xf32>
    %358 = vector.extract_strided_slice %355 {offsets = [0, 16], sizes = [8, 8], strides = [1, 1]} : vector<8x96xf32> to vector<8x8xf32>
    %359 = vector.extract_strided_slice %355 {offsets = [0, 24], sizes = [8, 8], strides = [1, 1]} : vector<8x96xf32> to vector<8x8xf32>
    %360 = vector.shape_cast %356 : vector<8x8xf32> to vector<1x8x8xf32>
    %361 = vector.shape_cast %357 : vector<8x8xf32> to vector<1x8x8xf32>
    %362 = vector.shape_cast %358 : vector<8x8xf32> to vector<1x8x8xf32>
    %363 = vector.shape_cast %359 : vector<8x8xf32> to vector<1x8x8xf32>
    %364 = tpu.concatenate %360, %361, %362, %363 in 0 : vector<1x8x8xf32>, vector<1x8x8xf32>, vector<1x8x8xf32>, vector<1x8x8xf32> -> vector<4x8x8xf32>
    %365 = arith.truncf %364 : vector<4x8x8xf32> to vector<4x8x8xbf16>
    %366 = vector.extract_strided_slice %355 {offsets = [0, 32], sizes = [8, 8], strides = [1, 1]} : vector<8x96xf32> to vector<8x8xf32>
    %367 = vector.extract_strided_slice %355 {offsets = [0, 40], sizes = [8, 8], strides = [1, 1]} : vector<8x96xf32> to vector<8x8xf32>
    %368 = vector.extract_strided_slice %355 {offsets = [0, 48], sizes = [8, 8], strides = [1, 1]} : vector<8x96xf32> to vector<8x8xf32>
    %369 = vector.extract_strided_slice %355 {offsets = [0, 56], sizes = [8, 8], strides = [1, 1]} : vector<8x96xf32> to vector<8x8xf32>
    %370 = vector.shape_cast %366 : vector<8x8xf32> to vector<1x8x8xf32>
    %371 = vector.shape_cast %367 : vector<8x8xf32> to vector<1x8x8xf32>
    %372 = vector.shape_cast %368 : vector<8x8xf32> to vector<1x8x8xf32>
    %373 = vector.shape_cast %369 : vector<8x8xf32> to vector<1x8x8xf32>
    %374 = tpu.concatenate %370, %371, %372, %373 in 0 : vector<1x8x8xf32>, vector<1x8x8xf32>, vector<1x8x8xf32>, vector<1x8x8xf32> -> vector<4x8x8xf32>
    %375 = arith.truncf %374 : vector<4x8x8xf32> to vector<4x8x8xbf16>
    %376 = vector.extract_strided_slice %355 {offsets = [0, 64], sizes = [8, 8], strides = [1, 1]} : vector<8x96xf32> to vector<8x8xf32>
    %377 = vector.extract_strided_slice %355 {offsets = [0, 72], sizes = [8, 8], strides = [1, 1]} : vector<8x96xf32> to vector<8x8xf32>
    %378 = vector.extract_strided_slice %355 {offsets = [0, 80], sizes = [8, 8], strides = [1, 1]} : vector<8x96xf32> to vector<8x8xf32>
    %379 = vector.extract_strided_slice %355 {offsets = [0, 88], sizes = [8, 8], strides = [1, 1]} : vector<8x96xf32> to vector<8x8xf32>
    %380 = vector.shape_cast %376 : vector<8x8xf32> to vector<1x8x8xf32>
    %381 = vector.shape_cast %377 : vector<8x8xf32> to vector<1x8x8xf32>
    %382 = vector.shape_cast %378 : vector<8x8xf32> to vector<1x8x8xf32>
    %383 = vector.shape_cast %379 : vector<8x8xf32> to vector<1x8x8xf32>
    %384 = tpu.concatenate %380, %381, %382, %383 in 0 : vector<1x8x8xf32>, vector<1x8x8xf32>, vector<1x8x8xf32>, vector<1x8x8xf32> -> vector<4x8x8xf32>
    %385 = arith.truncf %384 : vector<4x8x8xf32> to vector<4x8x8xbf16>
    "tpu.trace_start"() <{level = 10 : i32, message = "hqd,hkd->hqk"}> : () -> ()
    %cst_120 = arith.constant dense<0.000000e+00> : vector<4x8x8xf32>
    %386 = tpu.matmul %365, %375, %cst_120 {dimension_numbers = #tpu.dot_dimension_numbers<[2], [2], [1], [1], [0, 0, 0, 1, 1, 1], [0], [0]>} : vector<4x8x8xbf16>, vector<4x8x8xbf16>, vector<4x8x8xf32> -> vector<4x8x8xf32>
    "tpu.trace_stop"() : () -> ()
    %cst_121 = arith.constant 0.353553385 : f32
    %387 = vector.broadcast %cst_121 : f32 to vector<4x8x8xf32>
    %388 = arith.mulf %386, %387 : vector<4x8x8xf32>
    %389 = vector.shape_cast %93 : vector<8x8xf32> to vector<1x8x8xf32>
    %390 = vector.broadcast %389 : vector<1x8x8xf32> to vector<4x8x8xf32>
    %391 = arith.addf %388, %390 : vector<4x8x8xf32>
    %cst_122 = arith.constant dense<0xFF800000> : vector<4x8xf32>
    %392 = vector.multi_reduction <maximumf>, %391, %cst_122 [2] : vector<4x8x8xf32> to vector<4x8xf32>
    %393 = vector.shape_cast %392 : vector<4x8xf32> to vector<4x8x1xf32>
    %394 = vector.broadcast %393 : vector<4x8x1xf32> to vector<4x8x8xf32>
    %395 = arith.subf %391, %394 : vector<4x8x8xf32>
    %396 = math.exp %395 : vector<4x8x8xf32>
    %cst_123 = arith.constant dense<0.000000e+00> : vector<4x8xf32>
    %397 = vector.multi_reduction <add>, %396, %cst_123 [2] : vector<4x8x8xf32> to vector<4x8xf32>
    %398 = vector.shape_cast %397 : vector<4x8xf32> to vector<4x8x1xf32>
    %399 = tpu.reciprocal %398 {approx = true} : vector<4x8x1xf32> -> vector<4x8x1xf32>
    %400 = vector.broadcast %399 : vector<4x8x1xf32> to vector<4x8x8xf32>
    %401 = arith.mulf %396, %400 : vector<4x8x8xf32>
    %402 = arith.truncf %401 : vector<4x8x8xf32> to vector<4x8x8xbf16>
    "tpu.trace_start"() <{level = 10 : i32, message = "hqk,hkd->hqd"}> : () -> ()
    %cst_124 = arith.constant dense<0.000000e+00> : vector<4x8x8xf32>
    %403 = tpu.matmul %402, %385, %cst_124 {dimension_numbers = #tpu.dot_dimension_numbers<[2], [1], [1], [2], [0, 0, 0, 1, 1, 2], [0], [0]>} : vector<4x8x8xbf16>, vector<4x8x8xbf16>, vector<4x8x8xf32> -> vector<4x8x8xf32>
    "tpu.trace_stop"() : () -> ()
    %404 = vector.extract_strided_slice %403 {offsets = [0, 0, 0], sizes = [1, 8, 8], strides = [1, 1, 1]} : vector<4x8x8xf32> to vector<1x8x8xf32>
    %405 = vector.shape_cast %404 : vector<1x8x8xf32> to vector<8x8xf32>
    %406 = vector.extract_strided_slice %403 {offsets = [1, 0, 0], sizes = [1, 8, 8], strides = [1, 1, 1]} : vector<4x8x8xf32> to vector<1x8x8xf32>
    %407 = vector.shape_cast %406 : vector<1x8x8xf32> to vector<8x8xf32>
    %408 = vector.extract_strided_slice %403 {offsets = [2, 0, 0], sizes = [1, 8, 8], strides = [1, 1, 1]} : vector<4x8x8xf32> to vector<1x8x8xf32>
    %409 = vector.shape_cast %408 : vector<1x8x8xf32> to vector<8x8xf32>
    %410 = vector.extract_strided_slice %403 {offsets = [3, 0, 0], sizes = [1, 8, 8], strides = [1, 1, 1]} : vector<4x8x8xf32> to vector<1x8x8xf32>
    %411 = vector.shape_cast %410 : vector<1x8x8xf32> to vector<8x8xf32>
    %412 = tpu.concatenate %405, %407, %409, %411 in 1 : vector<8x8xf32>, vector<8x8xf32>, vector<8x8xf32>, vector<8x8xf32> -> vector<8x32xf32>
    %413 = vector.extract_strided_slice %354 {offsets = [8, 0], sizes = [8, 96], strides = [1, 1]} : vector<16x96xf32> to vector<8x96xf32>
    %414 = vector.extract_strided_slice %413 {offsets = [0, 0], sizes = [8, 8], strides = [1, 1]} : vector<8x96xf32> to vector<8x8xf32>
    %415 = vector.extract_strided_slice %413 {offsets = [0, 8], sizes = [8, 8], strides = [1, 1]} : vector<8x96xf32> to vector<8x8xf32>
    %416 = vector.extract_strided_slice %413 {offsets = [0, 16], sizes = [8, 8], strides = [1, 1]} : vector<8x96xf32> to vector<8x8xf32>
    %417 = vector.extract_strided_slice %413 {offsets = [0, 24], sizes = [8, 8], strides = [1, 1]} : vector<8x96xf32> to vector<8x8xf32>
    %418 = vector.shape_cast %414 : vector<8x8xf32> to vector<1x8x8xf32>
    %419 = vector.shape_cast %415 : vector<8x8xf32> to vector<1x8x8xf32>
    %420 = vector.shape_cast %416 : vector<8x8xf32> to vector<1x8x8xf32>
    %421 = vector.shape_cast %417 : vector<8x8xf32> to vector<1x8x8xf32>
    %422 = tpu.concatenate %418, %419, %420, %421 in 0 : vector<1x8x8xf32>, vector<1x8x8xf32>, vector<1x8x8xf32>, vector<1x8x8xf32> -> vector<4x8x8xf32>
    %423 = arith.truncf %422 : vector<4x8x8xf32> to vector<4x8x8xbf16>
    %424 = vector.extract_strided_slice %413 {offsets = [0, 32], sizes = [8, 8], strides = [1, 1]} : vector<8x96xf32> to vector<8x8xf32>
    %425 = vector.extract_strided_slice %413 {offsets = [0, 40], sizes = [8, 8], strides = [1, 1]} : vector<8x96xf32> to vector<8x8xf32>
    %426 = vector.extract_strided_slice %413 {offsets = [0, 48], sizes = [8, 8], strides = [1, 1]} : vector<8x96xf32> to vector<8x8xf32>
    %427 = vector.extract_strided_slice %413 {offsets = [0, 56], sizes = [8, 8], strides = [1, 1]} : vector<8x96xf32> to vector<8x8xf32>
    %428 = vector.shape_cast %424 : vector<8x8xf32> to vector<1x8x8xf32>
    %429 = vector.shape_cast %425 : vector<8x8xf32> to vector<1x8x8xf32>
    %430 = vector.shape_cast %426 : vector<8x8xf32> to vector<1x8x8xf32>
    %431 = vector.shape_cast %427 : vector<8x8xf32> to vector<1x8x8xf32>
    %432 = tpu.concatenate %428, %429, %430, %431 in 0 : vector<1x8x8xf32>, vector<1x8x8xf32>, vector<1x8x8xf32>, vector<1x8x8xf32> -> vector<4x8x8xf32>
    %433 = arith.truncf %432 : vector<4x8x8xf32> to vector<4x8x8xbf16>
    %434 = vector.extract_strided_slice %413 {offsets = [0, 64], sizes = [8, 8], strides = [1, 1]} : vector<8x96xf32> to vector<8x8xf32>
    %435 = vector.extract_strided_slice %413 {offsets = [0, 72], sizes = [8, 8], strides = [1, 1]} : vector<8x96xf32> to vector<8x8xf32>
    %436 = vector.extract_strided_slice %413 {offsets = [0, 80], sizes = [8, 8], strides = [1, 1]} : vector<8x96xf32> to vector<8x8xf32>
    %437 = vector.extract_strided_slice %413 {offsets = [0, 88], sizes = [8, 8], strides = [1, 1]} : vector<8x96xf32> to vector<8x8xf32>
    %438 = vector.shape_cast %434 : vector<8x8xf32> to vector<1x8x8xf32>
    %439 = vector.shape_cast %435 : vector<8x8xf32> to vector<1x8x8xf32>
    %440 = vector.shape_cast %436 : vector<8x8xf32> to vector<1x8x8xf32>
    %441 = vector.shape_cast %437 : vector<8x8xf32> to vector<1x8x8xf32>
    %442 = tpu.concatenate %438, %439, %440, %441 in 0 : vector<1x8x8xf32>, vector<1x8x8xf32>, vector<1x8x8xf32>, vector<1x8x8xf32> -> vector<4x8x8xf32>
    %443 = arith.truncf %442 : vector<4x8x8xf32> to vector<4x8x8xbf16>
    "tpu.trace_start"() <{level = 10 : i32, message = "hqd,hkd->hqk"}> : () -> ()
    %cst_125 = arith.constant dense<0.000000e+00> : vector<4x8x8xf32>
    %444 = tpu.matmul %423, %433, %cst_125 {dimension_numbers = #tpu.dot_dimension_numbers<[2], [2], [1], [1], [0, 0, 0, 1, 1, 1], [0], [0]>} : vector<4x8x8xbf16>, vector<4x8x8xbf16>, vector<4x8x8xf32> -> vector<4x8x8xf32>
    "tpu.trace_stop"() : () -> ()
    %cst_126 = arith.constant 0.353553385 : f32
    %445 = vector.broadcast %cst_126 : f32 to vector<4x8x8xf32>
    %446 = arith.mulf %444, %445 : vector<4x8x8xf32>
    %447 = vector.shape_cast %104 : vector<8x8xf32> to vector<1x8x8xf32>
    %448 = vector.broadcast %447 : vector<1x8x8xf32> to vector<4x8x8xf32>
    %449 = arith.addf %446, %448 : vector<4x8x8xf32>
    %cst_127 = arith.constant dense<0xFF800000> : vector<4x8xf32>
    %450 = vector.multi_reduction <maximumf>, %449, %cst_127 [2] : vector<4x8x8xf32> to vector<4x8xf32>
    %451 = vector.shape_cast %450 : vector<4x8xf32> to vector<4x8x1xf32>
    %452 = vector.broadcast %451 : vector<4x8x1xf32> to vector<4x8x8xf32>
    %453 = arith.subf %449, %452 : vector<4x8x8xf32>
    %454 = math.exp %453 : vector<4x8x8xf32>
    %cst_128 = arith.constant dense<0.000000e+00> : vector<4x8xf32>
    %455 = vector.multi_reduction <add>, %454, %cst_128 [2] : vector<4x8x8xf32> to vector<4x8xf32>
    %456 = vector.shape_cast %455 : vector<4x8xf32> to vector<4x8x1xf32>
    %457 = tpu.reciprocal %456 {approx = true} : vector<4x8x1xf32> -> vector<4x8x1xf32>
    %458 = vector.broadcast %457 : vector<4x8x1xf32> to vector<4x8x8xf32>
    %459 = arith.mulf %454, %458 : vector<4x8x8xf32>
    %460 = arith.truncf %459 : vector<4x8x8xf32> to vector<4x8x8xbf16>
    "tpu.trace_start"() <{level = 10 : i32, message = "hqk,hkd->hqd"}> : () -> ()
    %cst_129 = arith.constant dense<0.000000e+00> : vector<4x8x8xf32>
    %461 = tpu.matmul %460, %443, %cst_129 {dimension_numbers = #tpu.dot_dimension_numbers<[2], [1], [1], [2], [0, 0, 0, 1, 1, 2], [0], [0]>} : vector<4x8x8xbf16>, vector<4x8x8xbf16>, vector<4x8x8xf32> -> vector<4x8x8xf32>
    "tpu.trace_stop"() : () -> ()
    %462 = vector.extract_strided_slice %461 {offsets = [0, 0, 0], sizes = [1, 8, 8], strides = [1, 1, 1]} : vector<4x8x8xf32> to vector<1x8x8xf32>
    %463 = vector.shape_cast %462 : vector<1x8x8xf32> to vector<8x8xf32>
    %464 = vector.extract_strided_slice %461 {offsets = [1, 0, 0], sizes = [1, 8, 8], strides = [1, 1, 1]} : vector<4x8x8xf32> to vector<1x8x8xf32>
    %465 = vector.shape_cast %464 : vector<1x8x8xf32> to vector<8x8xf32>
    %466 = vector.extract_strided_slice %461 {offsets = [2, 0, 0], sizes = [1, 8, 8], strides = [1, 1, 1]} : vector<4x8x8xf32> to vector<1x8x8xf32>
    %467 = vector.shape_cast %466 : vector<1x8x8xf32> to vector<8x8xf32>
    %468 = vector.extract_strided_slice %461 {offsets = [3, 0, 0], sizes = [1, 8, 8], strides = [1, 1, 1]} : vector<4x8x8xf32> to vector<1x8x8xf32>
    %469 = vector.shape_cast %468 : vector<1x8x8xf32> to vector<8x8xf32>
    %470 = tpu.concatenate %463, %465, %467, %469 in 1 : vector<8x8xf32>, vector<8x8xf32>, vector<8x8xf32>, vector<8x8xf32> -> vector<8x32xf32>
    %471 = tpu.concatenate %412, %470 in 0 : vector<8x32xf32>, vector<8x32xf32> -> vector<16x32xf32>
    %c1_130 = arith.constant 1 : index
    %c0_131 = arith.constant 0 : index
    %c0_132 = arith.constant 0 : index
    %472 = vector.load %arg11[%c1_130, %c0_131, %c0_132] : memref<2x32x32xbf16, #tpu.memory_space<vmem>>, vector<1x32x32xbf16>
    %473 = vector.shape_cast %472 : vector<1x32x32xbf16> to vector<32x32xbf16>
    %c1_133 = arith.constant 1 : index
    %c0_134 = arith.constant 0 : index
    %c0_135 = arith.constant 0 : index
    %474 = vector.load %arg12[%c1_133, %c0_134, %c0_135] : memref<2x1x32xf32, #tpu.memory_space<vmem>>, vector<1x1x32xf32>
    %475 = vector.shape_cast %474 : vector<1x1x32xf32> to vector<1x32xf32>
    %476 = arith.truncf %471 : vector<16x32xf32> to vector<16x32xbf16>
    %cst_136 = arith.constant dense<0.000000e+00> : vector<16x32xf32>
    %477 = tpu.matmul %476, %473, %cst_136 {dimension_numbers = #tpu.dot_dimension_numbers<[1], [0], [0], [1], [0, 0, 1, 1], [], []>} : vector<16x32xbf16>, vector<32x32xbf16>, vector<16x32xf32> -> vector<16x32xf32>
    %478 = vector.broadcast %475 : vector<1x32xf32> to vector<16x32xf32>
    %479 = arith.addf %477, %478 : vector<16x32xf32>
    %480 = arith.addf %320, %479 : vector<16x32xf32>
    %c1_137 = arith.constant 1 : index
    %c0_138 = arith.constant 0 : index
    %c0_139 = arith.constant 0 : index
    %481 = vector.load %arg13[%c1_137, %c0_138, %c0_139] : memref<2x1x32xf32, #tpu.memory_space<vmem>>, vector<1x1x32xf32>
    %482 = vector.shape_cast %481 : vector<1x1x32xf32> to vector<1x32xf32>
    %c1_140 = arith.constant 1 : index
    %c0_141 = arith.constant 0 : index
    %c0_142 = arith.constant 0 : index
    %483 = vector.load %arg14[%c1_140, %c0_141, %c0_142] : memref<2x1x32xf32, #tpu.memory_space<vmem>>, vector<1x1x32xf32>
    %484 = vector.shape_cast %483 : vector<1x1x32xf32> to vector<1x32xf32>
    %cst_143 = arith.constant dense<0.000000e+00> : vector<16xf32>
    %485 = vector.multi_reduction <add>, %480, %cst_143 [1] : vector<16x32xf32> to vector<16xf32>
    %486 = vector.shape_cast %485 : vector<16xf32> to vector<16x1xf32>
    %cst_144 = arith.constant 3.200000e+01 : f32
    %487 = vector.broadcast %cst_144 : f32 to vector<16x1xf32>
    %488 = arith.divf %486, %487 : vector<16x1xf32>
    %489 = vector.broadcast %488 : vector<16x1xf32> to vector<16x32xf32>
    %490 = arith.subf %480, %489 : vector<16x32xf32>
    %491 = arith.mulf %490, %490 : vector<16x32xf32>
    %cst_145 = arith.constant dense<0.000000e+00> : vector<16xf32>
    %492 = vector.multi_reduction <add>, %491, %cst_145 [1] : vector<16x32xf32> to vector<16xf32>
    %493 = vector.shape_cast %492 : vector<16xf32> to vector<16x1xf32>
    %cst_146 = arith.constant 3.200000e+01 : f32
    %494 = vector.broadcast %cst_146 : f32 to vector<16x1xf32>
    %495 = arith.divf %493, %494 : vector<16x1xf32>
    %496 = vector.broadcast %488 : vector<16x1xf32> to vector<16x32xf32>
    %497 = arith.subf %480, %496 : vector<16x32xf32>
    %cst_147 = arith.constant 9.99999974E-6 : f32
    %498 = vector.broadcast %cst_147 : f32 to vector<16x1xf32>
    %499 = arith.addf %495, %498 : vector<16x1xf32>
    %500 = math.rsqrt %499 : vector<16x1xf32>
    %501 = vector.broadcast %500 : vector<16x1xf32> to vector<16x32xf32>
    %502 = arith.mulf %497, %501 : vector<16x32xf32>
    %503 = vector.broadcast %482 : vector<1x32xf32> to vector<16x32xf32>
    %504 = arith.mulf %502, %503 : vector<16x32xf32>
    %505 = vector.broadcast %484 : vector<1x32xf32> to vector<16x32xf32>
    %506 = arith.addf %504, %505 : vector<16x32xf32>
    %c1_148 = arith.constant 1 : index
    %c0_149 = arith.constant 0 : index
    %c0_150 = arith.constant 0 : index
    %507 = vector.load %arg15[%c1_148, %c0_149, %c0_150] : memref<2x32x64xbf16, #tpu.memory_space<vmem>>, vector<1x32x64xbf16>
    %508 = vector.shape_cast %507 : vector<1x32x64xbf16> to vector<32x64xbf16>
    %c1_151 = arith.constant 1 : index
    %c0_152 = arith.constant 0 : index
    %c0_153 = arith.constant 0 : index
    %509 = vector.load %arg16[%c1_151, %c0_152, %c0_153] : memref<2x1x64xf32, #tpu.memory_space<vmem>>, vector<1x1x64xf32>
    %510 = vector.shape_cast %509 : vector<1x1x64xf32> to vector<1x64xf32>
    %511 = arith.truncf %506 : vector<16x32xf32> to vector<16x32xbf16>
    %cst_154 = arith.constant dense<0.000000e+00> : vector<16x64xf32>
    %512 = tpu.matmul %511, %508, %cst_154 {dimension_numbers = #tpu.dot_dimension_numbers<[1], [0], [0], [1], [0, 0, 1, 1], [], []>} : vector<16x32xbf16>, vector<32x64xbf16>, vector<16x64xf32> -> vector<16x64xf32>
    %513 = vector.broadcast %510 : vector<1x64xf32> to vector<16x64xf32>
    %514 = arith.addf %512, %513 : vector<16x64xf32>
    %cst_155 = arith.constant 5.000000e-01 : f32
    %515 = vector.broadcast %cst_155 : f32 to vector<16x64xf32>
    %516 = arith.mulf %515, %514 : vector<16x64xf32>
    %cst_156 = arith.constant 4.471500e-02 : f32
    %517 = vector.broadcast %cst_156 : f32 to vector<16x64xf32>
    %518 = arith.mulf %517, %514 : vector<16x64xf32>
    %519 = arith.mulf %518, %514 : vector<16x64xf32>
    %520 = arith.mulf %519, %514 : vector<16x64xf32>
    %521 = arith.addf %514, %520 : vector<16x64xf32>
    %cst_157 = arith.constant 0.797884583 : f32
    %522 = vector.broadcast %cst_157 : f32 to vector<16x64xf32>
    %523 = arith.mulf %522, %521 : vector<16x64xf32>
    %524 = math.tanh %523 : vector<16x64xf32>
    %cst_158 = arith.constant 1.000000e+00 : f32
    %525 = vector.broadcast %cst_158 : f32 to vector<16x64xf32>
    %526 = arith.addf %525, %524 : vector<16x64xf32>
    %527 = arith.mulf %516, %526 : vector<16x64xf32>
    %c1_159 = arith.constant 1 : index
    %c0_160 = arith.constant 0 : index
    %c0_161 = arith.constant 0 : index
    %528 = vector.load %arg17[%c1_159, %c0_160, %c0_161] : memref<2x64x32xbf16, #tpu.memory_space<vmem>>, vector<1x64x32xbf16>
    %529 = vector.shape_cast %528 : vector<1x64x32xbf16> to vector<64x32xbf16>
    %c1_162 = arith.constant 1 : index
    %c0_163 = arith.constant 0 : index
    %c0_164 = arith.constant 0 : index
    %530 = vector.load %arg18[%c1_162, %c0_163, %c0_164] : memref<2x1x32xf32, #tpu.memory_space<vmem>>, vector<1x1x32xf32>
    %531 = vector.shape_cast %530 : vector<1x1x32xf32> to vector<1x32xf32>
    %532 = arith.truncf %527 : vector<16x64xf32> to vector<16x64xbf16>
    %cst_165 = arith.constant dense<0.000000e+00> : vector<16x32xf32>
    %533 = tpu.matmul %532, %529, %cst_165 {dimension_numbers = #tpu.dot_dimension_numbers<[1], [0], [0], [1], [0, 0, 1, 1], [], []>} : vector<16x64xbf16>, vector<64x32xbf16>, vector<16x32xf32> -> vector<16x32xf32>
    %534 = vector.broadcast %531 : vector<1x32xf32> to vector<16x32xf32>
    %535 = arith.addf %533, %534 : vector<16x32xf32>
    %536 = arith.addf %480, %535 : vector<16x32xf32>
    %c0_166 = arith.constant 0 : index
    %c0_167 = arith.constant 0 : index
    %537 = vector.load %arg19[%c0_166, %c0_167] : memref<1x32xf32, #tpu.memory_space<vmem>>, vector<1x32xf32>
    %c0_168 = arith.constant 0 : index
    %c0_169 = arith.constant 0 : index
    %538 = vector.load %arg20[%c0_168, %c0_169] : memref<1x32xf32, #tpu.memory_space<vmem>>, vector<1x32xf32>
    %cst_170 = arith.constant dense<0.000000e+00> : vector<16xf32>
    %539 = vector.multi_reduction <add>, %536, %cst_170 [1] : vector<16x32xf32> to vector<16xf32>
    %540 = vector.shape_cast %539 : vector<16xf32> to vector<16x1xf32>
    %cst_171 = arith.constant 3.200000e+01 : f32
    %541 = vector.broadcast %cst_171 : f32 to vector<16x1xf32>
    %542 = arith.divf %540, %541 : vector<16x1xf32>
    %543 = vector.broadcast %542 : vector<16x1xf32> to vector<16x32xf32>
    %544 = arith.subf %536, %543 : vector<16x32xf32>
    %545 = arith.mulf %544, %544 : vector<16x32xf32>
    %cst_172 = arith.constant dense<0.000000e+00> : vector<16xf32>
    %546 = vector.multi_reduction <add>, %545, %cst_172 [1] : vector<16x32xf32> to vector<16xf32>
    %547 = vector.shape_cast %546 : vector<16xf32> to vector<16x1xf32>
    %cst_173 = arith.constant 3.200000e+01 : f32
    %548 = vector.broadcast %cst_173 : f32 to vector<16x1xf32>
    %549 = arith.divf %547, %548 : vector<16x1xf32>
    %550 = vector.broadcast %542 : vector<16x1xf32> to vector<16x32xf32>
    %551 = arith.subf %536, %550 : vector<16x32xf32>
    %cst_174 = arith.constant 9.99999974E-6 : f32
    %552 = vector.broadcast %cst_174 : f32 to vector<16x1xf32>
    %553 = arith.addf %549, %552 : vector<16x1xf32>
    %554 = math.rsqrt %553 : vector<16x1xf32>
    %555 = vector.broadcast %554 : vector<16x1xf32> to vector<16x32xf32>
    %556 = arith.mulf %551, %555 : vector<16x32xf32>
    %557 = vector.broadcast %537 : vector<1x32xf32> to vector<16x32xf32>
    %558 = arith.mulf %556, %557 : vector<16x32xf32>
    %559 = vector.broadcast %538 : vector<1x32xf32> to vector<16x32xf32>
    %560 = arith.addf %558, %559 : vector<16x32xf32>
    %c0_175 = arith.constant 0 : index
    %c0_176 = arith.constant 0 : index
    %561 = vector.load %arg21[%c0_175, %c0_176] : memref<16x32xf32, #tpu.memory_space<vmem>>, vector<16x32xf32>
    tpu.vector_store %arg21[%c0_175, %c0_176], %560 {strides = array<i32>} : memref<16x32xf32, #tpu.memory_space<vmem>>, vector<16x32xf32>,
    return
  }
  func.func @transform_0(%arg0: i32, %arg1: memref<2xi32, #tpu.memory_space<smem>>) -> (i32, i32) {
    %c0_i32 = arith.constant 0 : i32
    %c0_i32_0 = arith.constant 0 : i32
    return %arg0, %c0_i32 : i32, i32
  }
  func.func @transform_1(%arg0: i32, %arg1: memref<2xi32, #tpu.memory_space<smem>>) -> (i32, i32) {
    %c0_i32 = arith.constant 0 : i32
    %c0_i32_0 = arith.constant 0 : i32
    %c0_i32_1 = arith.constant 0 : i32
    return %c0_i32, %c0_i32_0 : i32, i32
  }
  func.func @transform_2(%arg0: i32, %arg1: memref<2xi32, #tpu.memory_space<smem>>) -> (i32, i32) {
    %c0_i32 = arith.constant 0 : i32
    %c0_i32_0 = arith.constant 0 : i32
    %c0_i32_1 = arith.constant 0 : i32
    return %c0_i32, %c0_i32_0 : i32, i32
  }
  func.func @transform_3(%arg0: i32, %arg1: memref<2xi32, #tpu.memory_space<smem>>) -> (i32, i32) {
    %c0_i32 = arith.constant 0 : i32
    %c0_i32_0 = arith.constant 0 : i32
    %c0_i32_1 = arith.constant 0 : i32
    return %c0_i32, %c0_i32_0 : i32, i32
  }
  func.func @transform_4(%arg0: i32, %arg1: memref<2xi32, #tpu.memory_space<smem>>) -> (i32, i32) {
    %c0_i32 = arith.constant 0 : i32
    %c0_i32_0 = arith.constant 0 : i32
    %c0_i32_1 = arith.constant 0 : i32
    return %c0_i32, %c0_i32_0 : i32, i32
  }
  func.func @transform_5(%arg0: i32, %arg1: memref<2xi32, #tpu.memory_space<smem>>) -> (i32, i32, i32) {
    %c0_i32 = arith.constant 0 : i32
    %c0_i32_0 = arith.constant 0 : i32
    %c0_i32_1 = arith.constant 0 : i32
    %c0_i32_2 = arith.constant 0 : i32
    return %c0_i32, %c0_i32_0, %c0_i32_1 : i32, i32, i32
  }
  func.func @transform_6(%arg0: i32, %arg1: memref<2xi32, #tpu.memory_space<smem>>) -> (i32, i32, i32) {
    %c0_i32 = arith.constant 0 : i32
    %c0_i32_0 = arith.constant 0 : i32
    %c0_i32_1 = arith.constant 0 : i32
    %c0_i32_2 = arith.constant 0 : i32
    return %c0_i32, %c0_i32_0, %c0_i32_1 : i32, i32, i32
  }
  func.func @transform_7(%arg0: i32, %arg1: memref<2xi32, #tpu.memory_space<smem>>) -> (i32, i32, i32) {
    %c0_i32 = arith.constant 0 : i32
    %c0_i32_0 = arith.constant 0 : i32
    %c0_i32_1 = arith.constant 0 : i32
    %c0_i32_2 = arith.constant 0 : i32
    return %c0_i32, %c0_i32_0, %c0_i32_1 : i32, i32, i32
  }
  func.func @transform_8(%arg0: i32, %arg1: memref<2xi32, #tpu.memory_space<smem>>) -> (i32, i32, i32) {
    %c0_i32 = arith.constant 0 : i32
    %c0_i32_0 = arith.constant 0 : i32
    %c0_i32_1 = arith.constant 0 : i32
    %c0_i32_2 = arith.constant 0 : i32
    return %c0_i32, %c0_i32_0, %c0_i32_1 : i32, i32, i32
  }
  func.func @transform_9(%arg0: i32, %arg1: memref<2xi32, #tpu.memory_space<smem>>) -> (i32, i32, i32) {
    %c0_i32 = arith.constant 0 : i32
    %c0_i32_0 = arith.constant 0 : i32
    %c0_i32_1 = arith.constant 0 : i32
    %c0_i32_2 = arith.constant 0 : i32
    return %c0_i32, %c0_i32_0, %c0_i32_1 : i32, i32, i32
  }
  func.func @transform_10(%arg0: i32, %arg1: memref<2xi32, #tpu.memory_space<smem>>) -> (i32, i32, i32) {
    %c0_i32 = arith.constant 0 : i32
    %c0_i32_0 = arith.constant 0 : i32
    %c0_i32_1 = arith.constant 0 : i32
    %c0_i32_2 = arith.constant 0 : i32
    return %c0_i32, %c0_i32_0, %c0_i32_1 : i32, i32, i32
  }
  func.func @transform_11(%arg0: i32, %arg1: memref<2xi32, #tpu.memory_space<smem>>) -> (i32, i32, i32) {
    %c0_i32 = arith.constant 0 : i32
    %c0_i32_0 = arith.constant 0 : i32
    %c0_i32_1 = arith.constant 0 : i32
    %c0_i32_2 = arith.constant 0 : i32
    return %c0_i32, %c0_i32_0, %c0_i32_1 : i32, i32, i32
  }
  func.func @transform_12(%arg0: i32, %arg1: memref<2xi32, #tpu.memory_space<smem>>) -> (i32, i32, i32) {
    %c0_i32 = arith.constant 0 : i32
    %c0_i32_0 = arith.constant 0 : i32
    %c0_i32_1 = arith.constant 0 : i32
    %c0_i32_2 = arith.constant 0 : i32
    return %c0_i32, %c0_i32_0, %c0_i32_1 : i32, i32, i32
  }
  func.func @transform_13(%arg0: i32, %arg1: memref<2xi32, #tpu.memory_space<smem>>) -> (i32, i32, i32) {
    %c0_i32 = arith.constant 0 : i32
    %c0_i32_0 = arith.constant 0 : i32
    %c0_i32_1 = arith.constant 0 : i32
    %c0_i32_2 = arith.constant 0 : i32
    return %c0_i32, %c0_i32_0, %c0_i32_1 : i32, i32, i32
  }
  func.func @transform_14(%arg0: i32, %arg1: memref<2xi32, #tpu.memory_space<smem>>) -> (i32, i32, i32) {
    %c0_i32 = arith.constant 0 : i32
    %c0_i32_0 = arith.constant 0 : i32
    %c0_i32_1 = arith.constant 0 : i32
    %c0_i32_2 = arith.constant 0 : i32
    return %c0_i32, %c0_i32_0, %c0_i32_1 : i32, i32, i32
  }
  func.func @transform_15(%arg0: i32, %arg1: memref<2xi32, #tpu.memory_space<smem>>) -> (i32, i32, i32) {
    %c0_i32 = arith.constant 0 : i32
    %c0_i32_0 = arith.constant 0 : i32
    %c0_i32_1 = arith.constant 0 : i32
    %c0_i32_2 = arith.constant 0 : i32
    return %c0_i32, %c0_i32_0, %c0_i32_1 : i32, i32, i32
  }
  func.func @transform_16(%arg0: i32, %arg1: memref<2xi32, #tpu.memory_space<smem>>) -> (i32, i32, i32) {
    %c0_i32 = arith.constant 0 : i32
    %c0_i32_0 = arith.constant 0 : i32
    %c0_i32_1 = arith.constant 0 : i32
    %c0_i32_2 = arith.constant 0 : i32
    return %c0_i32, %c0_i32_0, %c0_i32_1 : i32, i32, i32
  }
  func.func @transform_17(%arg0: i32, %arg1: memref<2xi32, #tpu.memory_space<smem>>) -> (i32, i32) {
    %c0_i32 = arith.constant 0 : i32
    %c0_i32_0 = arith.constant 0 : i32
    %c0_i32_1 = arith.constant 0 : i32
    return %c0_i32, %c0_i32_0 : i32, i32
  }
  func.func @transform_18(%arg0: i32, %arg1: memref<2xi32, #tpu.memory_space<smem>>) -> (i32, i32) {
    %c0_i32 = arith.constant 0 : i32
    %c0_i32_0 = arith.constant 0 : i32
    %c0_i32_1 = arith.constant 0 : i32
    return %c0_i32, %c0_i32_0 : i32, i32
  }
  func.func @transform_19(%arg0: i32, %arg1: memref<2xi32, #tpu.memory_space<smem>>) -> (i32, i32) {
    %c0_i32 = arith.constant 0 : i32
    %c0_i32_0 = arith.constant 0 : i32
    return %arg0, %c0_i32 : i32, i32
  }
}

</mosaic_0001>

<bundles_post_ra>
// kernel: tpu_custom_call.1
= control target key start
LH: loop header
LB: loop body
LE: loop exit
PB: predicated region body
PF: predicated region fallthrough
CT: control target
= control target key end

     0   :  { %s4817_s0 = inlined_call_operand.vmem [shape: s32[2], index: 0, kind: input, shape index: {}]   ;;  %s4818_s1 = inlined_call_operand.vmem [shape: f32[16,64], index: 1, kind: input, shape index: {}]   ;;  %s4819_s2 = inlined_call_operand.vmem [shape: bf16[48,32], index: 2, kind: input, shape index: {}]   ;;  %s4820_s3 = inlined_call_operand.vmem [shape: f32[1,32], index: 3, kind: input, shape index: {}]   ;;  %s4821_s4 = inlined_call_operand.vmem [shape: bf16[96,32], index: 4, kind: input, shape index: {}]   ;;  %s4822_s5 = inlined_call_operand.vmem [shape: f32[1,32], index: 5, kind: input, shape index: {}]   ;;  %s4823_s6 = inlined_call_operand.vmem [shape: f32[2,1,32], index: 6, kind: input, shape index: {}]   ;;  %s4824_s7 = inlined_call_operand.vmem [shape: f32[2,1,32], index: 7, kind: input, shape index: {}]   ;;  %s4825_s8 = inlined_call_operand.vmem [shape: bf16[2,32,96], index: 8, kind: input, shape index: {}]   ;;  %s4826_s9 = inlined_call_operand.vmem [shape: f32[2,1,96], index: 9, kind: input, shape index: {}]   ;;  %s4827_s10 = inlined_call_operand.vmem [shape: bf16[2,32,32], index: 10, kind: input, shape index: {}]   ;;  %s4828_s11 = inlined_call_operand.vmem [shape: f32[2,1,32], index: 11, kind: input, shape index: {}]   ;;  %s4829_s12 = inlined_call_operand.vmem [shape: f32[2,1,32], index: 12, kind: input, shape index: {}]   ;;  %s4830_s13 = inlined_call_operand.vmem [shape: f32[2,1,32], index: 13, kind: input, shape index: {}]   ;;  %s4831_s14 = inlined_call_operand.vmem [shape: bf16[2,32,64], index: 14, kind: input, shape index: {}]   ;;  %s4832_s15 = inlined_call_operand.vmem [shape: f32[2,1,64], index: 15, kind: input, shape index: {}]   ;;  %s4833_s16 = inlined_call_operand.vmem [shape: bf16[2,64,32], index: 16, kind: input, shape index: {}]   ;;  %s4834_s17 = inlined_call_operand.vmem [shape: f32[2,1,32], index: 17, kind: input, shape index: {}]   ;;  %s4835_s18 = inlined_call_operand.vmem [shape: f32[1,32], index: 18, kind: input, shape index: {}]   ;;  %s4836_s19 = inlined_call_operand.vmem [shape: f32[1,32], index: 19, kind: input, shape index: {}]   ;;  %s4837_s20 = inlined_call_operand.hbm [shape: f32[16,32], index: 20, kind: output, shape index: {}]  }
   0x1   :  { %4842 = sst [smem:[#allocation8_spill]] %s4817_s0 }
   0x2   :  { %4843 = sst [smem:[#allocation9_spill]] %s4818_s1  ;;  %s4848_s23 = sld [smem:[#allocation8_spill]] }
   0x3   :  { %4844 = sst [smem:[#allocation10_spill]] %s4819_s2 }
   0x4   :  { %4845 = sst [smem:[#allocation11_spill]] %s4820_s3 }
   0x5   :  { %4846 = sst [smem:[#allocation12_spill]] %s4821_s4 }
   0x6   :  { %4847 = sst [smem:[#allocation13_spill]] %s4830_s13 }
   0x8   :  { %s25_s13 = sshll.u32 %s4848_s23, 4  ;;  %s26_s13 = int_to_ptr.vmem [resolvable:$true] %s25_s13 }
   0x9   :  { %s3922_s24 = scalar_lea.vmem %s26_s13, 16  ;;  %p3927_p1 = scmp.lt.s32.totalorder %s26_s13, %s26_s13 }
   0xa   :  { %p3923_p0 = scmp.ne.s32.totalorder %s26_s13, %s3922_s24  ;;  %p3928_p2 = scmp.lt.s32.totalorder %s3922_s24, %s3922_s24 }
   0xc   :  { %p3929_p3 = por %p3928_p2, %p3927_p1 }
   0xe   :  { %p3930_p4 = pnand %p3929_p3, %p3923_p0 }
  0x10   :  { %3933 = shalt.err (!%p3930_p4)  }
  0x11   :  { %s3960_s2 = smov [#allocation3]  }
  0x12   :  { %28 = dma.vmem_to_smem %s26_s13, 16, %s3960_s2, [#allocation2] }
  0x13   :  { %3956 = dma.done.wait [#allocation2], 16 }
  0x14   :  { %3957 = vsyncadd [#allocation2], 4294967280 }
  0x15   :  { %30 = sfence }
  0x16   :  { %s4849_s26 = sld [smem:[#allocation9_spill]]  ;;  %s4850_s30 = sld [smem:[#allocation10_spill]]  ;;  %v3961_v5 = vmov 0.0   ;;  %vm3964_vm0 = vmmov 0  }
  0x17   :  { %3433 = vmatprep.subr.bf16.mxu1 %v3961_v5  ;;  %3423 = vmatprep.subr.bf16.mxu0 %v3961_v5  ;;  %s3962_s21 = smov 80   ;;  %s3963_s1 = smov 112  }
  0x18   :  { %3439 = vmatprep.mubr.msk.bf16.mxu1 %vm3964_vm0, %v3961_v5  ;;  %3429 = vmatprep.mubr.msk.bf16.mxu0 %vm3964_vm0, %v3961_v5  ;;  %s3965_s24 = smov 16  }
  0x1c   :  { %v71_v0 = vld [vmem:[%s4849_s26] sm:$0xff]  ;;  %v72_v1 = vld [vmem:[%s4849_s26 + $0x8] sm:$0xff]  ;;  %v3791_v7 = vld [vmem:[%s4850_s30 + $0x10] sm:$0xff]  }
  0x1d   :  { %v3789_v2 = vld [vmem:[%s4850_s30] sm:$0xff]   ;;  %v3739_v3 = vpack.i.bf16 %v72_v1, %v71_v0  ;;  %v201_v4 = vpack.c.bf16 %v72_v1, %v71_v0  ;;  %v3790_v6 = vld [vmem:[%s4850_s30 + $0x8] sm:$0xff]  }
  0x1e   :  { %3434 = vmatpush3.bf16.msra.mxu1 %v3789_v2  ;;  %3424 = vmatpush3.bf16.msra.mxu0 %v3789_v2 }
  0x1f   :  { %3740 = vrot.lane.b32.xlu0 %v3739_v3, %s3962_s21  ;;  %203 = vrot.lane.b32.xlu1 %v201_v4, %s3963_s1 }
  0x20   :  { %3435 = vmatprep.subr.bf16.mxu1 %v3961_v5  ;;  %3425 = vmatprep.subr.bf16.mxu0 %v3961_v5 }
  0x22   :  { %3436 = vmatpush3.bf16.msra.mxu1 %v3790_v6  ;;  %3426 = vmatpush3.bf16.msra.mxu0 %v3790_v6 }
  0x23   :  { %3745 = vrot.lane.b32.xlu0 %v3739_v3, %s3965_s24  ;;  %3437 = vmatprep.subr.bf16.mxu1 %v3961_v5 }
  0x24   :  { %3427 = vmatprep.subr.bf16.mxu0 %v3961_v5 }
  0x26   :  { %3438 = vmatpush3.bf16.msra.mxu1 %v3791_v7  ;;  %3428 = vmatpush3.bf16.msra.mxu0 %v3791_v7 }
  0x27   :  { %3443 = vmatprep.subr.bf16.mxu0 %v3961_v5  ;;  %3459 = vmatprep.subr.bf16.mxu1 %v3961_v5 }
  0x28   :  { %31 = vsyncpa [#allocation5], 0  ;;  %v83_v8 = vlaneseq  ;;  %vm138_vm1 = vcmask 392192   ;;  %vm103_vm5 = vcmask 130048   ;;  %s4851_s3 = sld [smem:[#allocation12_spill]]  ;;  %s4852_s29 = sld [smem:[#allocation11_spill]] }
  0x29   :  { %s3966_s26 = smov 64   ;;  %vm289_vm6 = vcmask 261120   ;;  %vm292_vm7 = vcmask 523264   ;;  %vm351_vm8 = vcmask 785408   ;;  %s3968_s25 = smov 120   ;;  %vm559_vm9 = vcmask 64512  }
  0x2a   :  { %v4114_v9 = vshrl.u32 %v83_v8, 7  ;;  %s3970_s27 = smov 96   ;;  %s417_s28 = sld [smem:[#allocation3]]  ;;  %vm814_vm13 = vcmask 1043456  }
  0x2b   :  { %s3972_s4 = smov 8   ;;  %s3973_s21 = smov 24  }
  0x2c   :  { %v4117_v10 = vadd.s32 8, %v4114_v9  ;;  %vm85_vm2 = vcmp.lt.s32.totalorder %v4114_v9, 1  ;;  %vm89_vm3 = vcmp.eq.s32.totalorder %v4114_v9, 0  ;;  %s4853_s23 = sld [smem:[#allocation13_spill]] }
  0x2e   :  { %vm92_vm4 = vcmp.eq.s32.totalorder %v4117_v10, 8  ;;  %v3792_v27 = vld [vmem:[%s4851_s3] sm:$0xff]   ;;  %v3793_v28 = vld [vmem:[%s4851_s3 + $0x8] sm:$0xff]   ;;  %v3794_v57 = vld [vmem:[%s4851_s3 + $0x10] sm:$0xff]  }
  0x2f   :  { %v3195_v29 = vld [vmem:[%s4852_s29] ss:$0 sm:$0xff]  ;;  %v3795_v60 = vld [vmem:[%s4851_s3 + $0x18] sm:$0xff]  }
  0x30   :  { %v3796_v1 = vld [vmem:[%s4851_s3 + $0x20] sm:$0xff]  }
  0x91   :  { %v3741_v11 = vpop.permute.xlu0 %3740  ;;  %v204_v12 = vpop.permute.xlu1 %203 }
  0x92   :  { %v3743_v13 = vunpack.i.h.bf16 %v3741_v11  ;;  %v3742_v14 = vunpack.i.l.bf16 %v3741_v11  ;;  %3440 = vmatmul.mubr.msk.bf16.vlgmr.msra.gmra.mrb[0].mxu1 %vm138_vm1, %v204_v12 }
  0x93   :  { %3463 = vmatprep.mubr.msk.bf16.mxu1 %vm3964_vm0, %v3961_v5 }
  0x94   :  { %v82_v15 = vrot.slane %v3743_v13, 7  ;;  %v81_v16 = vrot.slane %v3742_v14, 7  ;;  %v3797_v13 = vld [vmem:[%s4851_s3 + $0x28] sm:$0xff]   ;;  %s3967_s3 = smov 32  }
  0x95   :  { %v3746_v17 = vpop.permute.xlu0 %3745 }
  0x96   :  { %v86_v18 = vsel %vm85_vm2, %v81_v16, %v82_v15  ;;  %v87_v19 = vsel %vm85_vm2, %v82_v15, %v81_v16  ;;  %v3748_v20 = vunpack.i.h.bf16 %v3746_v17  ;;  %v3747_v21 = vunpack.i.l.bf16 %v3746_v17 }
  0x97   :  { %v95_v22 = vsel %vm89_vm3, 0.0, %v87_v19  ;;  %v96_v23 = vsel %vm92_vm4, 0.0, %v86_v18 }
  0x98   :  { %v104_v24 = vsel %vm103_vm5, %v95_v22, %v3747_v21  ;;  %v105_v25 = vsel %vm103_vm5, %v96_v23, %v3748_v20 }
  0x99   :  { %v113_v26 = vpack.c.bf16 %v105_v25, %v104_v24 }
  0x9b   :  { %3430 = vmatmul.mubr.msk.bf16.vlgmr.msra.gmra.mrb[0].mxu0 %vm138_vm1, %v113_v26  ;;  %vm1016_vm1 = vcmask 195584  }
  0x9c   :  { %3455 = vmatprep.mubr.msk.bf16.mxu0 %vm3964_vm0, %v3961_v5  ;;  %3444 = vmatpush3.bf16.msra.mxu0 %v3792_v27 }
  0x9d   :  { %3445 = vmatprep.subr.bf16.mxu0 %v3961_v5 }
  0xa0   :  { %3446 = vmatpush3.bf16.msra.mxu0 %v3793_v28 }
  0xa1   :  { %3447 = vmatprep.subr.bf16.mxu0 %v3961_v5 }
  0xa4   :  { %3448 = vmatpush3.bf16.msra.mxu0 %v3794_v57 }
  0xa5   :  { %3449 = vmatprep.subr.bf16.mxu0 %v3961_v5 }
  0xa8   :  { %3450 = vmatpush3.bf16.msra.mxu0 %v3795_v60 }
  0xa9   :  { %3451 = vmatprep.subr.bf16.mxu0 %v3961_v5 }
  0xac   :  { %3452 = vmatpush3.bf16.msra.mxu0 %v3796_v1 }
  0xad   :  { %3453 = vmatprep.subr.bf16.mxu0 %v3961_v5 }
  0xb0   :  { %3454 = vmatpush3.bf16.msra.mxu0 %v3797_v13 }
  0xb1   :  { %3479 = vmatprep.subr.bf16.mxu0 %v3961_v5 }
 0x165   :  { %v242_v30 = vpop.f32.mrb[0].mxu1 }
 0x166   :  { %v243_v31 = vadd.f32 %v3195_v29, %v242_v30  ;;  %v3441_v32 = vpop.f32.mrb[1].mxu1 }
 0x167   :  { %v245_v33 = vpop.f32.mrb[2].mxu1 }
 0x168   :  { %v251_v34 = vmul.f32 0.044715, %v243_v31  ;;  %v246_v35 = vadd.f32 %v3195_v29, %v245_v33  ;;  %v3442_v36 = vpop.f32.mrb[3].mxu1  ;;  %v249_v2 = vmul.f32 0.5, %v243_v31 }
 0x16a   :  { %v253_v37 = vmul.f32 %v251_v34, %v243_v31  ;;  %v252_v38 = vmul.f32 0.044715, %v246_v35  ;;  %v250_v6 = vmul.f32 0.5, %v246_v35 }
 0x16c   :  { %v255_v39 = vmul.f32 %v253_v37, %v243_v31  ;;  %v254_v40 = vmul.f32 %v252_v38, %v246_v35 }
 0x16e   :  { %v256_v41 = vmul.f32 %v254_v40, %v246_v35  ;;  %v176_v42 = vpop.f32.mrb[0].mxu0  ;;  %v257_v43 = vadd.f32 %v255_v39, %v243_v31 }
 0x16f   :  { %v177_v44 = vadd.f32 %v3195_v29, %v176_v42  ;;  %v3431_v45 = vpop.f32.mrb[1].mxu0 }
 0x170   :  { %v179_v46 = vpop.f32.mrb[2].mxu0  ;;  %v258_v47 = vadd.f32 %v256_v41, %v246_v35  ;;  %v259_v48 = vmul.f32 0.7978846, %v257_v43  ;;  %v3201_v41 = vld [vmem:[%s4822_s5] ss:$0 sm:$0xff]  ;;  %s3209_s5 = sld [smem:[#allocation3 + $0x1]] }
 0x171   :  { %v185_v49 = vmul.f32 0.044715, %v177_v44  ;;  %v180_v50 = vadd.f32 %v3195_v29, %v179_v46  ;;  %v3432_v51 = vpop.f32.mrb[3].mxu0  ;;  %v183_v22 = vmul.f32 0.5, %v177_v44 }
 0x172   :  { %v260_v52 = vmul.f32 0.7978846, %v258_v47  ;;  %3818 = vtanh.f32 %v259_v48 }
 0x173   :  { %v187_v53 = vmul.f32 %v185_v49, %v177_v44  ;;  %v186_v54 = vmul.f32 0.044715, %v180_v50  ;;  %v184_v23 = vmul.f32 0.5, %v180_v50 }
 0x174   :  { %3820 = vtanh.f32 %v260_v52 }
 0x175   :  { %v189_v55 = vmul.f32 %v187_v53, %v177_v44  ;;  %v188_v56 = vmul.f32 %v186_v54, %v180_v50 }
 0x177   :  { %v190_v58 = vmul.f32 %v188_v56, %v180_v50  ;;  %v191_v59 = vadd.f32 %v189_v55, %v177_v44 }
 0x179   :  { %v192_v61 = vadd.f32 %v190_v58, %v180_v50  ;;  %v193_v62 = vmul.f32 0.7978846, %v191_v59 }
 0x17b   :  { %v194_v63 = vmul.f32 0.7978846, %v192_v61  ;;  %3822 = vtanh.f32 %v193_v62 }
 0x17c   :  { %v3819_v0 = vpop.eup %3818 }
 0x17d   :  { %v263_v3 = vadd.f32 1.0, %v3819_v0  ;;  %3824 = vtanh.f32 %v194_v63 }
 0x17e   :  { %v3821_v4 = vpop.eup %3820 }
 0x17f   :  { %v264_v7 = vadd.f32 1.0, %v3821_v4  ;;  %v265_v11 = vmul.f32 %v263_v3, %v249_v2 }
 0x181   :  { %v266_v12 = vmul.f32 %v264_v7, %v250_v6  ;;  %v267_v14 = vrot.slane %v265_v11, 7 }
 0x183   :  { %v3754_v15 = vpack.i.bf16 %v266_v12, %v265_v11  ;;  %v268_v16 = vrot.slane %v266_v12, 7 }
 0x185   :  { %v3823_v17 = vpop.eup %3822  ;;  %3755 = vrot.lane.b32.xlu0 %v3754_v15, %s3966_s26  ;;  %v269_v18 = vsel %vm85_vm2, %v267_v14, %v268_v16  ;;  %v270_v19 = vsel %vm85_vm2, %v268_v16, %v267_v14 }
 0x186   :  { %v197_v20 = vadd.f32 1.0, %v3823_v17  ;;  %v271_v34 = vsel %vm89_vm3, 0.0, %v270_v19  ;;  %v272_v35 = vsel %vm92_vm4, 0.0, %v269_v18  ;;  %v3798_v17 = vld [vmem:[%s4825_s8] sm:$0xff]   ;;  %v3799_v18 = vld [vmem:[%s4825_s8 + $0x8] sm:$0xff]  }
 0x187   :  { %v3825_v21 = vpop.eup %3824  ;;  %3460 = vmatpush3.bf16.msra.mxu1 %v3798_v17 }
 0x188   :  { %v198_v24 = vadd.f32 1.0, %v3825_v21  ;;  %v199_v25 = vmul.f32 %v197_v20, %v183_v22  ;;  %3461 = vmatprep.subr.bf16.mxu1 %v3961_v5 }
 0x18a   :  { %v200_v26 = vmul.f32 %v198_v24, %v184_v23 }
 0x18b   :  { %3462 = vmatpush3.bf16.msra.mxu1 %v3799_v18 }
 0x18c   :  { %v3749_v27 = vpack.i.bf16 %v200_v26, %v199_v25  ;;  %3467 = vmatprep.subr.bf16.mxu1 %v3961_v5  ;;  %v3210_v26 = vld [vmem:[%s4823_s6] ss:$0 sm:$0xff] }
 0x18e   :  { %3750 = vrot.lane.b32.xlu1 %v3749_v27, %s3967_s3  ;;  %s3969_s3 = smov 104  }
 0x1f7   :  { %v3756_v28 = vpop.permute.xlu0 %3755 }
 0x1f8   :  { %v3758_v32 = vunpack.i.h.bf16 %v3756_v28  ;;  %v3757_v33 = vunpack.i.l.bf16 %v3756_v28 }
 0x200   :  { %v3751_v29 = vpop.permute.xlu1 %3750 }
 0x201   :  { %v3753_v30 = vunpack.i.h.bf16 %v3751_v29  ;;  %v3752_v31 = vunpack.i.l.bf16 %v3751_v29 }
 0x203   :  { %v291_v36 = vsel %vm289_vm6, %v272_v35, %v3753_v30  ;;  %v290_v37 = vsel %vm289_vm6, %v271_v34, %v3752_v31  ;;  %v3211_v31 = vld [vmem:[%s4824_s7] ss:$0 sm:$0xff] }
 0x204   :  { %v294_v38 = vsel %vm292_vm7, %v291_v36, %v3758_v32  ;;  %v293_v39 = vsel %vm292_vm7, %v290_v37, %v3757_v33  ;;  %v3212_v36 = vld [vmem:[%s4826_s9] ss:$0 sm:$0xff] }
 0x205   :  { %v308_v40 = vpack.c.bf16 %v294_v38, %v293_v39 }
 0x207   :  { %3456 = vmatmul.mubr.msk.bf16.vlgmr.msra.gmra.mrb[4].mxu0 %vm351_vm8, %v308_v40 }
 0x208   :  { %3481 = vmatprep.mubr.msk.bf16.mxu0 %vm3964_vm0, %v3961_v5 }
 0x2da   :  { %v389_v10 = vpop.f32.mrb[4].mxu0 }
 0x2db   :  { %v390_v42 = vadd.f32 %v3201_v41, %v389_v10  ;;  %v3457_v43 = vpop.f32.mrb[5].mxu0 }
 0x2dc   :  { %v392_v44 = vpop.f32.mrb[6].mxu0 }
 0x2dd   :  { %v398_v45 = vmul.f32 0.044715, %v390_v42  ;;  %v393_v46 = vadd.f32 %v3201_v41, %v392_v44  ;;  %v3458_v47 = vpop.f32.mrb[7].mxu0  ;;  %v396_v58 = vmul.f32 0.5, %v390_v42 }
 0x2df   :  { %v400_v48 = vmul.f32 %v398_v45, %v390_v42  ;;  %v399_v49 = vmul.f32 0.044715, %v393_v46  ;;  %v397_v62 = vmul.f32 0.5, %v393_v46 }
 0x2e1   :  { %v401_v50 = vmul.f32 %v399_v49, %v393_v46  ;;  %v402_v51 = vmul.f32 %v400_v48, %v390_v42 }
 0x2e3   :  { %v404_v52 = vadd.f32 %v402_v51, %v390_v42  ;;  %v403_v53 = vmul.f32 %v401_v50, %v393_v46 }
 0x2e5   :  { %v406_v54 = vmul.f32 0.7978846, %v404_v52  ;;  %v405_v55 = vadd.f32 %v403_v53, %v393_v46 }
 0x2e7   :  { %3826 = vtanh.f32 %v406_v54  ;;  %v407_v56 = vmul.f32 0.7978846, %v405_v55 }
 0x2e9   :  { %3828 = vtanh.f32 %v407_v56 }
 0x2f1   :  { %v3827_v57 = vpop.eup %3826 }
 0x2f2   :  { %v410_v59 = vadd.f32 1.0, %v3827_v57  ;;  %v4267_v57 = vand.u32 127, %v83_v8 }
 0x2f3   :  { %v3829_v60 = vpop.eup %3828 }
 0x2f4   :  { %v4183_v61 = vmul.f32 %v410_v59, %v396_v58  ;;  %v411_v63 = vadd.f32 1.0, %v3829_v60  ;;  %v418_v58 = vstv %s417_s28  ;;  %vm420_vm11 = vcmp.le.s32.totalorder %v4267_v57, %v4114_v9 }
 0x2f5   :  { %vm419_vm10 = vcmp.lt.s32.totalorder %v4267_v57, %v418_v58  ;;  %v3971_v60 = vmov -1e+09  }
 0x2f6   :  { %v431_v0 = vsel %vm289_vm6, %v4183_v61, 0.0  ;;  %v4187_v1 = vmul.f32 %v411_v63, %v397_v62  ;;  %vm421_vm12 = vmand %vm419_vm10, %vm420_vm11 }
 0x2f7   :  { %432 = vadd.xlane.f32.xlu1 %v431_v0  ;;  %v4276_v62 = vsel %vm421_vm12, 0.0, %v3971_v60 }
 0x2f8   :  { %v434_v2 = vsel %vm289_vm6, %v4187_v1, 0.0 }
 0x2f9   :  { %435 = vadd.xlane.f32.xlu0 %v434_v2 }
 0x384   :  { %v433_v3 = vpop.xlane.xlu1 %432 }
 0x385   :  { %v438_v4 = vmul.f32 0.03125, %v433_v3 }
 0x386   :  { %v436_v6 = vpop.xlane.xlu0 %435 }
 0x387   :  { %v440_v7 = vsub.f32 %v4183_v61, %v438_v4  ;;  %v439_v11 = vmul.f32 0.03125, %v436_v6 }
 0x389   :  { %v441_v12 = vsub.f32 %v4187_v1, %v439_v11  ;;  %v442_v13 = vmul.f32 %v440_v7, %v440_v7 }
 0x38b   :  { %v444_v14 = vsel %vm289_vm6, %v442_v13, 0.0  ;;  %v443_v15 = vmul.f32 %v441_v12, %v441_v12 }
 0x38c   :  { %445 = vadd.xlane.f32.xlu0 %v444_v14 }
 0x38d   :  { %v447_v16 = vsel %vm289_vm6, %v443_v15, 0.0 }
 0x38e   :  { %448 = vadd.xlane.f32.xlu1 %v447_v16 }
 0x419   :  { %v446_v19 = vpop.xlane.xlu0 %445 }
 0x41a   :  { %v450_v20 = vmul.f32 0.03125, %v446_v19 }
 0x41b   :  { %v449_v21 = vpop.xlane.xlu1 %448 }
 0x41c   :  { %v452_v22 = vadd.f32 1e-05, %v450_v20  ;;  %v451_v23 = vmul.f32 0.03125, %v449_v21 }
 0x41e   :  { %3830 = vrsqrt.f32 %v452_v22  ;;  %v453_v24 = vadd.f32 1e-05, %v451_v23 }
 0x420   :  { %3832 = vrsqrt.f32 %v453_v24 }
 0x428   :  { %v3831_v25 = vpop.eup %3830 }
 0x429   :  { %v456_v27 = vmul.f32 %v3831_v25, %v440_v7 }
 0x42a   :  { %v3833_v28 = vpop.eup %3832 }
 0x42b   :  { %v464_v29 = vmul.f32 %v3210_v26, %v456_v27  ;;  %v457_v30 = vmul.f32 %v3833_v28, %v441_v12 }
 0x42d   :  { %v465_v32 = vmul.f32 %v3210_v26, %v457_v30  ;;  %v472_v33 = vadd.f32 %v3211_v31, %v464_v29 }
 0x42f   :  { %v473_v34 = vadd.f32 %v3211_v31, %v465_v32 }
 0x431   :  { %v479_v35 = vpack.c.bf16 %v473_v34, %v472_v33 }
 0x433   :  { %3464 = vmatmul.mubr.msk.bf16.vlgmr.msra.gmra.mrb[4].mxu1 %vm289_vm6, %v479_v35 }
 0x434   :  { %3469 = vmatprep.mubr.msk.bf16.mxu1 %vm3964_vm0, %v3961_v5 }
 0x506   :  { %v535_v37 = vpop.f32.mrb[4].mxu1 }
 0x507   :  { %v536_v38 = vadd.f32 %v3212_v36, %v535_v37  ;;  %v3465_v39 = vpop.f32.mrb[5].mxu1 }
 0x508   :  { %v538_v40 = vpop.f32.mrb[6].mxu1 }
 0x509   :  { %v4215_v41 = vadd.f32 %v3212_v36, %v538_v40  ;;  %546 = vrot.lane.b32.xlu1 %v536_v38, %s3963_s1  ;;  %543 = vrot.lane.b32.xlu0 %v536_v38, %s3968_s25  ;;  %v3466_v10 = vpop.f32.mrb[7].mxu1  ;;  %v4219_v42 = vpack.c.bf16 %v536_v38, %v536_v38 }
 0x50b   :  { %v4295_v36 = vpack.c.bf16 %v4215_v41, %v4215_v41 }
 0x50d   :  { %549 = vrot.lane.b32.xlu1 %v536_v38, %s3969_s3  ;;  %557 = vrot.lane.b32.xlu0 %v4219_v42, %s3970_s27 }
 0x57b   :  { %v547_v43 = vpop.permute.xlu1 %546  ;;  %v544_v44 = vpop.permute.xlu0 %543 }
 0x57c   :  { %v4224_v45 = vpack.c.bf16 %v547_v43, %v547_v43  ;;  %v4226_v46 = vpack.c.bf16 %v544_v44, %v544_v44 }
 0x57e   :  { %607 = vrot.lane.b32.xlu1 %v4226_v46, %s3970_s27  ;;  %656 = vrot.lane.b32.xlu0 %v4224_v45, %s3970_s27 }
 0x57f   :  { %v550_v47 = vpop.permute.xlu1 %549  ;;  %v558_v48 = vpop.permute.xlu0 %557 }
 0x580   :  { %v4232_v49 = vpack.c.bf16 %v550_v47, %v550_v47  ;;  %v564_v50 = vsel %vm559_vm9, %v558_v48, 0 }
 0x581   :  { %3468 = vmatpush3.bf16.xpose.msra.mxu1 %v564_v50 }
 0x582   :  { %705 = vrot.lane.b32.xlu1 %v4232_v49, %s3970_s27  ;;  %1022 = vrot.lane.b32.xlu0 %v4215_v41, %s3963_s1 }
 0x583   :  { %3473 = vmatprep.subr.bf16.mxu1 %v3961_v5 }
 0x586   :  { %1019 = vrot.lane.b32.xlu1 %v4215_v41, %s3968_s25 }
 0x588   :  { %3470 = vmatmul.mubr.msk.bf16.vlgmr.msra.gmra.mrb[8].mxu1 %vm559_vm9, %v4219_v42 }
 0x589   :  { %3475 = vmatprep.mubr.msk.bf16.mxu1 %vm3964_vm0, %v3961_v5 }
 0x58a   :  { %1025 = vrot.lane.b32.xlu1 %v4215_v41, %s3969_s3 }
 0x5f0   :  { %v608_v51 = vpop.permute.xlu1 %607  ;;  %v657_v52 = vpop.permute.xlu0 %656 }
 0x5f1   :  { %v613_v53 = vsel %vm559_vm9, %v608_v51, 0  ;;  %v662_v54 = vsel %vm559_vm9, %v657_v52, 0 }
 0x5f2   :  { %3474 = vmatpush3.bf16.xpose.msra.mxu1 %v613_v53  ;;  %3480 = vmatpush3.bf16.xpose.msra.mxu0 %v662_v54 }
 0x5f3   :  { %3485 = vmatprep.subr.bf16.mxu1 %v3961_v5  ;;  %3491 = vmatprep.subr.bf16.mxu0 %v3961_v5 }
 0x5f4   :  { %v706_v55 = vpop.permute.xlu1 %705  ;;  %v1023_v30 = vpop.permute.xlu0 %1022 }
 0x5f5   :  { %v711_v56 = vsel %vm559_vm9, %v706_v55, 0  ;;  %v4307_v54 = vpack.c.bf16 %v1023_v30, %v1023_v30 }
 0x5f8   :  { %v1020_v37 = vpop.permute.xlu1 %1019 }
 0x5f9   :  { %3476 = vmatmul.mubr.msk.bf16.vlgmr.msra.gmra.mrb[12].mxu1 %vm559_vm9, %v4226_v46  ;;  %3482 = vmatmul.mubr.msk.bf16.vlgmr.msra.gmra.mrb[8].mxu0 %vm559_vm9, %v4224_v45 }
 0x5fa   :  { %3486 = vmatpush3.bf16.xpose.msra.mxu1 %v711_v56  ;;  %3487 = vmatprep.mubr.msk.bf16.mxu1 %vm3964_vm0, %v3961_v5 }
 0x5fb   :  { %3497 = vmatprep.subr.bf16.mxu1 %v3961_v5  ;;  %3493 = vmatprep.mubr.msk.bf16.mxu0 %vm3964_vm0, %v3961_v5 }
 0x5fc   :  { %v1026_v38 = vpop.permute.xlu1 %1025 }
 0x601   :  { %3488 = vmatmul.mubr.msk.bf16.vlgmr.msra.gmra.mrb[16].mxu1 %vm559_vm9, %v4232_v49 }
 0x602   :  { %3499 = vmatprep.mubr.msk.bf16.mxu1 %vm3964_vm0, %v3961_v5 }
 0x65b   :  { %v600_v59 = vpop.f32.mrb[8].mxu1 }
 0x65c   :  { %v753_v63 = vmul.f32 0.35355338, %v600_v59  ;;  %v3471_v0 = vpop.f32.mrb[9].mxu1 }
 0x65d   :  { %v603_v2 = vpop.f32.mrb[10].mxu1 }
 0x65e   :  { %v3472_v8 = vpop.f32.mrb[11].mxu1  ;;  %v757_v3 = vadd.f32 %v753_v63, %v4276_v62 }
 0x660   :  { %v761_v4 = vsel %vm559_vm9, %v757_v3, -inf }
 0x661   :  { %762 = vmax.xlane.f32.xlu0 %v761_v4  ;;  %v4317_v4 = vpack.c.bf16 %v1020_v37, %v1020_v37 }
 0x6cc   :  { %v649_v6 = vpop.f32.mrb[12].mxu1  ;;  %v698_v7 = vpop.f32.mrb[8].mxu0 }
 0x6cd   :  { %v754_v11 = vmul.f32 0.35355338, %v649_v6  ;;  %v755_v12 = vmul.f32 0.35355338, %v698_v7  ;;  %v3477_v13 = vpop.f32.mrb[13].mxu1  ;;  %v3483_v14 = vpop.f32.mrb[9].mxu0  ;;  %v4321_v6 = vpack.c.bf16 %v1026_v38, %v1026_v38 }
 0x6ce   :  { %v652_v15 = vpop.f32.mrb[14].mxu1  ;;  %v701_v16 = vpop.f32.mrb[10].mxu0 }
 0x6cf   :  { %v3478_v17 = vpop.f32.mrb[15].mxu1  ;;  %v3484_v18 = vpop.f32.mrb[11].mxu0  ;;  %v758_v19 = vadd.f32 %v754_v11, %v4276_v62  ;;  %v759_v20 = vadd.f32 %v755_v12, %v4276_v62 }
 0x6d1   :  { %v764_v21 = vsel %vm559_vm9, %v758_v19, -inf  ;;  %v767_v22 = vsel %vm559_vm9, %v759_v20, -inf }
 0x6d2   :  { %765 = vmax.xlane.f32.xlu1 %v764_v21  ;;  %768 = vmax.xlane.f32.xlu0 %v767_v22 }
 0x6d4   :  { %v747_v23 = vpop.f32.mrb[16].mxu1 }
 0x6d5   :  { %v756_v24 = vmul.f32 0.35355338, %v747_v23  ;;  %v3489_v25 = vpop.f32.mrb[17].mxu1 }
 0x6d6   :  { %v750_v26 = vpop.f32.mrb[18].mxu1 }
 0x6d7   :  { %v3490_v27 = vpop.f32.mrb[19].mxu1  ;;  %v760_v28 = vadd.f32 %v756_v24, %v4276_v62 }
 0x6d9   :  { %v770_v29 = vsel %vm559_vm9, %v760_v28, -inf }
 0x6da   :  { %771 = vmax.xlane.f32.xlu0 %v770_v29 }
 0x6e3   :  { %858 = vrot.lane.b32.xlu1 %v4226_v46, %s3966_s26 }
 0x6e7   :  { %906 = vrot.lane.b32.xlu1 %v4224_v45, %s3966_s26 }
 0x6ee   :  { %v763_v31 = vpop.xlane.xlu0 %762 }
 0x6ef   :  { %v773_v32 = vsub.f32 %v757_v3, %v763_v31 }
 0x6f0   :  { %809 = vrot.lane.b32.xlu0 %v4219_v42, %s3966_s26 }
 0x6f1   :  { %v777_v33 = vmul.f32 1.442695, %v773_v32 }
 0x6f3   :  { %3834 = vpow2.f32 %v777_v33 }
 0x6fd   :  { %v3835_v34 = vpop.eup %3834 }
 0x6fe   :  { %v785_v35 = vsel %vm559_vm9, %v3835_v34, 0.0 }
 0x70b   :  { %786 = vadd.xlane.f32.xlu1 %v785_v35 }
 0x71c   :  { %1033 = vrot.lane.b32.xlu1 %v4295_v36, %s3970_s27 }
 0x75f   :  { %v766_v39 = vpop.xlane.xlu1 %765  ;;  %v769_v42 = vpop.xlane.xlu0 %768 }
 0x760   :  { %v774_v40 = vsub.f32 %v758_v19, %v766_v39  ;;  %v775_v55 = vsub.f32 %v759_v20, %v769_v42 }
 0x762   :  { %v779_v10 = vmul.f32 1.442695, %v774_v40  ;;  %v781_v56 = vmul.f32 1.442695, %v775_v55 }
 0x763   :  { %v859_v43 = vpop.permute.xlu1 %858 }
 0x764   :  { %3836 = vpow2.f32 %v779_v10  ;;  %v864_v44 = vsel %vm814_vm13, %v859_v43, 0 }
 0x765   :  { %3498 = vmatpush3.bf16.msra.mxu1 %v864_v44 }
 0x766   :  { %3509 = vmatprep.subr.bf16.mxu1 %v3961_v5 }
 0x767   :  { %v772_v45 = vpop.xlane.xlu0 %771  ;;  %v907_v58 = vpop.permute.xlu1 %906 }
 0x768   :  { %v776_v41 = vsub.f32 %v760_v28, %v772_v45  ;;  %v425_v45 = vstv %s3209_s5 }
 0x769   :  { %vm426_vm14 = vcmp.lt.s32.totalorder %v4267_v57, %v425_v45 }
 0x76a   :  { %v783_v46 = vmul.f32 1.442695, %v776_v41  ;;  %vm427_vm15 = vmand %vm426_vm14, %vm420_vm11 }
 0x76b   :  { %v810_v47 = vpop.permute.xlu0 %809 }
 0x76c   :  { %3838 = vpow2.f32 %v783_v46  ;;  %v816_v48 = vsel %vm814_vm13, %v810_v47, 0  ;;  %v4371_v46 = vsel %vm427_vm15, 0.0, %v3971_v60 }
 0x76d   :  { %3492 = vmatpush3.bf16.msra.mxu0 %v816_v48  ;;  %3840 = vpow2.f32 %v781_v56 }
 0x76e   :  { %v3837_v50 = vpop.eup %3836  ;;  %3503 = vmatprep.subr.bf16.mxu0 %v3961_v5 }
 0x76f   :  { %v788_v51 = vsel %vm559_vm9, %v3837_v50, 0.0 }
 0x770   :  { %789 = vadd.xlane.f32.xlu0 %v788_v51 }
 0x776   :  { %v3839_v52 = vpop.eup %3838 }
 0x777   :  { %v794_v53 = vsel %vm559_vm9, %v3839_v52, 0.0  ;;  %v3841_v63 = vpop.eup %3840 }
 0x778   :  { %795 = vadd.xlane.f32.xlu1 %v794_v53  ;;  %v791_v8 = vsel %vm559_vm9, %v3841_v63, 0.0 }
 0x786   :  { %954 = vrot.lane.b32.xlu0 %v4232_v49, %s3966_s26  ;;  %v912_v49 = vsel %vm814_vm13, %v907_v58, 0 }
 0x789   :  { %1131 = vrot.lane.b32.xlu1 %v4307_v54, %s3970_s27 }
 0x798   :  { %v787_v59 = vpop.xlane.xlu1 %786 }
 0x799   :  { %3842 = vrcp.f32 %v787_v59 }
 0x79c   :  { %v1034_v11 = vpop.permute.xlu1 %1033 }
 0x79d   :  { %v1039_v29 = vsel %vm559_vm9, %v1034_v11, 0 }
 0x7a3   :  { %v3843_v0 = vpop.eup %3842 }
 0x7a4   :  { %v801_v2 = vmul.f32 %v3843_v0, %v3835_v34 }
 0x7a5   :  { %792 = vadd.xlane.f32.xlu0 %v791_v8 }
 0x7a6   :  { %v805_v3 = vpack.c.bf16 %v801_v2, %v801_v2 }
 0x7a8   :  { %3494 = vmatmul.mubr.msk.bf16.vlgmr.msra.gmra.mrb[12].mxu0 %vm559_vm9, %v805_v3 }
 0x7a9   :  { %3504 = vmatpush3.bf16.msra.mxu0 %v912_v49  ;;  %3505 = vmatprep.mubr.msk.bf16.mxu0 %vm3964_vm0, %v3961_v5 }
 0x7aa   :  { %3515 = vmatprep.subr.bf16.mxu0 %v3961_v5 }
 0x7bb   :  { %1082 = vrot.lane.b32.xlu0 %v4317_v4, %s3970_s27 }
 0x7bf   :  { %1180 = vrot.lane.b32.xlu0 %v4321_v6, %s3970_s27 }
 0x7fd   :  { %v790_v7 = vpop.xlane.xlu0 %789 }
 0x7fe   :  { %3844 = vrcp.f32 %v790_v7 }
 0x801   :  { %v955_v15 = vpop.permute.xlu0 %954 }
 0x802   :  { %v960_v17 = vsel %vm814_vm13, %v955_v15, 0 }
 0x805   :  { %v796_v12 = vpop.xlane.xlu1 %795 }
 0x806   :  { %3846 = vrcp.f32 %v796_v12 }
 0x808   :  { %v3845_v13 = vpop.eup %3844 }
 0x809   :  { %v802_v14 = vmul.f32 %v3845_v13, %v3837_v50  ;;  %v1132_v30 = vpop.permute.xlu1 %1131 }
 0x80a   :  { %v1137_v31 = vsel %vm559_vm9, %v1132_v30, 0 }
 0x80b   :  { %v806_v16 = vpack.c.bf16 %v802_v14, %v802_v14 }
 0x80d   :  { %3500 = vmatmul.mubr.msk.bf16.vlgmr.msra.gmra.mrb[20].mxu1 %vm559_vm9, %v806_v16 }
 0x80e   :  { %3510 = vmatpush3.bf16.msra.mxu1 %v960_v17  ;;  %3511 = vmatprep.mubr.msk.bf16.mxu1 %vm3964_vm0, %v3961_v5 }
 0x80f   :  { %3521 = vmatprep.subr.bf16.mxu1 %v3961_v5 }
 0x810   :  { %v3847_v18 = vpop.eup %3846 }
 0x811   :  { %v804_v19 = vmul.f32 %v3847_v18, %v3839_v52 }
 0x813   :  { %v808_v20 = vpack.c.bf16 %v804_v19, %v804_v19 }
 0x815   :  { %3512 = vmatmul.mubr.msk.bf16.vlgmr.msra.gmra.mrb[24].mxu1 %vm559_vm9, %v808_v20 }
 0x816   :  { %3523 = vmatprep.mubr.msk.bf16.mxu1 %vm3964_vm0, %v3961_v5 }
 0x832   :  { %v793_v21 = vpop.xlane.xlu0 %792 }
 0x833   :  { %3848 = vrcp.f32 %v793_v21 }
 0x836   :  { %v1083_v22 = vpop.permute.xlu0 %1082 }
 0x837   :  { %v1088_v23 = vsel %vm559_vm9, %v1083_v22, 0 }
 0x838   :  { %3522 = vmatpush3.bf16.xpose.msra.mxu1 %v1088_v23 }
 0x839   :  { %3533 = vmatprep.subr.bf16.mxu1 %v3961_v5 }
 0x83a   :  { %v1181_v24 = vpop.permute.xlu0 %1180 }
 0x83b   :  { %v1186_v27 = vsel %vm559_vm9, %v1181_v24, 0 }
 0x83d   :  { %v3849_v25 = vpop.eup %3848 }
 0x83e   :  { %v803_v26 = vmul.f32 %v3849_v25, %v3841_v63 }
 0x83f   :  { %3524 = vmatmul.mubr.msk.bf16.vlgmr.msra.gmra.mrb[28].mxu1 %vm559_vm9, %v4317_v4 }
 0x840   :  { %3534 = vmatpush3.bf16.xpose.msra.mxu1 %v1186_v27  ;;  %v807_v28 = vpack.c.bf16 %v803_v26, %v803_v26  ;;  %3535 = vmatprep.mubr.msk.bf16.mxu1 %vm3964_vm0, %v3961_v5 }
 0x841   :  { %3545 = vmatprep.subr.bf16.mxu1 %v3961_v5 }
 0x842   :  { %3506 = vmatmul.mubr.msk.bf16.vlgmr.msra.gmra.mrb[16].mxu0 %vm559_vm9, %v807_v28 }
 0x843   :  { %3516 = vmatpush3.bf16.xpose.msra.mxu0 %v1039_v29  ;;  %3517 = vmatprep.mubr.msk.bf16.mxu0 %vm3964_vm0, %v3961_v5 }
 0x844   :  { %3527 = vmatprep.subr.bf16.mxu0 %v3961_v5 }
 0x847   :  { %3536 = vmatmul.mubr.msk.bf16.vlgmr.msra.gmra.mrb[32].mxu1 %vm559_vm9, %v4321_v6 }
 0x848   :  { %3547 = vmatprep.mubr.msk.bf16.mxu1 %vm3964_vm0, %v3961_v5 }
 0x84a   :  { %3518 = vmatmul.mubr.msk.bf16.vlgmr.msra.gmra.mrb[20].mxu0 %vm559_vm9, %v4295_v36 }
 0x84b   :  { %3528 = vmatpush3.bf16.xpose.msra.mxu0 %v1137_v31  ;;  %3529 = vmatprep.mubr.msk.bf16.mxu0 %vm3964_vm0, %v3961_v5 }
 0x84c   :  { %3539 = vmatprep.subr.bf16.mxu0 %v3961_v5 }
 0x852   :  { %3530 = vmatmul.mubr.msk.bf16.vlgmr.msra.gmra.mrb[24].mxu0 %vm559_vm9, %v4307_v54 }
 0x853   :  { %3541 = vmatprep.mubr.msk.bf16.mxu0 %vm3964_vm0, %v3961_v5 }
 0x87b   :  { %v4360_v32 = vpop.f32.mrb[12].mxu0 }
 0x87c   :  { %v3495_v33 = vpop.f32.mrb[13].mxu0 }
 0x87d   :  { %v855_v34 = vpop.f32.mrb[14].mxu0 }
 0x87e   :  { %v3496_v35 = vpop.f32.mrb[15].mxu0 }
 0x8e0   :  { %v4362_v37 = vpop.f32.mrb[20].mxu1 }
 0x8e1   :  { %v3501_v38 = vpop.f32.mrb[21].mxu1 }
 0x8e2   :  { %v903_v39 = vpop.f32.mrb[22].mxu1 }
 0x8e3   :  { %v3502_v40 = vpop.f32.mrb[23].mxu1 }
 0x8e8   :  { %v4364_v10 = vpop.f32.mrb[24].mxu1 }
 0x8e9   :  { %v3513_v42 = vpop.f32.mrb[25].mxu1 }
 0x8ea   :  { %v999_v43 = vpop.f32.mrb[26].mxu1 }
 0x8eb   :  { %v3514_v44 = vpop.f32.mrb[27].mxu1 }
 0x912   :  { %v1124_v41 = vpop.f32.mrb[28].mxu1 }
 0x913   :  { %v1229_v47 = vmul.f32 0.35355338, %v1124_v41  ;;  %v3525_v48 = vpop.f32.mrb[29].mxu1 }
 0x914   :  { %v1127_v50 = vpop.f32.mrb[30].mxu1 }
 0x915   :  { %v4373_v51 = vpop.f32.mrb[16].mxu0  ;;  %v3526_v52 = vpop.f32.mrb[31].mxu1  ;;  %v1233_v53 = vadd.f32 %v1229_v47, %v4371_v46 }
 0x916   :  { %v3507_v55 = vpop.f32.mrb[17].mxu0 }
 0x917   :  { %v951_v56 = vpop.f32.mrb[18].mxu0  ;;  %v1239_v58 = vsel %vm559_vm9, %v1233_v53, -inf }
 0x918   :  { %1240 = vmax.xlane.f32.xlu0 %v1239_v58  ;;  %v3508_v59 = vpop.f32.mrb[19].mxu0 }
 0x91a   :  { %v1222_v9 = vpop.f32.mrb[32].mxu1 }
 0x91b   :  { %v3537_v57 = vpop.f32.mrb[33].mxu1  ;;  %v1231_v2 = vmul.f32 0.35355338, %v1222_v9 }
 0x91c   :  { %v1225_v63 = vpop.f32.mrb[34].mxu1 }
 0x91d   :  { %v1075_v0 = vpop.f32.mrb[20].mxu0  ;;  %v3538_v60 = vpop.f32.mrb[35].mxu1  ;;  %v1235_v13 = vadd.f32 %v1231_v2, %v4371_v46 }
 0x91e   :  { %v1228_v8 = vmul.f32 0.35355338, %v1075_v0  ;;  %v3519_v3 = vpop.f32.mrb[21].mxu0 }
 0x91f   :  { %v1078_v49 = vpop.f32.mrb[22].mxu0  ;;  %v1245_v17 = vsel %vm559_vm9, %v1235_v13, -inf }
 0x920   :  { %v3520_v7 = vpop.f32.mrb[23].mxu0  ;;  %v1232_v11 = vadd.f32 %v1228_v8, %v4371_v46 }
 0x922   :  { %v1236_v12 = vsel %vm559_vm9, %v1232_v11, -inf }
 0x923   :  { %1237 = vmax.xlane.f32.xlu1 %v1236_v12 }
 0x925   :  { %v1173_v14 = vpop.f32.mrb[24].mxu0 }
 0x926   :  { %v1230_v15 = vmul.f32 0.35355338, %v1173_v14  ;;  %v3531_v16 = vpop.f32.mrb[25].mxu0 }
 0x927   :  { %1246 = vmax.xlane.f32.xlu1 %v1245_v17  ;;  %v1176_v18 = vpop.f32.mrb[26].mxu0  ;;  %v3800_v16 = vld [vmem:[%s4827_s10] sm:$0xff]  }
 0x928   :  { %v3532_v19 = vpop.f32.mrb[27].mxu0  ;;  %v1234_v20 = vadd.f32 %v1230_v15, %v4371_v46  ;;  %v3801_v18 = vld [vmem:[%s4827_s10 + $0x8] sm:$0xff]  }
 0x92a   :  { %v1242_v21 = vsel %vm559_vm9, %v1234_v20, -inf }
 0x92b   :  { %1243 = vmax.xlane.f32.xlu0 %v1242_v21 }
 0x938   :  { %1332 = vrot.lane.b32.xlu1 %v4317_v4, %s3966_s26 }
 0x941   :  { %1284 = vrot.lane.b32.xlu0 %v4295_v36, %s3966_s26 }
 0x9a5   :  { %v1241_v22 = vpop.xlane.xlu0 %1240 }
 0x9a6   :  { %v1249_v23 = vsub.f32 %v1233_v53, %v1241_v22 }
 0x9a8   :  { %v1254_v24 = vmul.f32 1.442695, %v1249_v23 }
 0x9aa   :  { %3850 = vpow2.f32 %v1254_v24 }
 0x9b0   :  { %v1238_v25 = vpop.xlane.xlu1 %1237 }
 0x9b1   :  { %v1248_v26 = vsub.f32 %v1232_v11, %v1238_v25 }
 0x9b3   :  { %v1252_v27 = vmul.f32 1.442695, %v1248_v26 }
 0x9b4   :  { %v3851_v28 = vpop.eup %3850  ;;  %v1247_v29 = vpop.xlane.xlu1 %1246 }
 0x9b5   :  { %3852 = vpow2.f32 %v1252_v27  ;;  %v1251_v30 = vsub.f32 %v1235_v13, %v1247_v29  ;;  %v1263_v31 = vsel %vm559_vm9, %v3851_v28, 0.0 }
 0x9b6   :  { %1264 = vadd.xlane.f32.xlu1 %v1263_v31 }
 0x9b7   :  { %v1258_v33 = vmul.f32 1.442695, %v1251_v30 }
 0x9b8   :  { %v1333_v34 = vpop.permute.xlu1 %1332  ;;  %v1244_v4 = vpop.xlane.xlu0 %1243 }
 0x9b9   :  { %3854 = vpow2.f32 %v1258_v33  ;;  %v1338_v36 = vsel %vm814_vm13, %v1333_v34, 0  ;;  %v1250_v35 = vsub.f32 %v1234_v20, %v1244_v4 }
 0x9ba   :  { %3546 = vmatpush3.bf16.msra.mxu1 %v1338_v36 }
 0x9bb   :  { %v1256_v38 = vmul.f32 1.442695, %v1250_v35  ;;  %3557 = vmatprep.subr.bf16.mxu1 %v3961_v5 }
 0x9bc   :  { %v1285_v39 = vpop.permute.xlu0 %1284 }
 0x9bd   :  { %3856 = vpow2.f32 %v1256_v38  ;;  %v1290_v40 = vsel %vm814_vm13, %v1285_v39, 0 }
 0x9be   :  { %3540 = vmatpush3.bf16.msra.mxu0 %v1290_v40 }
 0x9bf   :  { %v3853_v42 = vpop.eup %3852  ;;  %3551 = vmatprep.subr.bf16.mxu0 %v3961_v5 }
 0x9c0   :  { %v1260_v43 = vsel %vm559_vm9, %v3853_v42, 0.0 }
 0x9c1   :  { %1261 = vadd.xlane.f32.xlu0 %v1260_v43 }
 0x9c3   :  { %v3855_v44 = vpop.eup %3854 }
 0x9c4   :  { %v1269_v45 = vsel %vm559_vm9, %v3855_v44, 0.0 }
 0x9c5   :  { %1270 = vadd.xlane.f32.xlu1 %v1269_v45 }
 0x9c7   :  { %v3857_v41 = vpop.eup %3856 }
 0x9c8   :  { %v1266_v47 = vsel %vm559_vm9, %v3857_v41, 0.0 }
 0x9c9   :  { %1267 = vadd.xlane.f32.xlu0 %v1266_v47 }
 0x9d6   :  { %1380 = vrot.lane.b32.xlu1 %v4307_v54, %s3966_s26 }
 0x9df   :  { %1428 = vrot.lane.b32.xlu0 %v4321_v6, %s3966_s26 }
 0xa43   :  { %v1265_v48 = vpop.xlane.xlu1 %1264 }
 0xa44   :  { %3858 = vrcp.f32 %v1265_v48 }
 0xa4e   :  { %v3859_v50 = vpop.eup %3858  ;;  %v1262_v52 = vpop.xlane.xlu0 %1261 }
 0xa4f   :  { %v1277_v53 = vmul.f32 %v3859_v50, %v3851_v28  ;;  %3860 = vrcp.f32 %v1262_v52 }
 0xa51   :  { %v1281_v55 = vpack.c.bf16 %v1277_v53, %v1277_v53 }
 0xa52   :  { %v1271_v56 = vpop.xlane.xlu1 %1270 }
 0xa53   :  { %3862 = vrcp.f32 %v1271_v56  ;;  %3548 = vmatmul.mubr.msk.bf16.vlgmr.msra.gmra.mrb[36].mxu1 %vm559_vm9, %v1281_v55 }
 0xa54   :  { %3559 = vmatprep.mubr.msk.bf16.mxu1 %vm3964_vm0, %v3961_v5 }
 0xa56   :  { %v1268_v58 = vpop.xlane.xlu0 %1267  ;;  %v1381_v6 = vpop.permute.xlu1 %1380 }
 0xa57   :  { %3864 = vrcp.f32 %v1268_v58  ;;  %v1386_v2 = vsel %vm814_vm13, %v1381_v6, 0 }
 0xa59   :  { %v3861_v54 = vpop.eup %3860 }
 0xa5a   :  { %v1276_v59 = vmul.f32 %v3861_v54, %v3853_v42  ;;  %v1429_v9 = vpop.permute.xlu0 %1428 }
 0xa5b   :  { %v1434_v57 = vsel %vm814_vm13, %v1429_v9, 0 }
 0xa5c   :  { %3558 = vmatpush3.bf16.msra.mxu1 %v1434_v57  ;;  %v1280_v63 = vpack.c.bf16 %v1276_v59, %v1276_v59 }
 0xa5d   :  { %v3863_v0 = vpop.eup %3862  ;;  %3571 = vmatprep.subr.bf16.mxu1 %v3961_v5 }
 0xa5e   :  { %v1279_v60 = vmul.f32 %v3863_v0, %v3855_v44  ;;  %3542 = vmatmul.mubr.msk.bf16.vlgmr.msra.gmra.mrb[28].mxu0 %vm559_vm9, %v1280_v63 }
 0xa5f   :  { %3552 = vmatpush3.bf16.msra.mxu0 %v1386_v2  ;;  %3553 = vmatprep.mubr.msk.bf16.mxu0 %vm3964_vm0, %v3961_v5 }
 0xa60   :  { %v1283_v8 = vpack.c.bf16 %v1279_v60, %v1279_v60  ;;  %3563 = vmatprep.subr.bf16.mxu0 %v3961_v5 }
 0xa61   :  { %v3865_v3 = vpop.eup %3864 }
 0xa62   :  { %v1278_v49 = vmul.f32 %v3865_v3, %v3857_v41  ;;  %3560 = vmatmul.mubr.msk.bf16.vlgmr.msra.gmra.mrb[40].mxu1 %vm559_vm9, %v1283_v8  ;;  %v3802_v3 = vld [vmem:[%s4831_s14] sm:$0xff]  }
 0xa63   :  { %3575 = vmatprep.mubr.msk.bf16.mxu1 %vm3964_vm0, %v3961_v5  ;;  %3572 = vmatpush3.bf16.msra.mxu1 %v3802_v3 }
 0xa64   :  { %v1282_v7 = vpack.c.bf16 %v1278_v49, %v1278_v49  ;;  %v3803_v49 = vld [vmem:[%s4831_s14 + $0x8] sm:$0xff]   ;;  %3573 = vmatprep.subr.bf16.mxu1 %v3961_v5 }
 0xa66   :  { %3554 = vmatmul.mubr.msk.bf16.vlgmr.msra.gmra.mrb[32].mxu0 %vm559_vm9, %v1282_v7 }
 0xa67   :  { %3567 = vmatprep.mubr.msk.bf16.mxu0 %vm3964_vm0, %v3961_v5  ;;  %3564 = vmatpush3.bf16.msra.mxu0 %v3800_v16 }
 0xa68   :  { %3565 = vmatprep.subr.bf16.mxu0 %v3961_v5  ;;  %3574 = vmatpush3.bf16.msra.mxu1 %v3803_v49 }
 0xa69   :  { %3591 = vmatprep.subr.bf16.mxu1 %v3961_v5 }
 0xa6b   :  { %3566 = vmatpush3.bf16.msra.mxu0 %v3801_v18  ;;  %v3236_v18 = vld [vmem:[%s4829_s12] ss:$0 sm:$0xff] }
 0xa6c   :  { %3579 = vmatprep.subr.bf16.mxu0 %v3961_v5 }
 0xb26   :  { %v1374_v11 = vpop.f32.mrb[36].mxu1 }
 0xb27   :  { %v3759_v12 = vpack.i.bf16 %v1374_v11, %v4362_v37  ;;  %v3549_v13 = vpop.f32.mrb[37].mxu1 }
 0xb28   :  { %v1377_v14 = vpop.f32.mrb[38].mxu1 }
 0xb29   :  { %3760 = vrot.lane.b32.xlu1 %v3759_v12, %s3972_s4  ;;  %v3550_v15 = vpop.f32.mrb[39].mxu1 }
 0xb31   :  { %v1326_v17 = vpop.f32.mrb[28].mxu0 }
 0xb32   :  { %v3543_v19 = vpop.f32.mrb[29].mxu0 }
 0xb33   :  { %v1329_v37 = vpop.f32.mrb[30].mxu0 }
 0xb34   :  { %v3544_v20 = vpop.f32.mrb[31].mxu0 }
 0xb35   :  { %v1470_v21 = vpop.f32.mrb[40].mxu1 }
 0xb36   :  { %v3769_v22 = vpack.i.bf16 %v1470_v21, %v4364_v10  ;;  %v3561_v23 = vpop.f32.mrb[41].mxu1  ;;  %v3237_v21 = vld [vmem:[%s4853_s23] ss:$0 sm:$0xff] }
 0xb37   :  { %v1473_v24 = vpop.f32.mrb[42].mxu1 }
 0xb38   :  { %3770 = vrot.lane.b32.xlu1 %v3769_v22, %s3973_s21  ;;  %v3562_v25 = vpop.f32.mrb[43].mxu1 }
 0xb39   :  { %v1422_v26 = vpop.f32.mrb[32].mxu0 }
 0xb3a   :  { %v3764_v27 = vpack.i.bf16 %v1422_v26, %v4373_v51  ;;  %v3555_v28 = vpop.f32.mrb[33].mxu0  ;;  %v3804_v26 = vld [vmem:[%s4833_s16] sm:$0xff]  }
 0xb3b   :  { %v1425_v29 = vpop.f32.mrb[34].mxu0  ;;  %v3806_v28 = vld [vmem:[%s4833_s16 + $0x10] sm:$0xff]  }
 0xb3c   :  { %3765 = vrot.lane.b32.xlu0 %v3764_v27, %s3965_s24  ;;  %v3556_v30 = vpop.f32.mrb[35].mxu0  ;;  %v3805_v27 = vld [vmem:[%s4833_s16 + $0x8] sm:$0xff]   ;;  %v3807_v29 = vld [vmem:[%s4833_s16 + $0x18] sm:$0xff]  }
 0xb3d   :  { %v3238_v30 = vld [vmem:[%s4832_s15] ss:$0 sm:$0xff] }
 0xb9b   :  { %v3761_v31 = vpop.permute.xlu1 %3760 }
 0xb9c   :  { %v3763_v33 = vunpack.i.h.bf16 %v3761_v31  ;;  %v3762_v34 = vunpack.i.l.bf16 %v3761_v31 }
 0xb9e   :  { %v1014_v38 = vsel %vm559_vm9, %v4360_v32, %v3762_v34  ;;  %v1488_v39 = vsel %vm559_vm9, %v1326_v17, %v3763_v33  ;;  %v3232_v32 = vld [vmem:[%s4828_s11] ss:$0 sm:$0xff] }
 0xbaa   :  { %v3771_v4 = vpop.permute.xlu1 %3770 }
 0xbab   :  { %v3773_v40 = vunpack.i.h.bf16 %v3771_v4  ;;  %v3772_v51 = vunpack.i.l.bf16 %v3771_v4 }
 0xbae   :  { %v3766_v36 = vpop.permute.xlu0 %3765 }
 0xbaf   :  { %v3768_v10 = vunpack.i.h.bf16 %v3766_v36  ;;  %v3767_v35 = vunpack.i.l.bf16 %v3766_v36 }
 0xbb1   :  { %v1489_v42 = vsel %vm103_vm5, %v1488_v39, %v3768_v10  ;;  %v1015_v43 = vsel %vm103_vm5, %v1014_v38, %v3767_v35 }
 0xbb2   :  { %v1490_v44 = vsel %vm1016_vm1, %v1489_v42, %v3773_v40  ;;  %v1017_v45 = vsel %vm1016_vm1, %v1015_v43, %v3772_v51 }
 0xbb3   :  { %v1496_v41 = vpack.c.bf16 %v1490_v44, %v1017_v45 }
 0xbb5   :  { %3568 = vmatmul.mubr.msk.bf16.vlgmr.msra.gmra.mrb[36].mxu0 %vm289_vm6, %v1496_v41 }
 0xbb6   :  { %3587 = vmatprep.mubr.msk.bf16.mxu0 %vm3964_vm0, %v3961_v5  ;;  %3580 = vmatpush3.bf16.msra.mxu0 %v3804_v26 }
 0xbb7   :  { %3581 = vmatprep.subr.bf16.mxu0 %v3961_v5 }
 0xbba   :  { %3582 = vmatpush3.bf16.msra.mxu0 %v3805_v27 }
 0xbbb   :  { %3583 = vmatprep.subr.bf16.mxu0 %v3961_v5 }
 0xbbe   :  { %3584 = vmatpush3.bf16.msra.mxu0 %v3806_v28 }
 0xbbf   :  { %3585 = vmatprep.subr.bf16.mxu0 %v3961_v5 }
 0xbc2   :  { %3586 = vmatpush3.bf16.msra.mxu0 %v3807_v29 }
 0xbc3   :  { %3605 = vmatprep.subr.bf16.mxu0 %v3961_v5 }
 0xc88   :  { %v1552_v47 = vpop.f32.mrb[36].mxu0 }
 0xc89   :  { %v1553_v48 = vadd.f32 %v3232_v32, %v1552_v47  ;;  %v3569_v50 = vpop.f32.mrb[37].mxu0 }
 0xc8a   :  { %v1555_v52 = vpop.f32.mrb[38].mxu0 }
 0xc8b   :  { %v4443_v53 = vadd.f32 %v1553_v48, %v4183_v61  ;;  %v1556_v55 = vadd.f32 %v3232_v32, %v1555_v52  ;;  %v3570_v56 = vpop.f32.mrb[39].mxu0 }
 0xc8d   :  { %v4446_v58 = vadd.f32 %v1556_v55, %v4187_v1  ;;  %v1563_v54 = vsel %vm289_vm6, %v4443_v53, 0.0 }
 0xc8e   :  { %1564 = vadd.xlane.f32.xlu0 %v1563_v54 }
 0xc8f   :  { %v1566_v59 = vsel %vm289_vm6, %v4446_v58, 0.0 }
 0xc90   :  { %1567 = vadd.xlane.f32.xlu1 %v1566_v59 }
 0xd1b   :  { %v1565_v9 = vpop.xlane.xlu0 %1564 }
 0xd1c   :  { %v1569_v6 = vmul.f32 0.03125, %v1565_v9  ;;  %v3242_v9 = vld [vmem:[%s4834_s17] ss:$0 sm:$0xff] }
 0xd1d   :  { %v1568_v57 = vpop.xlane.xlu1 %1567 }
 0xd1e   :  { %v1571_v63 = vsub.f32 %v4443_v53, %v1569_v6  ;;  %v1570_v61 = vmul.f32 0.03125, %v1568_v57 }
 0xd20   :  { %v1572_v0 = vsub.f32 %v4446_v58, %v1570_v61  ;;  %v1573_v60 = vmul.f32 %v1571_v63, %v1571_v63 }
 0xd22   :  { %v1575_v1 = vsel %vm289_vm6, %v1573_v60, 0.0  ;;  %v1574_v2 = vmul.f32 %v1572_v0, %v1572_v0 }
 0xd23   :  { %1576 = vadd.xlane.f32.xlu0 %v1575_v1 }
 0xd24   :  { %v1578_v8 = vsel %vm289_vm6, %v1574_v2, 0.0 }
 0xd27   :  { %1579 = vadd.xlane.f32.xlu0 %v1578_v8 }
 0xdb0   :  { %v1577_v7 = vpop.xlane.xlu0 %1576 }
 0xdb1   :  { %v1581_v11 = vmul.f32 0.03125, %v1577_v7 }
 0xdb3   :  { %v1583_v12 = vadd.f32 1e-05, %v1581_v11 }
 0xdb4   :  { %v1580_v13 = vpop.xlane.xlu0 %1579 }
 0xdb5   :  { %3866 = vrsqrt.f32 %v1583_v12  ;;  %v1582_v14 = vmul.f32 0.03125, %v1580_v13 }
 0xdb7   :  { %v1584_v15 = vadd.f32 1e-05, %v1582_v14 }
 0xdb9   :  { %3868 = vrsqrt.f32 %v1584_v15 }
 0xdbf   :  { %v3867_v16 = vpop.eup %3866 }
 0xdc0   :  { %v1587_v17 = vmul.f32 %v3867_v16, %v1571_v63 }
 0xdc2   :  { %v1595_v37 = vmul.f32 %v3236_v18, %v1587_v17  ;;  %v3808_v17 = vld [vmem:[%s4825_s8 + $0x10] sm:$0xff]  }
 0xdc3   :  { %v3869_v19 = vpop.eup %3868 }
 0xdc4   :  { %v1588_v20 = vmul.f32 %v3869_v19, %v1572_v0  ;;  %v1603_v23 = vadd.f32 %v3237_v21, %v1595_v37 }
 0xdc6   :  { %v1596_v22 = vmul.f32 %v3236_v18, %v1588_v20  ;;  %v3809_v18 = vld [vmem:[%s4825_s8 + $0x18] sm:$0xff]  }
 0xdc8   :  { %v1604_v24 = vadd.f32 %v3237_v21, %v1596_v22 }
 0xdca   :  { %v1610_v25 = vpack.c.bf16 %v1604_v24, %v1603_v23 }
 0xdcc   :  { %3576 = vmatmul.mubr.msk.bf16.vlgmr.msra.gmra.mrb[44].mxu1 %vm289_vm6, %v1610_v25  ;;  %v3250_v25 = vld [vmem:[%s4823_s6 + $0x1] ss:$0 sm:$0xff] }
 0xdcd   :  { %3595 = vmatprep.mubr.msk.bf16.mxu1 %vm3964_vm0, %v3961_v5  ;;  %3592 = vmatpush3.bf16.msra.mxu1 %v3808_v17 }
 0xdce   :  { %3593 = vmatprep.subr.bf16.mxu1 %v3961_v5 }
 0xdd1   :  { %3594 = vmatpush3.bf16.msra.mxu1 %v3809_v18 }
 0xdd2   :  { %3599 = vmatprep.subr.bf16.mxu1 %v3961_v5 }
 0xe9f   :  { %v1666_v31 = vpop.f32.mrb[44].mxu1 }
 0xea0   :  { %v1667_v33 = vadd.f32 %v3238_v30, %v1666_v31  ;;  %v3577_v34 = vpop.f32.mrb[45].mxu1 }
 0xea1   :  { %v1669_v4 = vpop.f32.mrb[46].mxu1 }
 0xea2   :  { %v1675_v36 = vmul.f32 0.044715, %v1667_v33  ;;  %v1670_v10 = vadd.f32 %v3238_v30, %v1669_v4  ;;  %v3578_v35 = vpop.f32.mrb[47].mxu1  ;;  %v1673_v50 = vmul.f32 0.5, %v1667_v33  ;;  %v3251_v30 = vld [vmem:[%s4824_s7 + $0x1] ss:$0 sm:$0xff] }
 0xea4   :  { %v1677_v38 = vmul.f32 %v1675_v36, %v1667_v33  ;;  %v1676_v39 = vmul.f32 0.044715, %v1670_v10  ;;  %v1674_v52 = vmul.f32 0.5, %v1670_v10  ;;  %v3257_v36 = vld [vmem:[%s4826_s9 + $0x1] ss:$0 sm:$0xff] }
 0xea6   :  { %v1679_v40 = vmul.f32 %v1677_v38, %v1667_v33  ;;  %v1678_v51 = vmul.f32 %v1676_v39, %v1670_v10 }
 0xea8   :  { %v1681_v42 = vadd.f32 %v1679_v40, %v1667_v33  ;;  %v1680_v43 = vmul.f32 %v1678_v51, %v1670_v10 }
 0xeaa   :  { %v1683_v44 = vmul.f32 0.7978846, %v1681_v42  ;;  %v1682_v45 = vadd.f32 %v1680_v43, %v1670_v10 }
 0xeac   :  { %3870 = vtanh.f32 %v1683_v44  ;;  %v1684_v41 = vmul.f32 0.7978846, %v1682_v45 }
 0xeae   :  { %3872 = vtanh.f32 %v1684_v41 }
 0xeb6   :  { %v3871_v32 = vpop.eup %3870 }
 0xeb7   :  { %v1687_v47 = vadd.f32 1.0, %v3871_v32 }
 0xeb8   :  { %v3873_v48 = vpop.eup %3872 }
 0xeb9   :  { %v1688_v55 = vadd.f32 1.0, %v3873_v48  ;;  %v1689_v56 = vmul.f32 %v1687_v47, %v1673_v50 }
 0xebb   :  { %v1690_v54 = vmul.f32 %v1688_v55, %v1674_v52 }
 0xebd   :  { %v1700_v59 = vpack.c.bf16 %v1690_v54, %v1689_v56 }
 0xebf   :  { %3588 = vmatmul.mubr.msk.bf16.vlgmr.msra.gmra.mrb[40].mxu0 %vm292_vm7, %v1700_v59 }
 0xec0   :  { %3607 = vmatprep.mubr.msk.bf16.mxu0 %vm3964_vm0, %v3961_v5 }
 0xf92   :  { %v1768_v6 = vpop.f32.mrb[40].mxu0 }
 0xf93   :  { %v1769_v57 = vadd.f32 %v3242_v9, %v1768_v6  ;;  %v3589_v63 = vpop.f32.mrb[41].mxu0 }
 0xf94   :  { %v1771_v61 = vpop.f32.mrb[42].mxu0 }
 0xf95   :  { %v4499_v0 = vadd.f32 %v1769_v57, %v4443_v53  ;;  %v1772_v60 = vadd.f32 %v3242_v9, %v1771_v61  ;;  %v3590_v1 = vpop.f32.mrb[43].mxu0 }
 0xf97   :  { %v4502_v2 = vadd.f32 %v1772_v60, %v4446_v58  ;;  %v1781_v8 = vsel %vm289_vm6, %v4499_v0, 0.0 }
 0xf98   :  { %1782 = vadd.xlane.f32.xlu1 %v1781_v8 }
 0xf99   :  { %v1784_v3 = vsel %vm289_vm6, %v4502_v2, 0.0 }
 0xf9a   :  { %1785 = vadd.xlane.f32.xlu0 %v1784_v3 }
0x1025   :  { %v1783_v49 = vpop.xlane.xlu1 %1782 }
0x1026   :  { %v1787_v7 = vmul.f32 0.03125, %v1783_v49 }
0x1027   :  { %v1786_v11 = vpop.xlane.xlu0 %1785 }
0x1028   :  { %v1789_v12 = vsub.f32 %v4499_v0, %v1787_v7  ;;  %v1788_v53 = vmul.f32 0.03125, %v1786_v11 }
0x102a   :  { %v1790_v13 = vsub.f32 %v4502_v2, %v1788_v53  ;;  %v1791_v14 = vmul.f32 %v1789_v12, %v1789_v12 }
0x102c   :  { %v1793_v58 = vsel %vm289_vm6, %v1791_v14, 0.0  ;;  %v1792_v15 = vmul.f32 %v1790_v13, %v1790_v13 }
0x102d   :  { %1794 = vadd.xlane.f32.xlu1 %v1793_v58 }
0x102e   :  { %v1796_v16 = vsel %vm289_vm6, %v1792_v15, 0.0 }
0x102f   :  { %1797 = vadd.xlane.f32.xlu0 %v1796_v16 }
0x10ba   :  { %v1795_v19 = vpop.xlane.xlu1 %1794 }
0x10bb   :  { %v1799_v37 = vmul.f32 0.03125, %v1795_v19 }
0x10bc   :  { %v1798_v20 = vpop.xlane.xlu0 %1797 }
0x10bd   :  { %v1801_v21 = vadd.f32 1e-05, %v1799_v37  ;;  %v1800_v22 = vmul.f32 0.03125, %v1798_v20 }
0x10bf   :  { %3874 = vrsqrt.f32 %v1801_v21  ;;  %v1802_v23 = vadd.f32 1e-05, %v1800_v22 }
0x10c1   :  { %3876 = vrsqrt.f32 %v1802_v23 }
0x10c9   :  { %v3875_v24 = vpop.eup %3874 }
0x10ca   :  { %v1805_v26 = vmul.f32 %v3875_v24, %v1789_v12 }
0x10cb   :  { %v3877_v27 = vpop.eup %3876 }
0x10cc   :  { %v1813_v28 = vmul.f32 %v3250_v25, %v1805_v26  ;;  %v1806_v29 = vmul.f32 %v3877_v27, %v1790_v13 }
0x10ce   :  { %v1814_v31 = vmul.f32 %v3250_v25, %v1806_v29  ;;  %v1821_v33 = vadd.f32 %v3251_v30, %v1813_v28 }
0x10d0   :  { %v1822_v34 = vadd.f32 %v3251_v30, %v1814_v31 }
0x10d2   :  { %v1830_v4 = vpack.c.bf16 %v1822_v34, %v1821_v33 }
0x10d4   :  { %3596 = vmatmul.mubr.msk.bf16.vlgmr.msra.gmra.mrb[48].mxu1 %vm289_vm6, %v1830_v4 }
0x10d5   :  { %3601 = vmatprep.mubr.msk.bf16.mxu1 %vm3964_vm0, %v3961_v5 }
0x11a7   :  { %v1886_v10 = vpop.f32.mrb[48].mxu1 }
0x11a8   :  { %v1887_v35 = vadd.f32 %v3257_v36, %v1886_v10  ;;  %v3597_v38 = vpop.f32.mrb[49].mxu1 }
0x11a9   :  { %v1889_v39 = vpop.f32.mrb[50].mxu1 }
0x11aa   :  { %v4532_v40 = vadd.f32 %v3257_v36, %v1889_v39  ;;  %1897 = vrot.lane.b32.xlu0 %v1887_v35, %s3963_s1  ;;  %1894 = vrot.lane.b32.xlu1 %v1887_v35, %s3968_s25  ;;  %v3598_v51 = vpop.f32.mrb[51].mxu1  ;;  %v4537_v42 = vpack.c.bf16 %v1887_v35, %v1887_v35 }
0x11ae   :  { %1900 = vrot.lane.b32.xlu1 %v1887_v35, %s3969_s3 }
0x11b2   :  { %1908 = vrot.lane.b32.xlu1 %v4537_v42, %s3970_s27 }
0x121c   :  { %v1898_v43 = vpop.permute.xlu0 %1897  ;;  %v1895_v44 = vpop.permute.xlu1 %1894 }
0x121d   :  { %v4541_v45 = vpack.c.bf16 %v1898_v43, %v1898_v43  ;;  %v4543_v41 = vpack.c.bf16 %v1895_v44, %v1895_v44 }
0x121f   :  { %1957 = vrot.lane.b32.xlu0 %v4543_v41, %s3970_s27  ;;  %2006 = vrot.lane.b32.xlu1 %v4541_v45, %s3970_s27 }
0x1220   :  { %v1901_v32 = vpop.permute.xlu1 %1900 }
0x1221   :  { %v4549_v47 = vpack.c.bf16 %v1901_v32, %v1901_v32 }
0x1223   :  { %2055 = vrot.lane.b32.xlu0 %v4549_v47, %s3970_s27 }
0x1224   :  { %v1909_v48 = vpop.permute.xlu1 %1908 }
0x1225   :  { %v1914_v50 = vsel %vm559_vm9, %v1909_v48, 0 }
0x1226   :  { %3600 = vmatpush3.bf16.xpose.msra.mxu1 %v1914_v50 }
0x1227   :  { %3611 = vmatprep.subr.bf16.mxu1 %v3961_v5 }
0x122d   :  { %3602 = vmatmul.mubr.msk.bf16.vlgmr.msra.gmra.mrb[52].mxu1 %vm559_vm9, %v4537_v42 }
0x122e   :  { %3613 = vmatprep.mubr.msk.bf16.mxu1 %vm3964_vm0, %v3961_v5 }
0x1291   :  { %v1958_v52 = vpop.permute.xlu0 %1957  ;;  %v2007_v55 = vpop.permute.xlu1 %2006 }
0x1292   :  { %v1963_v56 = vsel %vm559_vm9, %v1958_v52, 0  ;;  %v2012_v54 = vsel %vm559_vm9, %v2007_v55, 0 }
0x1293   :  { %3606 = vmatpush3.bf16.xpose.msra.mxu0 %v1963_v56  ;;  %3612 = vmatpush3.bf16.xpose.msra.mxu1 %v2012_v54 }
0x1294   :  { %3617 = vmatprep.subr.bf16.mxu0 %v3961_v5  ;;  %3623 = vmatprep.subr.bf16.mxu1 %v3961_v5 }
0x1295   :  { %v2056_v59 = vpop.permute.xlu0 %2055 }
0x1296   :  { %v2061_v9 = vsel %vm559_vm9, %v2056_v59, 0 }
0x129a   :  { %3608 = vmatmul.mubr.msk.bf16.vlgmr.msra.gmra.mrb[44].mxu0 %vm559_vm9, %v4543_v41  ;;  %3614 = vmatmul.mubr.msk.bf16.vlgmr.msra.gmra.mrb[56].mxu1 %vm559_vm9, %v4541_v45 }
0x129b   :  { %3618 = vmatpush3.bf16.xpose.msra.mxu0 %v2061_v9  ;;  %3619 = vmatprep.mubr.msk.bf16.mxu0 %vm3964_vm0, %v3961_v5  ;;  %v4617_v9 = vpack.c.bf16 %v4532_v40, %v4532_v40 }
0x129c   :  { %3629 = vmatprep.subr.bf16.mxu0 %v3961_v5  ;;  %3625 = vmatprep.mubr.msk.bf16.mxu1 %vm3964_vm0, %v3961_v5 }
0x12a2   :  { %3620 = vmatmul.mubr.msk.bf16.vlgmr.msra.gmra.mrb[48].mxu0 %vm559_vm9, %v4549_v47 }
0x12a3   :  { %3631 = vmatprep.mubr.msk.bf16.mxu0 %vm3964_vm0, %v3961_v5 }
0x1300   :  { %v1950_v6 = vpop.f32.mrb[52].mxu1 }
0x1301   :  { %v2103_v57 = vmul.f32 0.35355338, %v1950_v6  ;;  %v3603_v63 = vpop.f32.mrb[53].mxu1 }
0x1302   :  { %v1953_v61 = vpop.f32.mrb[54].mxu1 }
0x1303   :  { %v3604_v60 = vpop.f32.mrb[55].mxu1  ;;  %v2107_v1 = vadd.f32 %v2103_v57, %v4276_v62 }
0x1305   :  { %v2111_v8 = vsel %vm559_vm9, %v2107_v1, -inf }
0x1306   :  { %2112 = vmax.xlane.f32.xlu1 %v2111_v8 }
0x136d   :  { %v1999_v3 = vpop.f32.mrb[44].mxu0  ;;  %v2048_v49 = vpop.f32.mrb[56].mxu1 }
0x136e   :  { %v2104_v7 = vmul.f32 0.35355338, %v1999_v3  ;;  %v2105_v11 = vmul.f32 0.35355338, %v2048_v49  ;;  %v3609_v12 = vpop.f32.mrb[45].mxu0  ;;  %v3615_v53 = vpop.f32.mrb[57].mxu1 }
0x136f   :  { %v2002_v13 = vpop.f32.mrb[46].mxu0  ;;  %v2051_v14 = vpop.f32.mrb[58].mxu1 }
0x1370   :  { %v3610_v58 = vpop.f32.mrb[47].mxu0  ;;  %v3616_v15 = vpop.f32.mrb[59].mxu1  ;;  %v2108_v16 = vadd.f32 %v2104_v7, %v4276_v62  ;;  %v2109_v18 = vadd.f32 %v2105_v11, %v4276_v62 }
0x1372   :  { %v2114_v17 = vsel %vm559_vm9, %v2108_v16, -inf  ;;  %v2117_v21 = vsel %vm559_vm9, %v2109_v18, -inf }
0x1373   :  { %2115 = vmax.xlane.f32.xlu0 %v2114_v17 }
0x1375   :  { %v2097_v19 = vpop.f32.mrb[48].mxu0 }
0x1376   :  { %v2106_v37 = vmul.f32 0.35355338, %v2097_v19  ;;  %v3621_v20 = vpop.f32.mrb[49].mxu0 }
0x1377   :  { %2118 = vmax.xlane.f32.xlu0 %v2117_v21  ;;  %v2100_v22 = vpop.f32.mrb[50].mxu0 }
0x1378   :  { %v3622_v23 = vpop.f32.mrb[51].mxu0  ;;  %v2110_v24 = vadd.f32 %v2106_v37, %v4276_v62 }
0x137a   :  { %v2120_v25 = vsel %vm559_vm9, %v2110_v24, -inf }
0x137b   :  { %2121 = vmax.xlane.f32.xlu1 %v2120_v25 }
0x138c   :  { %2370 = vrot.lane.b32.xlu1 %v4532_v40, %s3963_s1  ;;  %s3974_s1 = smov [#allocation4]  }
0x138d   :  { %2367 = vrot.lane.b32.xlu0 %v4532_v40, %s3968_s25 }
0x1390   :  { %2373 = vrot.lane.b32.xlu1 %v4532_v40, %s3969_s3 }
0x1391   :  { %2207 = vrot.lane.b32.xlu0 %v4543_v41, %s3966_s26 }
0x1393   :  { %v2113_v26 = vpop.xlane.xlu1 %2112 }
0x1394   :  { %2159 = vrot.lane.b32.xlu1 %v4537_v42, %s3966_s26  ;;  %v2123_v62 = vsub.f32 %v2107_v1, %v2113_v26 }
0x1396   :  { %v2127_v27 = vmul.f32 1.442695, %v2123_v62 }
0x1398   :  { %2255 = vrot.lane.b32.xlu1 %v4541_v45, %s3966_s26  ;;  %3878 = vpow2.f32 %v2127_v27 }
0x13a2   :  { %v3879_v28 = vpop.eup %3878 }
0x13a3   :  { %v2135_v29 = vsel %vm559_vm9, %v3879_v28, 0.0 }
0x13b0   :  { %2136 = vadd.xlane.f32.xlu0 %v2135_v29 }
0x1400   :  { %v2116_v30 = vpop.xlane.xlu0 %2115 }
0x1401   :  { %v2124_v31 = vsub.f32 %v2108_v16, %v2116_v30 }
0x1403   :  { %v2129_v33 = vmul.f32 1.442695, %v2124_v31 }
0x1404   :  { %v2119_v34 = vpop.xlane.xlu0 %2118 }
0x1405   :  { %3880 = vpow2.f32 %v2129_v33  ;;  %v2125_v4 = vsub.f32 %v2109_v18, %v2119_v34 }
0x1407   :  { %v2131_v36 = vmul.f32 1.442695, %v2125_v4 }
0x1408   :  { %v2368_v10 = vpop.permute.xlu0 %2367  ;;  %v2122_v35 = vpop.xlane.xlu1 %2121 }
0x1409   :  { %3882 = vpow2.f32 %v2131_v36  ;;  %v2126_v38 = vsub.f32 %v2110_v24, %v2122_v35  ;;  %v4607_v54 = vpack.c.bf16 %v2368_v10, %v2368_v10 }
0x140b   :  { %v2133_v39 = vmul.f32 1.442695, %v2126_v38 }
0x140c   :  { %v2208_v51 = vpop.permute.xlu0 %2207  ;;  %v2371_v42 = vpop.permute.xlu1 %2370 }
0x140d   :  { %3884 = vpow2.f32 %v2133_v39  ;;  %v2213_v43 = vsel %vm814_vm13, %v2208_v51, 0  ;;  %v4621_v6 = vpack.c.bf16 %v2371_v42, %v2371_v42 }
0x140e   :  { %3630 = vmatpush3.bf16.msra.mxu0 %v2213_v43 }
0x140f   :  { %v3881_v44 = vpop.eup %3880  ;;  %3641 = vmatprep.subr.bf16.mxu0 %v3961_v5 }
0x1410   :  { %v2374_v45 = vpop.permute.xlu1 %2373  ;;  %v2138_v41 = vsel %vm559_vm9, %v3881_v44, 0.0 }
0x1411   :  { %2139 = vadd.xlane.f32.xlu1 %v2138_v41  ;;  %v4611_v59 = vpack.c.bf16 %v2374_v45, %v2374_v45 }
0x1413   :  { %v3883_v32 = vpop.eup %3882 }
0x1414   :  { %v2160_v48 = vpop.permute.xlu1 %2159  ;;  %v2141_v50 = vsel %vm559_vm9, %v3883_v32, 0.0 }
0x1415   :  { %v2165_v52 = vsel %vm814_vm13, %v2160_v48, 0  ;;  %2142 = vadd.xlane.f32.xlu0 %v2141_v50 }
0x1416   :  { %3624 = vmatpush3.bf16.msra.mxu1 %v2165_v52 }
0x1417   :  { %v3885_v55 = vpop.eup %3884  ;;  %3635 = vmatprep.subr.bf16.mxu1 %v3961_v5 }
0x1418   :  { %v2144_v56 = vsel %vm559_vm9, %v3885_v55, 0.0  ;;  %v2256_v61 = vpop.permute.xlu1 %2255 }
0x1419   :  { %2145 = vadd.xlane.f32.xlu0 %v2144_v56  ;;  %v2261_v1 = vsel %vm814_vm13, %v2256_v61, 0 }
0x1422   :  { %2303 = vrot.lane.b32.xlu1 %v4549_v47, %s3966_s26 }
0x1426   :  { %2430 = vrot.lane.b32.xlu1 %v4607_v54, %s3970_s27 }
0x142a   :  { %2528 = vrot.lane.b32.xlu1 %v4611_v59, %s3970_s27 }
0x142f   :  { %2381 = vrot.lane.b32.xlu0 %v4617_v9, %s3970_s27 }
0x1433   :  { %2479 = vrot.lane.b32.xlu0 %v4621_v6, %s3970_s27 }
0x143d   :  { %v2137_v47 = vpop.xlane.xlu0 %2136 }
0x143e   :  { %3886 = vrcp.f32 %v2137_v47 }
0x1448   :  { %v3887_v57 = vpop.eup %3886 }
0x1449   :  { %v2151_v63 = vmul.f32 %v3887_v57, %v3879_v28 }
0x144b   :  { %v2155_v60 = vpack.c.bf16 %v2151_v63, %v2151_v63 }
0x144d   :  { %3626 = vmatmul.mubr.msk.bf16.vlgmr.msra.gmra.mrb[60].mxu1 %vm559_vm9, %v2155_v60 }
0x144e   :  { %3636 = vmatpush3.bf16.msra.mxu1 %v2261_v1  ;;  %3637 = vmatprep.mubr.msk.bf16.mxu1 %vm3964_vm0, %v3961_v5 }
0x144f   :  { %3647 = vmatprep.subr.bf16.mxu1 %v3961_v5 }
0x149e   :  { %v2140_v40 = vpop.xlane.xlu1 %2139 }
0x149f   :  { %3888 = vrcp.f32 %v2140_v40 }
0x14a2   :  { %v2143_v8 = vpop.xlane.xlu0 %2142  ;;  %v2304_v11 = vpop.permute.xlu1 %2303 }
0x14a3   :  { %3890 = vrcp.f32 %v2143_v8  ;;  %v2309_v14 = vsel %vm814_vm13, %v2304_v11, 0 }
0x14a6   :  { %v2146_v3 = vpop.xlane.xlu0 %2145  ;;  %v2431_v19 = vpop.permute.xlu1 %2430 }
0x14a7   :  { %3892 = vrcp.f32 %v2146_v3  ;;  %v2436_v20 = vsel %vm559_vm9, %v2431_v19, 0 }
0x14a9   :  { %v3889_v49 = vpop.eup %3888 }
0x14aa   :  { %v2152_v7 = vmul.f32 %v3889_v49, %v3881_v44  ;;  %v2382_v58 = vpop.permute.xlu0 %2381  ;;  %v2529_v23 = vpop.permute.xlu1 %2528 }
0x14ab   :  { %v2387_v18 = vsel %vm559_vm9, %v2382_v58, 0  ;;  %v2534_v24 = vsel %vm559_vm9, %v2529_v23, 0 }
0x14ac   :  { %v2156_v12 = vpack.c.bf16 %v2152_v7, %v2152_v7 }
0x14ad   :  { %v3891_v53 = vpop.eup %3890 }
0x14ae   :  { %v2153_v13 = vmul.f32 %v3891_v53, %v3883_v32  ;;  %3632 = vmatmul.mubr.msk.bf16.vlgmr.msra.gmra.mrb[52].mxu0 %vm559_vm9, %v2156_v12  ;;  %v2480_v21 = vpop.permute.xlu0 %2479 }
0x14af   :  { %3642 = vmatpush3.bf16.msra.mxu0 %v2309_v14  ;;  %3643 = vmatprep.mubr.msk.bf16.mxu0 %vm3964_vm0, %v3961_v5  ;;  %v2485_v22 = vsel %vm559_vm9, %v2480_v21, 0 }
0x14b0   :  { %v2157_v15 = vpack.c.bf16 %v2153_v13, %v2153_v13  ;;  %3653 = vmatprep.subr.bf16.mxu0 %v3961_v5 }
0x14b1   :  { %v3893_v16 = vpop.eup %3892 }
0x14b2   :  { %v2154_v17 = vmul.f32 %v3893_v16, %v3885_v55  ;;  %3638 = vmatmul.mubr.msk.bf16.vlgmr.msra.gmra.mrb[64].mxu1 %vm559_vm9, %v2157_v15 }
0x14b3   :  { %3648 = vmatpush3.bf16.xpose.msra.mxu1 %v2387_v18  ;;  %3649 = vmatprep.mubr.msk.bf16.mxu1 %vm3964_vm0, %v3961_v5 }
0x14b4   :  { %v2158_v37 = vpack.c.bf16 %v2154_v17, %v2154_v17  ;;  %3659 = vmatprep.subr.bf16.mxu1 %v3961_v5 }
0x14b6   :  { %3644 = vmatmul.mubr.msk.bf16.vlgmr.msra.gmra.mrb[56].mxu0 %vm559_vm9, %v2158_v37 }
0x14b7   :  { %3655 = vmatprep.mubr.msk.bf16.mxu0 %vm3964_vm0, %v3961_v5 }
0x14b8   :  { %3654 = vmatpush3.bf16.xpose.msra.mxu0 %v2436_v20 }
0x14b9   :  { %3665 = vmatprep.subr.bf16.mxu0 %v3961_v5 }
0x14ba   :  { %3650 = vmatmul.mubr.msk.bf16.vlgmr.msra.gmra.mrb[68].mxu1 %vm559_vm9, %v4617_v9 }
0x14bb   :  { %3660 = vmatpush3.bf16.xpose.msra.mxu1 %v2485_v22  ;;  %3661 = vmatprep.mubr.msk.bf16.mxu1 %vm3964_vm0, %v3961_v5 }
0x14bc   :  { %3671 = vmatprep.subr.bf16.mxu1 %v3961_v5 }
0x14bf   :  { %3656 = vmatmul.mubr.msk.bf16.vlgmr.msra.gmra.mrb[60].mxu0 %vm559_vm9, %v4607_v54 }
0x14c0   :  { %3666 = vmatpush3.bf16.xpose.msra.mxu0 %v2534_v24  ;;  %3667 = vmatprep.mubr.msk.bf16.mxu0 %vm3964_vm0, %v3961_v5 }
0x14c1   :  { %3677 = vmatprep.subr.bf16.mxu0 %v3961_v5 }
0x14c2   :  { %3662 = vmatmul.mubr.msk.bf16.vlgmr.msra.gmra.mrb[72].mxu1 %vm559_vm9, %v4621_v6 }
0x14c3   :  { %3673 = vmatprep.mubr.msk.bf16.mxu1 %vm3964_vm0, %v3961_v5 }
0x14c7   :  { %3668 = vmatmul.mubr.msk.bf16.vlgmr.msra.gmra.mrb[64].mxu0 %vm559_vm9, %v4611_v59 }
0x14c8   :  { %3679 = vmatprep.mubr.msk.bf16.mxu0 %vm3964_vm0, %v3961_v5 }
0x1520   :  { %v4665_v25 = vpop.f32.mrb[60].mxu1 }
0x1521   :  { %v3627_v26 = vpop.f32.mrb[61].mxu1 }
0x1522   :  { %v2204_v62 = vpop.f32.mrb[62].mxu1 }
0x1523   :  { %v3628_v27 = vpop.f32.mrb[63].mxu1 }
0x1581   :  { %v4667_v28 = vpop.f32.mrb[52].mxu0 }
0x1582   :  { %v3633_v29 = vpop.f32.mrb[53].mxu0 }
0x1583   :  { %v2252_v30 = vpop.f32.mrb[54].mxu0 }
0x1584   :  { %v3634_v31 = vpop.f32.mrb[55].mxu0 }
0x1585   :  { %v4669_v33 = vpop.f32.mrb[64].mxu1 }
0x1586   :  { %v3639_v34 = vpop.f32.mrb[65].mxu1 }
0x1587   :  { %v2300_v4 = vpop.f32.mrb[66].mxu1 }
0x1588   :  { %v3640_v36 = vpop.f32.mrb[67].mxu1 }
0x1589   :  { %v4671_v10 = vpop.f32.mrb[56].mxu0 }
0x158a   :  { %v3645_v35 = vpop.f32.mrb[57].mxu0 }
0x158b   :  { %v2348_v38 = vpop.f32.mrb[58].mxu0 }
0x158c   :  { %v3646_v39 = vpop.f32.mrb[59].mxu0 }
0x158d   :  { %v2423_v51 = vpop.f32.mrb[68].mxu1 }
0x158e   :  { %v2576_v42 = vmul.f32 0.35355338, %v2423_v51  ;;  %v3651_v43 = vpop.f32.mrb[69].mxu1 }
0x158f   :  { %v2426_v44 = vpop.f32.mrb[70].mxu1 }
0x1590   :  { %v3652_v45 = vpop.f32.mrb[71].mxu1  ;;  %v2580_v41 = vadd.f32 %v2576_v42, %v4371_v46 }
0x1592   :  { %v2472_v32 = vpop.f32.mrb[60].mxu0  ;;  %v2584_v48 = vsel %vm559_vm9, %v2580_v41, -inf }
0x1593   :  { %v2577_v50 = vmul.f32 0.35355338, %v2472_v32  ;;  %v3657_v52 = vpop.f32.mrb[61].mxu0  ;;  %2585 = vmax.xlane.f32.xlu0 %v2584_v48 }
0x1594   :  { %v2475_v55 = vpop.f32.mrb[62].mxu0 }
0x1595   :  { %v3658_v56 = vpop.f32.mrb[63].mxu0  ;;  %v2521_v47 = vpop.f32.mrb[72].mxu1  ;;  %v2581_v57 = vadd.f32 %v2577_v50, %v4371_v46 }
0x1596   :  { %v2578_v63 = vmul.f32 0.35355338, %v2521_v47  ;;  %v3663_v61 = vpop.f32.mrb[73].mxu1 }
0x1597   :  { %v2524_v60 = vpop.f32.mrb[74].mxu1  ;;  %v2587_v1 = vsel %vm559_vm9, %v2581_v57, -inf }
0x1598   :  { %2588 = vmax.xlane.f32.xlu1 %v2587_v1  ;;  %v3664_v40 = vpop.f32.mrb[75].mxu1  ;;  %v2582_v8 = vadd.f32 %v2578_v63, %v4371_v46  ;;  %v3810_v60 = vld [vmem:[%s4827_s10 + $0x10] sm:$0xff]  }
0x159a   :  { %v2570_v3 = vpop.f32.mrb[64].mxu0  ;;  %v2590_v49 = vsel %vm559_vm9, %v2582_v8, -inf }
0x159b   :  { %v2579_v7 = vmul.f32 0.35355338, %v2570_v3  ;;  %v3669_v11 = vpop.f32.mrb[65].mxu0  ;;  %2591 = vmax.xlane.f32.xlu0 %v2590_v49  ;;  %v3811_v3 = vld [vmem:[%s4827_s10 + $0x18] sm:$0xff]   ;;  %s3184_s10 = sshll.u32 %s3974_s1, 4  ;;  %s3185_s10 = int_to_ptr.vmem [resolvable:$true] %s3184_s10 }
0x159c   :  { %v2573_v12 = vpop.f32.mrb[66].mxu0  ;;  %p3939_p6 = scmp.lt.s32.totalorder %s3185_s10, %s3185_s10 }
0x159d   :  { %v3670_v53 = vpop.f32.mrb[67].mxu0  ;;  %v2583_v13 = vadd.f32 %v2579_v7, %v4371_v46 }
0x159f   :  { %v2593_v14 = vsel %vm559_vm9, %v2583_v13, -inf }
0x15a0   :  { %2594 = vmax.xlane.f32.xlu0 %v2593_v14 }
0x15a9   :  { %2632 = vrot.lane.b32.xlu1 %v4617_v9, %s3966_s26 }
0x1620   :  { %v2586_v58 = vpop.xlane.xlu0 %2585 }
0x1621   :  { %v2596_v15 = vsub.f32 %v2580_v41, %v2586_v58 }
0x1623   :  { %v2600_v16 = vmul.f32 1.442695, %v2596_v15 }
0x1625   :  { %3894 = vpow2.f32 %v2600_v16  ;;  %v2589_v17 = vpop.xlane.xlu1 %2588 }
0x1626   :  { %v2597_v18 = vsub.f32 %v2581_v57, %v2589_v17 }
0x1628   :  { %v2602_v19 = vmul.f32 1.442695, %v2597_v18  ;;  %v2592_v37 = vpop.xlane.xlu0 %2591 }
0x1629   :  { %v2598_v20 = vsub.f32 %v2582_v8, %v2592_v37  ;;  %v2633_v21 = vpop.permute.xlu1 %2632 }
0x162a   :  { %3896 = vpow2.f32 %v2602_v19  ;;  %v2638_v22 = vsel %vm814_vm13, %v2633_v21, 0 }
0x162b   :  { %v2604_v46 = vmul.f32 1.442695, %v2598_v20  ;;  %3672 = vmatpush3.bf16.msra.mxu1 %v2638_v22 }
0x162c   :  { %3683 = vmatprep.subr.bf16.mxu1 %v3961_v5 }
0x162d   :  { %3898 = vpow2.f32 %v2604_v46  ;;  %v2595_v23 = vpop.xlane.xlu0 %2594 }
0x162e   :  { %v2599_v9 = vsub.f32 %v2583_v13, %v2595_v23 }
0x162f   :  { %v3895_v24 = vpop.eup %3894 }
0x1630   :  { %v2606_v26 = vmul.f32 1.442695, %v2599_v9  ;;  %v2608_v62 = vsel %vm559_vm9, %v3895_v24, 0.0 }
0x1631   :  { %2609 = vadd.xlane.f32.xlu1 %v2608_v62 }
0x1632   :  { %3900 = vpow2.f32 %v2606_v26 }
0x1634   :  { %v3897_v27 = vpop.eup %3896 }
0x1635   :  { %v2611_v29 = vsel %vm559_vm9, %v3897_v27, 0.0 }
0x1636   :  { %2612 = vadd.xlane.f32.xlu0 %v2611_v29 }
0x1637   :  { %v3899_v30 = vpop.eup %3898 }
0x1638   :  { %v2614_v31 = vsel %vm559_vm9, %v3899_v30, 0.0 }
0x1639   :  { %2615 = vadd.xlane.f32.xlu1 %v2614_v31 }
0x163c   :  { %v3901_v34 = vpop.eup %3900 }
0x163d   :  { %v2617_v4 = vsel %vm559_vm9, %v3901_v34, 0.0 }
0x163e   :  { %2618 = vadd.xlane.f32.xlu0 %v2617_v4 }
0x164a   :  { %2728 = vrot.lane.b32.xlu1 %v4621_v6, %s3966_s26 }
0x164e   :  { %2776 = vrot.lane.b32.xlu1 %v4611_v59, %s3966_s26 }
0x1654   :  { %2680 = vrot.lane.b32.xlu0 %v4607_v54, %s3966_s26 }
0x16be   :  { %v2610_v36 = vpop.xlane.xlu1 %2609 }
0x16bf   :  { %3902 = vrcp.f32 %v2610_v36 }
0x16c3   :  { %v2613_v35 = vpop.xlane.xlu0 %2612 }
0x16c4   :  { %3904 = vrcp.f32 %v2613_v35 }
0x16c6   :  { %v2616_v38 = vpop.xlane.xlu1 %2615 }
0x16c7   :  { %3906 = vrcp.f32 %v2616_v38 }
0x16c9   :  { %v3903_v39 = vpop.eup %3902 }
0x16ca   :  { %v2624_v51 = vmul.f32 %v3903_v39, %v3895_v24  ;;  %v2729_v42 = vpop.permute.xlu1 %2728 }
0x16cb   :  { %v2619_v43 = vpop.xlane.xlu0 %2618  ;;  %v2734_v6 = vsel %vm814_vm13, %v2729_v42, 0 }
0x16cc   :  { %3908 = vrcp.f32 %v2619_v43  ;;  %v2628_v44 = vpack.c.bf16 %v2624_v51, %v2624_v51 }
0x16ce   :  { %v3905_v45 = vpop.eup %3904  ;;  %3674 = vmatmul.mubr.msk.bf16.vlgmr.msra.gmra.mrb[76].mxu1 %vm559_vm9, %v2628_v44  ;;  %v2777_v48 = vpop.permute.xlu1 %2776 }
0x16cf   :  { %v2625_v59 = vmul.f32 %v3905_v45, %v3897_v27  ;;  %3684 = vmatpush3.bf16.msra.mxu1 %v2734_v6  ;;  %v2681_v54 = vpop.permute.xlu0 %2680  ;;  %3685 = vmatprep.mubr.msk.bf16.mxu1 %vm3964_vm0, %v3961_v5  ;;  %v2782_v55 = vsel %vm814_vm13, %v2777_v48, 0 }
0x16d0   :  { %v2686_v41 = vsel %vm814_vm13, %v2681_v54, 0  ;;  %3695 = vmatprep.subr.bf16.mxu1 %v3961_v5 }
0x16d1   :  { %v3907_v32 = vpop.eup %3906  ;;  %3678 = vmatpush3.bf16.msra.mxu0 %v2686_v41  ;;  %v2629_v50 = vpack.c.bf16 %v2625_v59, %v2625_v59 }
0x16d2   :  { %v2626_v52 = vmul.f32 %v3907_v32, %v3899_v30  ;;  %3689 = vmatprep.subr.bf16.mxu0 %v3961_v5 }
0x16d4   :  { %3680 = vmatmul.mubr.msk.bf16.vlgmr.msra.gmra.mrb[68].mxu0 %vm559_vm9, %v2629_v50  ;;  %v2630_v56 = vpack.c.bf16 %v2626_v52, %v2626_v52 }
0x16d5   :  { %3690 = vmatpush3.bf16.msra.mxu0 %v2782_v55  ;;  %3691 = vmatprep.mubr.msk.bf16.mxu0 %vm3964_vm0, %v3961_v5  ;;  %v3812_v55 = vld [vmem:[%s4831_s14 + $0x10] sm:$0xff]  }
0x16d6   :  { %v3909_v47 = vpop.eup %3908  ;;  %3686 = vmatmul.mubr.msk.bf16.vlgmr.msra.gmra.mrb[80].mxu1 %vm559_vm9, %v2630_v56  ;;  %3703 = vmatprep.subr.bf16.mxu0 %v3961_v5  ;;  %v3813_v56 = vld [vmem:[%s4831_s14 + $0x18] sm:$0xff]  }
0x16d7   :  { %v2627_v57 = vmul.f32 %v3909_v47, %v3901_v34  ;;  %3699 = vmatprep.mubr.msk.bf16.mxu1 %vm3964_vm0, %v3961_v5  ;;  %3696 = vmatpush3.bf16.msra.mxu1 %v3810_v60 }
0x16d8   :  { %3697 = vmatprep.subr.bf16.mxu1 %v3961_v5 }
0x16d9   :  { %v2631_v63 = vpack.c.bf16 %v2627_v57, %v2627_v57 }
0x16db   :  { %3698 = vmatpush3.bf16.msra.mxu1 %v3811_v3 }
0x16dc   :  { %3692 = vmatmul.mubr.msk.bf16.vlgmr.msra.gmra.mrb[72].mxu0 %vm559_vm9, %v2631_v63  ;;  %3711 = vmatprep.subr.bf16.mxu1 %v3961_v5 }
0x16dd   :  { %3707 = vmatprep.mubr.msk.bf16.mxu0 %vm3964_vm0, %v3961_v5  ;;  %3704 = vmatpush3.bf16.msra.mxu0 %v3812_v55 }
0x16de   :  { %3705 = vmatprep.subr.bf16.mxu0 %v3961_v5 }
0x16e1   :  { %3706 = vmatpush3.bf16.msra.mxu0 %v3813_v56 }
0x17a1   :  { %v2674_v61 = vpop.f32.mrb[76].mxu1 }
0x17a2   :  { %v3675_v1 = vpop.f32.mrb[77].mxu1 }
0x17a3   :  { %v2677_v40 = vpop.f32.mrb[78].mxu1 }
0x17a4   :  { %v3676_v8 = vpop.f32.mrb[79].mxu1 }
0x17a5   :  { %v3288_v8 = vld [vmem:[%s4829_s12 + $0x1] ss:$0 sm:$0xff] }
0x17a7   :  { %v2722_v49 = vpop.f32.mrb[68].mxu0 }
0x17a8   :  { %v3774_v7 = vpack.i.bf16 %v2722_v49, %v4667_v28  ;;  %v3681_v11 = vpop.f32.mrb[69].mxu0 }
0x17a9   :  { %v2725_v12 = vpop.f32.mrb[70].mxu0  ;;  %v2770_v53 = vpop.f32.mrb[80].mxu1 }
0x17aa   :  { %v3779_v13 = vpack.i.bf16 %v2770_v53, %v4669_v33  ;;  %3775 = vrot.lane.b32.xlu0 %v3774_v7, %s3972_s4  ;;  %v3682_v14 = vpop.f32.mrb[71].mxu0  ;;  %v3687_v58 = vpop.f32.mrb[81].mxu1  ;;  %v3289_v12 = vld [vmem:[%s4853_s23 + $0x1] ss:$0 sm:$0xff] }
0x17ab   :  { %v2773_v15 = vpop.f32.mrb[82].mxu1 }
0x17ac   :  { %3780 = vrot.lane.b32.xlu1 %v3779_v13, %s3965_s24  ;;  %v3688_v16 = vpop.f32.mrb[83].mxu1  ;;  %v3814_v15 = vld [vmem:[%s4833_s16 + $0x20] sm:$0xff]   ;;  %s3934_s24 = scalar_lea.vmem %s3185_s10, 256 }
0x17ad   :  { %v3815_v16 = vld [vmem:[%s4833_s16 + $0x28] sm:$0xff]   ;;  %p3935_p5 = scmp.ne.s32.totalorder %s3185_s10, %s3934_s24  ;;  %p3940_p7 = scmp.lt.s32.totalorder %s3934_s24, %s3934_s24 }
0x17af   :  { %v2818_v17 = vpop.f32.mrb[72].mxu0  ;;  %p3941_p8 = por %p3940_p7, %p3939_p6 }
0x17b0   :  { %v3784_v18 = vpack.i.bf16 %v2818_v17, %v4671_v10  ;;  %v3693_v19 = vpop.f32.mrb[73].mxu0  ;;  %v3816_v17 = vld [vmem:[%s4833_s16 + $0x30] sm:$0xff]  }
0x17b1   :  { %v2821_v28 = vpop.f32.mrb[74].mxu0  ;;  %v3295_v19 = vld [vmem:[%s4832_s15 + $0x1] ss:$0 sm:$0xff]  ;;  %p3942_p9 = pnand %p3941_p8, %p3935_p5 }
0x17b2   :  { %3785 = vrot.lane.b32.xlu0 %v3784_v18, %s3973_s21  ;;  %v3694_v37 = vpop.f32.mrb[75].mxu0  ;;  %v3817_v18 = vld [vmem:[%s4833_s16 + $0x38] sm:$0xff]  }
0x181c   :  { %v3776_v20 = vpop.permute.xlu0 %3775 }
0x181d   :  { %v3778_v22 = vunpack.i.h.bf16 %v3776_v20  ;;  %v3777_v33 = vunpack.i.l.bf16 %v3776_v20 }
0x181e   :  { %v3781_v21 = vpop.permute.xlu1 %3780 }
0x181f   :  { %v3783_v46 = vunpack.i.h.bf16 %v3781_v21  ;;  %v3782_v23 = vunpack.i.l.bf16 %v3781_v21  ;;  %v2836_v24 = vsel %vm559_vm9, %v2674_v61, %v3778_v22  ;;  %v2363_v26 = vsel %vm559_vm9, %v4665_v25, %v3777_v33  ;;  %v3282_v25 = vld [vmem:[%s4828_s11 + $0x1] ss:$0 sm:$0xff] }
0x1821   :  { %v2364_v10 = vsel %vm103_vm5, %v2363_v26, %v3782_v23  ;;  %v2837_v29 = vsel %vm103_vm5, %v2836_v24, %v3783_v46 }
0x1824   :  { %v3786_v9 = vpop.permute.xlu0 %3785 }
0x1825   :  { %v3788_v62 = vunpack.i.h.bf16 %v3786_v9  ;;  %v3787_v27 = vunpack.i.l.bf16 %v3786_v9 }
0x1827   :  { %v2838_v30 = vsel %vm1016_vm1, %v2837_v29, %v3788_v62  ;;  %v2365_v31 = vsel %vm1016_vm1, %v2364_v10, %v3787_v27 }
0x1828   :  { %v2846_v34 = vpack.c.bf16 %v2838_v30, %v2365_v31 }
0x182a   :  { %3700 = vmatmul.mubr.msk.bf16.vlgmr.msra.gmra.mrb[84].mxu1 %vm289_vm6, %v2846_v34 }
0x182b   :  { %3719 = vmatprep.mubr.msk.bf16.mxu1 %vm3964_vm0, %v3961_v5  ;;  %3712 = vmatpush3.bf16.msra.mxu1 %v3814_v15 }
0x182c   :  { %3713 = vmatprep.subr.bf16.mxu1 %v3961_v5 }
0x182f   :  { %3714 = vmatpush3.bf16.msra.mxu1 %v3815_v16 }
0x1830   :  { %3715 = vmatprep.subr.bf16.mxu1 %v3961_v5 }
0x1833   :  { %3716 = vmatpush3.bf16.msra.mxu1 %v3816_v17 }
0x1834   :  { %3717 = vmatprep.subr.bf16.mxu1 %v3961_v5 }
0x1837   :  { %3718 = vmatpush3.bf16.msra.mxu1 %v3817_v18 }
0x18fd   :  { %v2902_v4 = vpop.f32.mrb[84].mxu1 }
0x18fe   :  { %v2903_v36 = vadd.f32 %v3282_v25, %v2902_v4  ;;  %v3701_v35 = vpop.f32.mrb[85].mxu1 }
0x18ff   :  { %v2905_v38 = vpop.f32.mrb[86].mxu1 }
0x1900   :  { %v4741_v39 = vadd.f32 %v2903_v36, %v4499_v0  ;;  %v2906_v51 = vadd.f32 %v3282_v25, %v2905_v38  ;;  %v3702_v42 = vpop.f32.mrb[87].mxu1 }
0x1901   :  { %v3308_v42 = vld [vmem:[%s4834_s17 + $0x1] ss:$0 sm:$0xff] }
0x1902   :  { %v4744_v43 = vadd.f32 %v2906_v51, %v4502_v2  ;;  %v2915_v44 = vsel %vm289_vm6, %v4741_v39, 0.0 }
0x1903   :  { %2916 = vadd.xlane.f32.xlu1 %v2915_v44 }
0x1904   :  { %v2918_v45 = vsel %vm289_vm6, %v4744_v43, 0.0 }
0x1905   :  { %2919 = vadd.xlane.f32.xlu0 %v2918_v45 }
0x1990   :  { %v2917_v6 = vpop.xlane.xlu1 %2916 }
0x1991   :  { %v2921_v59 = vmul.f32 0.03125, %v2917_v6 }
0x1992   :  { %v2920_v54 = vpop.xlane.xlu0 %2919 }
0x1993   :  { %v2923_v41 = vsub.f32 %v4741_v39, %v2921_v59  ;;  %v2922_v0 = vmul.f32 0.03125, %v2920_v54 }
0x1995   :  { %v2924_v32 = vsub.f32 %v4744_v43, %v2922_v0  ;;  %v2925_v48 = vmul.f32 %v2923_v41, %v2923_v41 }
0x1997   :  { %v2927_v2 = vsel %vm289_vm6, %v2925_v48, 0.0  ;;  %v2926_v50 = vmul.f32 %v2924_v32, %v2924_v32 }
0x1998   :  { %2928 = vadd.xlane.f32.xlu0 %v2927_v2 }
0x1999   :  { %v2930_v52 = vsel %vm289_vm6, %v2926_v50, 0.0 }
0x199a   :  { %2931 = vadd.xlane.f32.xlu1 %v2930_v52 }
0x1a25   :  { %v2929_v47 = vpop.xlane.xlu0 %2928 }
0x1a26   :  { %v2933_v57 = vmul.f32 0.03125, %v2929_v47 }
0x1a27   :  { %v2932_v63 = vpop.xlane.xlu1 %2931 }
0x1a28   :  { %v2935_v61 = vadd.f32 1e-05, %v2933_v57  ;;  %v2934_v60 = vmul.f32 0.03125, %v2932_v63 }
0x1a2a   :  { %3910 = vrsqrt.f32 %v2935_v61  ;;  %v2936_v1 = vadd.f32 1e-05, %v2934_v60 }
0x1a2c   :  { %3912 = vrsqrt.f32 %v2936_v1 }
0x1a34   :  { %v3911_v40 = vpop.eup %3910 }
0x1a35   :  { %v2939_v3 = vmul.f32 %v3911_v40, %v2923_v41 }
0x1a36   :  { %v3913_v49 = vpop.eup %3912 }
0x1a37   :  { %v2947_v7 = vmul.f32 %v3288_v8, %v2939_v3  ;;  %v2940_v11 = vmul.f32 %v3913_v49, %v2924_v32 }
0x1a39   :  { %v2948_v53 = vmul.f32 %v3288_v8, %v2940_v11  ;;  %v2955_v13 = vadd.f32 %v3289_v12, %v2947_v7  ;;  %v3314_v11 = vld [vmem:[%s4835_s18] ss:$0 sm:$0xff] }
0x1a3b   :  { %v2956_v14 = vadd.f32 %v3289_v12, %v2948_v53 }
0x1a3d   :  { %v2964_v58 = vpack.c.bf16 %v2956_v14, %v2955_v13  ;;  %v3315_v13 = vld [vmem:[%s4836_s19] ss:$0 sm:$0xff] }
0x1a3f   :  { %3708 = vmatmul.mubr.msk.bf16.vlgmr.msra.gmra.mrb[76].mxu0 %vm289_vm6, %v2964_v58 }
0x1b12   :  { %v3020_v28 = vpop.f32.mrb[76].mxu0 }
0x1b13   :  { %v3021_v37 = vadd.f32 %v3295_v19, %v3020_v28  ;;  %v3709_v20 = vpop.f32.mrb[77].mxu0 }
0x1b14   :  { %v3023_v21 = vpop.f32.mrb[78].mxu0 }
0x1b15   :  { %v3029_v22 = vmul.f32 0.044715, %v3021_v37  ;;  %v3024_v33 = vadd.f32 %v3295_v19, %v3023_v21  ;;  %v3710_v46 = vpop.f32.mrb[79].mxu0  ;;  %v3027_v25 = vmul.f32 0.5, %v3021_v37 }
0x1b17   :  { %v3031_v23 = vmul.f32 %v3029_v22, %v3021_v37  ;;  %v3030_v9 = vmul.f32 0.044715, %v3024_v33  ;;  %v3028_v4 = vmul.f32 0.5, %v3024_v33 }
0x1b19   :  { %v3033_v24 = vmul.f32 %v3031_v23, %v3021_v37  ;;  %v3032_v26 = vmul.f32 %v3030_v9, %v3024_v33 }
0x1b1b   :  { %v3035_v62 = vadd.f32 %v3033_v24, %v3021_v37  ;;  %v3034_v27 = vmul.f32 %v3032_v26, %v3024_v33 }
0x1b1d   :  { %v3037_v10 = vmul.f32 0.7978846, %v3035_v62  ;;  %v3036_v5 = vadd.f32 %v3034_v27, %v3024_v33 }
0x1b1f   :  { %3914 = vtanh.f32 %v3037_v10  ;;  %v3038_v29 = vmul.f32 0.7978846, %v3036_v5 }
0x1b21   :  { %3916 = vtanh.f32 %v3038_v29 }
0x1b29   :  { %v3915_v30 = vpop.eup %3914 }
0x1b2a   :  { %v3041_v31 = vadd.f32 1.0, %v3915_v30 }
0x1b2b   :  { %v3917_v34 = vpop.eup %3916 }
0x1b2c   :  { %v3042_v36 = vadd.f32 1.0, %v3917_v34  ;;  %v3043_v35 = vmul.f32 %v3041_v31, %v3027_v25 }
0x1b2e   :  { %v3044_v38 = vmul.f32 %v3042_v36, %v3028_v4 }
0x1b30   :  { %v3056_v51 = vpack.c.bf16 %v3044_v38, %v3043_v35 }
0x1b32   :  { %3720 = vmatmul.mubr.msk.bf16.vlgmr.msra.gmra.mrb[88].mxu1 %vm292_vm7, %v3056_v51 }
0x1c05   :  { %v3124_v44 = vpop.f32.mrb[88].mxu1 }
0x1c06   :  { %v3125_v45 = vadd.f32 %v3308_v42, %v3124_v44  ;;  %v3721_v6 = vpop.f32.mrb[89].mxu1 }
0x1c07   :  { %v3127_v59 = vpop.f32.mrb[90].mxu1 }
0x1c08   :  { %v3131_v54 = vadd.f32 %v3125_v45, %v4741_v39  ;;  %v3128_v41 = vadd.f32 %v3308_v42, %v3127_v59  ;;  %v3722_v0 = vpop.f32.mrb[91].mxu1 }
0x1c0a   :  { %v3132_v32 = vadd.f32 %v3128_v41, %v4744_v43  ;;  %v3135_v48 = vsel %vm289_vm6, %v3131_v54, 0.0 }
0x1c0b   :  { %3136 = vadd.xlane.f32.xlu0 %v3135_v48 }
0x1c0c   :  { %v3138_v2 = vsel %vm289_vm6, %v3132_v32, 0.0 }
0x1c0d   :  { %3139 = vadd.xlane.f32.xlu1 %v3138_v2 }
0x1c98   :  { %v3137_v50 = vpop.xlane.xlu0 %3136 }
0x1c99   :  { %v3141_v52 = vmul.f32 0.03125, %v3137_v50 }
0x1c9a   :  { %v3140_v55 = vpop.xlane.xlu1 %3139 }
0x1c9b   :  { %v3143_v56 = vsub.f32 %v3131_v54, %v3141_v52  ;;  %v3142_v47 = vmul.f32 0.03125, %v3140_v55 }
0x1c9d   :  { %v3144_v57 = vsub.f32 %v3132_v32, %v3142_v47  ;;  %v3145_v63 = vmul.f32 %v3143_v56, %v3143_v56 }
0x1c9f   :  { %v3147_v61 = vsel %vm289_vm6, %v3145_v63, 0.0  ;;  %v3146_v39 = vmul.f32 %v3144_v57, %v3144_v57 }
0x1ca0   :  { %3148 = vadd.xlane.f32.xlu0 %v3147_v61 }
0x1ca1   :  { %v3150_v60 = vsel %vm289_vm6, %v3146_v39, 0.0 }
0x1ca2   :  { %3151 = vadd.xlane.f32.xlu1 %v3150_v60 }
0x1d2d   :  { %v3149_v43 = vpop.xlane.xlu0 %3148 }
0x1d2e   :  { %v3153_v1 = vmul.f32 0.03125, %v3149_v43 }
0x1d2f   :  { %v3152_v40 = vpop.xlane.xlu1 %3151 }
0x1d30   :  { %v3155_v8 = vadd.f32 1e-05, %v3153_v1  ;;  %v3154_v3 = vmul.f32 0.03125, %v3152_v40 }
0x1d32   :  { %3918 = vrsqrt.f32 %v3155_v8  ;;  %v3156_v49 = vadd.f32 1e-05, %v3154_v3 }
0x1d34   :  { %3920 = vrsqrt.f32 %v3156_v49 }
0x1d3c   :  { %v3919_v7 = vpop.eup %3918 }
0x1d3d   :  { %v3159_v12 = vmul.f32 %v3919_v7, %v3143_v56 }
0x1d3e   :  { %v3921_v53 = vpop.eup %3920 }
0x1d3f   :  { %v3160_v14 = vmul.f32 %v3921_v53, %v3144_v57  ;;  %v3167_v58 = vmul.f32 %v3314_v11, %v3159_v12 }
0x1d41   :  { %v3168_v15 = vmul.f32 %v3314_v11, %v3160_v14  ;;  %v3175_v16 = vadd.f32 %v3315_v13, %v3167_v58 }
0x1d43   :  { %v3176_v17 = vadd.f32 %v3315_v13, %v3168_v15  ;;  %3177 = vst.msk [vmem:[#allocation4] sm:$0xff] %vm289_vm6, %v3175_v16 }
0x1d45   :  { %3178 = vst.msk [vmem:[#allocation4 + $0x8] sm:$0xff] %vm289_vm6, %v3176_v17 }
0x1d46   :  { %3945 = shalt.err (!%p3942_p9)
}
0x1d47   :  { %s3946_s11 = scalar_lea.hbm %s4837_s20, 256 }
0x1d48   :  { %p3947_p10 = scmp.ne.s32.totalorder %s4837_s20, %s3946_s11  ;;  %p3950_p11 = scmp.lt.u32.totalorder %s3946_s11, %s4837_s20 }
0x1d4a   :  { %p3952_p12 = pnand %p3950_p11, %p3947_p10 }
0x1d4c   :  { %3955 = shalt.err (!%p3952_p12)
}
0x1d4d   :  { %s3975_s21 = smov 128  }
0x1d4e   :  { %3190 = dma.vmem_to_hbm [thread:$0]  %s3185_s10, 256, %s4837_s20, [#allocation5], %s3975_s21, %s3975_s21, %s3972_s4  }
0x1d4f   :  { %3958 = dma.done.wait [#allocation5], 256  }
0x1d50   :  { %3959 = vsyncadd [#allocation5], 4294967040 }
0x1d51   :  { %3194 = vsyncpa [#allocation5], 1 }

</bundles_post_ra>
